<compile_context>
chip_gen: v5e
topology: v5e:2x2
jax: 0.10.0
libtpu: 0.0.40
codegen_flags: <defaults>
</compile_context>

<pallas_src>
import functools

import jax
import jax.numpy as jnp
from jax.experimental import pallas as pl
from jax.experimental.pallas import tpu as pltpu

NEG_SLOPE = 0.2     # nn.LeakyReLU(0.2)
LANE = 128          # TPU lane width: keep channel dims a multiple of this.


def _round_up(n, m):
    return (n + m - 1) // m * m


# ---------------------------------------------------------------------------
# Pallas kernels
# ---------------------------------------------------------------------------
def _conv3x3_kernel(x_ref, w_ref, b_ref, o_ref, *, slope):
    """3x3 stride-1 conv on one batch element.

    x_ref: (1, H+2, W+2, Cin)  spatially pre-padded, bf16
    w_ref: (9, Cin, Cout)      tap-major weights, bf16
    b_ref: (1, Cout)           f32
    o_ref: (1, H, W, Cout)

    The 9 shifted views are formed from the VMEM tile (no HBM im2col);
    accumulation is f32 on the MXU.
    """
    _, Hp, Wp, Cin = x_ref.shape
    H, W = Hp - 2, Wp - 2
    Cout = o_ref.shape[-1]

    xv = x_ref[0]                                    # (H+2, W+2, Cin)
    acc = jnp.zeros((H * W, Cout), jnp.float32)
    for kh in range(3):
        for kw in range(3):
            xs = xv[kh:kh + H, kw:kw + W, :].reshape(H * W, Cin)
            acc = acc + jnp.dot(xs, w_ref[kh * 3 + kw],
                                preferred_element_type=jnp.float32)
    acc = acc + b_ref[...]
    if slope is not None:
        acc = jnp.where(acc >= 0.0, acc, slope * acc)
    o_ref[...] = acc.reshape(1, H, W, Cout).astype(o_ref.dtype)


def _conv3x3_res_kernel(x_ref, w_ref, b_ref, r_ref, h_ref, o_ref, *, slope):
    """Same as _conv3x3_kernel but fuses the residual add (dual output):
       h = act(conv(x) + b);  out = h + r."""
    _, Hp, Wp, Cin = x_ref.shape
    H, W = Hp - 2, Wp - 2
    Cout = o_ref.shape[-1]

    xv = x_ref[0]
    acc = jnp.zeros((H * W, Cout), jnp.float32)
    for kh in range(3):
        for kw in range(3):
            xs = xv[kh:kh + H, kw:kw + W, :].reshape(H * W, Cin)
            acc = acc + jnp.dot(xs, w_ref[kh * 3 + kw],
                                preferred_element_type=jnp.float32)
    acc = acc + b_ref[...]
    if slope is not None:
        acc = jnp.where(acc >= 0.0, acc, slope * acc)
    h_ref[...] = acc.reshape(1, H, W, Cout).astype(h_ref.dtype)
    out = acc + r_ref[0].reshape(H * W, Cout).astype(jnp.float32)
    o_ref[...] = out.reshape(1, H, W, Cout).astype(o_ref.dtype)


def _mm_bias_kernel(p_ref, w_ref, b_ref, o_ref, *, slope):
    """out = act(patches @ W + b) for one (tm, K) x (K, Cout) tile."""
    acc = jnp.dot(p_ref[...], w_ref[...], preferred_element_type=jnp.float32)
    acc = acc + b_ref[...]
    if slope is not None:
        acc = jnp.where(acc >= 0.0, acc, slope * acc)
    o_ref[...] = acc.astype(o_ref.dtype)


def _mm_bias_res_kernel(p_ref, w_ref, b_ref, r_ref, o_ref, *, slope):
    """out = act(patches @ W + b) + residual (fused, single HBM pass)."""
    acc = jnp.dot(p_ref[...], w_ref[...], preferred_element_type=jnp.float32)
    acc = acc + b_ref[...]
    if slope is not None:
        acc = jnp.where(acc >= 0.0, acc, slope * acc)
    acc = acc + r_ref[...].astype(jnp.float32)
    o_ref[...] = acc.astype(o_ref.dtype)


# ---------------------------------------------------------------------------
# Pallas wrappers
# ---------------------------------------------------------------------------
def conv3x3_s1(x_pad, w9, b, *, slope=None, residual=None,
               out_dtype=jnp.bfloat16):
    """3x3 stride-1 convolution on spatially pre-padded NHWC (lane-dense C)."""
    N, Hp, Wp, Cin = x_pad.shape
    H, W = Hp - 2, Wp - 2
    Cout = w9.shape[-1]

    flops = 2 * N * H * W * 9 * Cin * Cout
    bytes_accessed = (N * Hp * Wp * Cin * 2 + 9 * Cin * Cout * 2 + Cout * 4
                      + N * H * W * Cout * 2
                      + (2 * N * H * W * Cout * 2 if residual is not None else 0))
    cp = pltpu.CompilerParams(dimension_semantics=("parallel",))
    ce = pl.CostEstimate(flops=flops, transcendentals=0,
                         bytes_accessed=bytes_accessed)

    in_specs = [
        pl.BlockSpec((1, Hp, Wp, Cin), lambda n: (n, 0, 0, 0)),
        pl.BlockSpec((9, Cin, Cout), lambda n: (0, 0, 0)),
        pl.BlockSpec((1, Cout), lambda n: (0, 0)),
    ]
    args = [x_pad, w9, b]

    if residual is None:
        return pl.pallas_call(
            functools.partial(_conv3x3_kernel, slope=slope),
            out_shape=jax.ShapeDtypeStruct((N, H, W, Cout), out_dtype),
            grid=(N,),
            in_specs=in_specs,
            out_specs=pl.BlockSpec((1, H, W, Cout), lambda n: (n, 0, 0, 0)),
            compiler_params=cp, cost_estimate=ce,
        )(*args)

    in_specs.append(pl.BlockSpec((1, H, W, Cout), lambda n: (n, 0, 0, 0)))
    args.append(residual)
    h, out = pl.pallas_call(
        functools.partial(_conv3x3_res_kernel, slope=slope),
        out_shape=(jax.ShapeDtypeStruct((N, H, W, Cout), out_dtype),
                   jax.ShapeDtypeStruct((N, H, W, Cout), out_dtype)),
        grid=(N,),
        in_specs=in_specs,
        out_specs=[pl.BlockSpec((1, H, W, Cout), lambda n: (n, 0, 0, 0)),
                   pl.BlockSpec((1, H, W, Cout), lambda n: (n, 0, 0, 0))],
        compiler_params=cp, cost_estimate=ce,
    )(*args)
    return h, out


def matmul_bias(patches, wmat, bias, *, slope=None, residual=None,
                out_dtype=jnp.bfloat16, tm=512):
    """out = act(patches @ wmat + bias) [+ residual], lane-dense Cout.

    Ragged M is handled with a pl.cdiv grid (Pallas masks the boundary tile);
    no host-side jnp.pad / out[:M] copies of the patch matrix.
    """
    M, K = patches.shape
    Cout = wmat.shape[1]
    tm = M if M <= tm else tm            # one big tile when M is small
    grid_m = pl.cdiv(M, tm)

    in_specs = [
        pl.BlockSpec((tm, K), lambda i: (i, 0)),
        pl.BlockSpec((K, Cout), lambda i: (0, 0)),
        pl.BlockSpec((1, Cout), lambda i: (0, 0)),
    ]
    args = [patches, wmat, bias]
    if residual is not None:
        in_specs.append(pl.BlockSpec((tm, Cout), lambda i: (i, 0)))
        args.append(residual)
        kernel = functools.partial(_mm_bias_res_kernel, slope=slope)
    else:
        kernel = functools.partial(_mm_bias_kernel, slope=slope)

    flops = 2 * M * K * Cout
    bytes_accessed = (M * K * 2 + K * Cout * 2 + Cout * 4 + M * Cout * 2
                      + (M * Cout * 2 if residual is not None else 0))

    return pl.pallas_call(
        kernel,
        out_shape=jax.ShapeDtypeStruct((M, Cout), out_dtype),
        grid=(grid_m,),
        in_specs=in_specs,
        out_specs=pl.BlockSpec((tm, Cout), lambda i: (i, 0)),
        compiler_params=pltpu.CompilerParams(
            dimension_semantics=("parallel",)),
        cost_estimate=pl.CostEstimate(flops=flops, transcendentals=0,
                                      bytes_accessed=bytes_accessed),
    )(*args)


def _im2col(x_nhwc, kh, kw, stride, padding):
    # Used only for the stride-2 downsample conv; the stride-1 3x3 convs form
    # their shifted views inside the Pallas kernel instead.
    if padding:
        x_nhwc = jnp.pad(
            x_nhwc, ((0, 0), (padding, padding), (padding, padding), (0, 0)))
    N, Hp, Wp, C = x_nhwc.shape
    Ho = (Hp - kh) // stride + 1
    Wo = (Wp - kw) // stride + 1
    cols = []
    for i in range(kh):
        for j in range(kw):
            cols.append(x_nhwc[:, i:i + (Ho - 1) * stride + 1:stride,
                               j:j + (Wo - 1) * stride + 1:stride, :])
    patches = jnp.concatenate(cols, axis=-1)      # (N, Ho, Wo, KH*KW*C)
    return patches.reshape(N * Ho * Wo, kh * kw * C), (N, Ho, Wo)


# ---------------------------------------------------------------------------
# DownBlock
# ---------------------------------------------------------------------------
def init_down_block_params(key, input_channels, filters):
    ks = jax.random.split(key, 8)

    def w_init(k, shape, fan_in):
        return (jax.random.normal(k, shape, jnp.float32)
                * (1.0 / jnp.sqrt(fan_in)))

    cin, f = input_channels, filters
    return dict(
        wr=w_init(ks[0], (1, 1, cin, f), 1 * 1 * cin),
        br=w_init(ks[1], (f,), 1 * 1 * cin),
        w1=w_init(ks[2], (3, 3, cin, f), 9 * cin),
        b1=w_init(ks[3], (f,), 9 * cin),
        w2=w_init(ks[4], (3, 3, f, f), 9 * f),
        b2=w_init(ks[5], (f,), 9 * f),
        wd=w_init(ks[6], (3, 3, f, f), 9 * f),
        bd=w_init(ks[7], (f,), 9 * f),
    )


def _prepare_padded_params(params):
    """Zero-pad weights/biases so channel dims are lane-dense (x128) and cast
    matmul operands to bf16 (accumulation stays f32 in-kernel)."""
    cin = params["w1"].shape[2]
    f = params["w1"].shape[3]
    cin_p = _round_up(cin, LANE)
    cout_p = _round_up(f, LANE)

    def pad_w(w):                          # (KH,KW,ci,co) -> (KH*KW, ci_p, cout_p)
        kh, kw, ci, co = w.shape
        ci_p = _round_up(ci, LANE)
        w = jnp.pad(w, ((0, 0), (0, 0), (0, ci_p - ci), (0, cout_p - co)))
        return w.reshape(kh * kw, ci_p, cout_p).astype(jnp.bfloat16)

    def pad_b(b):
        return (jnp.pad(b, (0, cout_p - b.shape[0]))
                .reshape(1, cout_p).astype(jnp.float32))

    wd9 = pad_w(params["wd"])              # (9, cout_p, cout_p)
    padded = dict(
        wr=pad_w(params["wr"])[0],         # (cin_p, cout_p)  1x1 conv matrix
        br=pad_b(params["br"]),
        w1=pad_w(params["w1"]),            # (9, cin_p, cout_p)
        b1=pad_b(params["b1"]),
        w2=pad_w(params["w2"]),            # (9, cout_p, cout_p)
        b2=pad_b(params["b2"]),
        wd=wd9.reshape(9 * cout_p, cout_p),  # im2col layout (tap-major)
        bd=pad_b(params["bd"]),
    )
    return padded, cin, f, cin_p, cout_p


def down_block_forward(x_nchw, params, downsample=True):
    """Returns (x, unet_res), both NCHW f32, matching DownBlock.forward."""
    pp, cin, f, cin_p, cout_p = _prepare_padded_params(params)
    N, _, H, W = x_nchw.shape

    # NCHW -> NHWC, lane-dense (128-padded) channels, bf16 activations.
    x = jnp.transpose(x_nchw, (0, 2, 3, 1)).astype(jnp.bfloat16)
    x = jnp.pad(x, ((0, 0), (0, 0), (0, 0), (0, cin_p - cin)))

    # res = self.conv_res(x): 1x1 conv, stride 2 if downsample, no padding.
    s = 2 if downsample else 1
    xr = x[:, ::s, ::s, :]
    Hr, Wr = xr.shape[1], xr.shape[2]
    res = matmul_bias(xr.reshape(N * Hr * Wr, cin_p), pp["wr"], pp["br"])
    res = res.reshape(N, Hr, Wr, cout_p)

    # x = self.net(x): conv3x3 -> LeakyReLU(0.2) -> conv3x3 -> LeakyReLU(0.2).
    x_sp = jnp.pad(x, ((0, 0), (1, 1), (1, 1), (0, 0)))
    h1 = conv3x3_s1(x_sp, pp["w1"], pp["b1"], slope=NEG_SLOPE)
    h1_sp = jnp.pad(h1, ((0, 0), (1, 1), (1, 1), (0, 0)))

    if downsample:
        h2 = conv3x3_s1(h1_sp, pp["w2"], pp["b2"], slope=NEG_SLOPE)
        unet_res = h2
        # x = self.down(x); x = x + res  (3x3 stride-2 conv, residual fused).
        # TODO(synk): this stride-2 conv still builds its patches with a
        # JAX-side im2col; a phase-decomposed in-kernel version would remove
        # the remaining ~2.25x read amplification on this (4x smaller) tensor.
        patches, (_, Ho, Wo) = _im2col(h2, 3, 3, 2, 1)
        out = matmul_bias(patches, pp["wd"], pp["bd"],
                          residual=res.reshape(N * Ho * Wo, cout_p))
        out = out.reshape(N, Ho, Wo, cout_p)
    else:
        # Residual add fused into the conv2 kernel (dual output: h, h+res).
        h2, out = conv3x3_s1(h1_sp, pp["w2"], pp["b2"], slope=NEG_SLOPE,
                             residual=res)
        unet_res = h2

    out_nchw = jnp.transpose(out[..., :f], (0, 3, 1, 2)).astype(jnp.float32)
    ur_nchw = jnp.transpose(unet_res[..., :f], (0, 3, 1, 2)).astype(jnp.float32)
    return out_nchw, ur_nchw


# ---------------------------------------------------------------------------
# Flatten (the literal module from unet_disc.py)
# ---------------------------------------------------------------------------
def flatten_forward(x, index):
    """`Flatten(index).forward(x)` == torch.flatten(x, start_dim=index)."""
    # TODO(synk): Flatten is a pure metadata reshape (zero compute, zero data
    # movement), so it is a jnp.reshape rather than a wasteful copy kernel.
    if index < 0:
        index += x.ndim
    return x.reshape(x.shape[:index] + (-1,))


# ---------------------------------------------------------------------------
# Pure-JAX reference (for correctness verification)
# ---------------------------------------------------------------------------
def _ref_conv(x_nchw, w_hwio, b, stride, padding):
    out = jax.lax.conv_general_dilated(
        x_nchw, jnp.transpose(w_hwio, (3, 2, 0, 1)),
        window_strides=(stride, stride),
        padding=[(padding, padding), (padding, padding)],
        dimension_numbers=("NCHW", "OIHW", "NCHW"))
    return out + b.reshape(1, -1, 1, 1)


def _ref_leaky(x):
    return jnp.where(x >= 0.0, x, NEG_SLOPE * x)


def down_block_reference(x_nchw, params, downsample=True):
    res = _ref_conv(x_nchw, params["wr"], params["br"],
                    2 if downsample else 1, 0)
    h = _ref_leaky(_ref_conv(x_nchw, params["w1"], params["b1"], 1, 1))
    h = _ref_leaky(_ref_conv(h, params["w2"], params["b2"], 1, 1))
    unet_res = h
    if downsample:
        h = _ref_conv(h, params["wd"], params["bd"], 2, 1)
    return h + res, unet_res


def _check(got, want, tol=0.03):
    got = jnp.asarray(got, jnp.float32)
    err = float(jnp.max(jnp.abs(got - want)) / (jnp.max(jnp.abs(want)) + 1e-6))
    assert err < tol, f"mismatch: normalized max abs err = {err}"


# ---------------------------------------------------------------------------
if __name__ == "__main__":
    key = jax.random.PRNGKey(0)
    k_x, k_p = jax.random.split(key)

    batch, input_channels, filters, spatial = 2, 4, 8, 16
    x = jax.random.normal(k_x, (batch, input_channels, spatial, spatial),
                          jnp.float32)
    params = init_down_block_params(k_p, input_channels, filters)

    fwd = jax.jit(down_block_forward, static_argnames=("downsample",))

    # downsample=True path (im2col down conv with fused residual add).
    out, unet_res = fwd(x, params, downsample=True)
    out = jax.block_until_ready(out)
    unet_res = jax.block_until_ready(unet_res)
    assert out.shape == (batch, filters, spatial // 2, spatial // 2)
    assert unet_res.shape == (batch, filters, spatial, spatial)
    ref_out, ref_unet = down_block_reference(x, params, downsample=True)
    _check(out, ref_out)
    _check(unet_res, ref_unet)

    # downsample=False path (residual add fused into the conv2 kernel).
    out2, unet2 = fwd(x, params, downsample=False)
    out2 = jax.block_until_ready(out2)
    unet2 = jax.block_until_ready(unet2)
    assert out2.shape == (batch, filters, spatial, spatial)
    assert unet2.shape == (batch, filters, spatial, spatial)
    ref_out2, ref_unet2 = down_block_reference(x, params, downsample=False)
    _check(out2, ref_out2)
    _check(unet2, ref_unet2)

    # Flatten (the spec module itself).
    flat = flatten_forward(out, 1)
    assert flat.shape == (batch, filters * (spatial // 2) * (spatial // 2))
    assert bool(jnp.array_equal(flat, out.reshape(batch, -1)))

    print("KERNEL_OK")
</pallas_src>

<mosaic_0001>
module attributes {stable_mosaic.version = 11 : i64} {
  func.func @_conv3x3_kernel(%arg0: i32, %arg1: memref<1x18x18x128xbf16, #tpu.memory_space<vmem>>, %arg2: memref<9x128x128xbf16, #tpu.memory_space<vmem>>, %arg3: memref<1x128xf32, #tpu.memory_space<vmem>>, %arg4: memref<1x16x16x128xbf16, #tpu.memory_space<vmem>>) attributes {dimension_semantics = [#tpu.dimension_semantics<parallel>], iteration_bounds = array<i64: 2>, scalar_prefetch = 0 : i64, scratch_operands = 0 : i64, tpu.core_type = #tpu.core_type<tc>, window_params = [{transform_indices = @transform_0, window_bounds = array<i64: 1, 18, 18, 128>}, {pipeline_mode = #tpu.pipeline_mode<synchronous>, transform_indices = @transform_1, window_bounds = array<i64: 9, 128, 128>}, {pipeline_mode = #tpu.pipeline_mode<synchronous>, transform_indices = @transform_2, window_bounds = array<i64: 1, 128>}, {transform_indices = @transform_3, window_bounds = array<i64: 1, 16, 16, 128>}]} {
    %c0 = arith.constant 0 : index
    %c0_0 = arith.constant 0 : index
    %c0_1 = arith.constant 0 : index
    %c0_2 = arith.constant 0 : index
    %0 = vector.load %arg1[%c0, %c0_0, %c0_1, %c0_2] : memref<1x18x18x128xbf16, #tpu.memory_space<vmem>>, vector<1x18x18x128xbf16>
    %1 = vector.shape_cast %0 : vector<1x18x18x128xbf16> to vector<18x18x128xbf16>
    %cst = arith.constant 0.000000e+00 : f32
    %2 = vector.broadcast %cst : f32 to vector<256x128xf32>
    %3 = vector.extract_strided_slice %1 {offsets = [0, 0, 0], sizes = [16, 16, 128], strides = [1, 1, 1]} : vector<18x18x128xbf16> to vector<16x16x128xbf16>
    %4 = vector.shape_cast %3 : vector<16x16x128xbf16> to vector<256x128xbf16>
    %c0_3 = arith.constant 0 : index
    %c0_4 = arith.constant 0 : index
    %c0_5 = arith.constant 0 : index
    %5 = vector.load %arg2[%c0_3, %c0_4, %c0_5] : memref<9x128x128xbf16, #tpu.memory_space<vmem>>, vector<1x128x128xbf16>
    %6 = vector.shape_cast %5 : vector<1x128x128xbf16> to vector<128x128xbf16>
    %cst_6 = arith.constant dense<0.000000e+00> : vector<256x128xf32>
    %7 = tpu.matmul %4, %6, %cst_6 {dimension_numbers = #tpu.dot_dimension_numbers<[1], [0], [0], [1], [0, 0, 1, 1], [], []>} : vector<256x128xbf16>, vector<128x128xbf16>, vector<256x128xf32> -> vector<256x128xf32>
    %8 = arith.addf %2, %7 : vector<256x128xf32>
    %9 = vector.extract_strided_slice %1 {offsets = [0, 1, 0], sizes = [16, 16, 128], strides = [1, 1, 1]} : vector<18x18x128xbf16> to vector<16x16x128xbf16>
    %10 = vector.shape_cast %9 : vector<16x16x128xbf16> to vector<256x128xbf16>
    %c1 = arith.constant 1 : index
    %c0_7 = arith.constant 0 : index
    %c0_8 = arith.constant 0 : index
    %11 = vector.load %arg2[%c1, %c0_7, %c0_8] : memref<9x128x128xbf16, #tpu.memory_space<vmem>>, vector<1x128x128xbf16>
    %12 = vector.shape_cast %11 : vector<1x128x128xbf16> to vector<128x128xbf16>
    %cst_9 = arith.constant dense<0.000000e+00> : vector<256x128xf32>
    %13 = tpu.matmul %10, %12, %cst_9 {dimension_numbers = #tpu.dot_dimension_numbers<[1], [0], [0], [1], [0, 0, 1, 1], [], []>} : vector<256x128xbf16>, vector<128x128xbf16>, vector<256x128xf32> -> vector<256x128xf32>
    %14 = arith.addf %8, %13 : vector<256x128xf32>
    %15 = vector.extract_strided_slice %1 {offsets = [0, 2, 0], sizes = [16, 16, 128], strides = [1, 1, 1]} : vector<18x18x128xbf16> to vector<16x16x128xbf16>
    %16 = vector.shape_cast %15 : vector<16x16x128xbf16> to vector<256x128xbf16>
    %c2 = arith.constant 2 : index
    %c0_10 = arith.constant 0 : index
    %c0_11 = arith.constant 0 : index
    %17 = vector.load %arg2[%c2, %c0_10, %c0_11] : memref<9x128x128xbf16, #tpu.memory_space<vmem>>, vector<1x128x128xbf16>
    %18 = vector.shape_cast %17 : vector<1x128x128xbf16> to vector<128x128xbf16>
    %cst_12 = arith.constant dense<0.000000e+00> : vector<256x128xf32>
    %19 = tpu.matmul %16, %18, %cst_12 {dimension_numbers = #tpu.dot_dimension_numbers<[1], [0], [0], [1], [0, 0, 1, 1], [], []>} : vector<256x128xbf16>, vector<128x128xbf16>, vector<256x128xf32> -> vector<256x128xf32>
    %20 = arith.addf %14, %19 : vector<256x128xf32>
    %21 = vector.extract_strided_slice %1 {offsets = [1, 0, 0], sizes = [16, 16, 128], strides = [1, 1, 1]} : vector<18x18x128xbf16> to vector<16x16x128xbf16>
    %22 = vector.shape_cast %21 : vector<16x16x128xbf16> to vector<256x128xbf16>
    %c3 = arith.constant 3 : index
    %c0_13 = arith.constant 0 : index
    %c0_14 = arith.constant 0 : index
    %23 = vector.load %arg2[%c3, %c0_13, %c0_14] : memref<9x128x128xbf16, #tpu.memory_space<vmem>>, vector<1x128x128xbf16>
    %24 = vector.shape_cast %23 : vector<1x128x128xbf16> to vector<128x128xbf16>
    %cst_15 = arith.constant dense<0.000000e+00> : vector<256x128xf32>
    %25 = tpu.matmul %22, %24, %cst_15 {dimension_numbers = #tpu.dot_dimension_numbers<[1], [0], [0], [1], [0, 0, 1, 1], [], []>} : vector<256x128xbf16>, vector<128x128xbf16>, vector<256x128xf32> -> vector<256x128xf32>
    %26 = arith.addf %20, %25 : vector<256x128xf32>
    %27 = vector.extract_strided_slice %1 {offsets = [1, 1, 0], sizes = [16, 16, 128], strides = [1, 1, 1]} : vector<18x18x128xbf16> to vector<16x16x128xbf16>
    %28 = vector.shape_cast %27 : vector<16x16x128xbf16> to vector<256x128xbf16>
    %c4 = arith.constant 4 : index
    %c0_16 = arith.constant 0 : index
    %c0_17 = arith.constant 0 : index
    %29 = vector.load %arg2[%c4, %c0_16, %c0_17] : memref<9x128x128xbf16, #tpu.memory_space<vmem>>, vector<1x128x128xbf16>
    %30 = vector.shape_cast %29 : vector<1x128x128xbf16> to vector<128x128xbf16>
    %cst_18 = arith.constant dense<0.000000e+00> : vector<256x128xf32>
    %31 = tpu.matmul %28, %30, %cst_18 {dimension_numbers = #tpu.dot_dimension_numbers<[1], [0], [0], [1], [0, 0, 1, 1], [], []>} : vector<256x128xbf16>, vector<128x128xbf16>, vector<256x128xf32> -> vector<256x128xf32>
    %32 = arith.addf %26, %31 : vector<256x128xf32>
    %33 = vector.extract_strided_slice %1 {offsets = [1, 2, 0], sizes = [16, 16, 128], strides = [1, 1, 1]} : vector<18x18x128xbf16> to vector<16x16x128xbf16>
    %34 = vector.shape_cast %33 : vector<16x16x128xbf16> to vector<256x128xbf16>
    %c5 = arith.constant 5 : index
    %c0_19 = arith.constant 0 : index
    %c0_20 = arith.constant 0 : index
    %35 = vector.load %arg2[%c5, %c0_19, %c0_20] : memref<9x128x128xbf16, #tpu.memory_space<vmem>>, vector<1x128x128xbf16>
    %36 = vector.shape_cast %35 : vector<1x128x128xbf16> to vector<128x128xbf16>
    %cst_21 = arith.constant dense<0.000000e+00> : vector<256x128xf32>
    %37 = tpu.matmul %34, %36, %cst_21 {dimension_numbers = #tpu.dot_dimension_numbers<[1], [0], [0], [1], [0, 0, 1, 1], [], []>} : vector<256x128xbf16>, vector<128x128xbf16>, vector<256x128xf32> -> vector<256x128xf32>
    %38 = arith.addf %32, %37 : vector<256x128xf32>
    %39 = vector.extract_strided_slice %1 {offsets = [2, 0, 0], sizes = [16, 16, 128], strides = [1, 1, 1]} : vector<18x18x128xbf16> to vector<16x16x128xbf16>
    %40 = vector.shape_cast %39 : vector<16x16x128xbf16> to vector<256x128xbf16>
    %c6 = arith.constant 6 : index
    %c0_22 = arith.constant 0 : index
    %c0_23 = arith.constant 0 : index
    %41 = vector.load %arg2[%c6, %c0_22, %c0_23] : memref<9x128x128xbf16, #tpu.memory_space<vmem>>, vector<1x128x128xbf16>
    %42 = vector.shape_cast %41 : vector<1x128x128xbf16> to vector<128x128xbf16>
    %cst_24 = arith.constant dense<0.000000e+00> : vector<256x128xf32>
    %43 = tpu.matmul %40, %42, %cst_24 {dimension_numbers = #tpu.dot_dimension_numbers<[1], [0], [0], [1], [0, 0, 1, 1], [], []>} : vector<256x128xbf16>, vector<128x128xbf16>, vector<256x128xf32> -> vector<256x128xf32>
    %44 = arith.addf %38, %43 : vector<256x128xf32>
    %45 = vector.extract_strided_slice %1 {offsets = [2, 1, 0], sizes = [16, 16, 128], strides = [1, 1, 1]} : vector<18x18x128xbf16> to vector<16x16x128xbf16>
    %46 = vector.shape_cast %45 : vector<16x16x128xbf16> to vector<256x128xbf16>
    %c7 = arith.constant 7 : index
    %c0_25 = arith.constant 0 : index
    %c0_26 = arith.constant 0 : index
    %47 = vector.load %arg2[%c7, %c0_25, %c0_26] : memref<9x128x128xbf16, #tpu.memory_space<vmem>>, vector<1x128x128xbf16>
    %48 = vector.shape_cast %47 : vector<1x128x128xbf16> to vector<128x128xbf16>
    %cst_27 = arith.constant dense<0.000000e+00> : vector<256x128xf32>
    %49 = tpu.matmul %46, %48, %cst_27 {dimension_numbers = #tpu.dot_dimension_numbers<[1], [0], [0], [1], [0, 0, 1, 1], [], []>} : vector<256x128xbf16>, vector<128x128xbf16>, vector<256x128xf32> -> vector<256x128xf32>
    %50 = arith.addf %44, %49 : vector<256x128xf32>
    %51 = vector.extract_strided_slice %1 {offsets = [2, 2, 0], sizes = [16, 16, 128], strides = [1, 1, 1]} : vector<18x18x128xbf16> to vector<16x16x128xbf16>
    %52 = vector.shape_cast %51 : vector<16x16x128xbf16> to vector<256x128xbf16>
    %c8 = arith.constant 8 : index
    %c0_28 = arith.constant 0 : index
    %c0_29 = arith.constant 0 : index
    %53 = vector.load %arg2[%c8, %c0_28, %c0_29] : memref<9x128x128xbf16, #tpu.memory_space<vmem>>, vector<1x128x128xbf16>
    %54 = vector.shape_cast %53 : vector<1x128x128xbf16> to vector<128x128xbf16>
    %cst_30 = arith.constant dense<0.000000e+00> : vector<256x128xf32>
    %55 = tpu.matmul %52, %54, %cst_30 {dimension_numbers = #tpu.dot_dimension_numbers<[1], [0], [0], [1], [0, 0, 1, 1], [], []>} : vector<256x128xbf16>, vector<128x128xbf16>, vector<256x128xf32> -> vector<256x128xf32>
    %56 = arith.addf %50, %55 : vector<256x128xf32>
    %c0_31 = arith.constant 0 : index
    %c0_32 = arith.constant 0 : index
    %57 = vector.load %arg3[%c0_31, %c0_32] : memref<1x128xf32, #tpu.memory_space<vmem>>, vector<1x128xf32>
    %58 = vector.broadcast %57 : vector<1x128xf32> to vector<256x128xf32>
    %59 = arith.addf %56, %58 : vector<256x128xf32>
    %cst_33 = arith.constant 0.000000e+00 : f32
    %60 = vector.broadcast %cst_33 : f32 to vector<256x128xf32>
    %61 = arith.cmpf oge, %59, %60 : vector<256x128xf32>
    %cst_34 = arith.constant 2.000000e-01 : f32
    %62 = vector.broadcast %cst_34 : f32 to vector<256x128xf32>
    %63 = arith.mulf %62, %59 : vector<256x128xf32>
    %64 = arith.select %61, %59, %63 : vector<256x128xi1>, vector<256x128xf32>
    %65 = vector.shape_cast %64 : vector<256x128xf32> to vector<1x16x16x128xf32>
    %66 = arith.truncf %65 : vector<1x16x16x128xf32> to vector<1x16x16x128xbf16>
    %c0_35 = arith.constant 0 : index
    %c0_36 = arith.constant 0 : index
    %c0_37 = arith.constant 0 : index
    %c0_38 = arith.constant 0 : index
    %67 = vector.load %arg4[%c0_35, %c0_36, %c0_37, %c0_38] : memref<1x16x16x128xbf16, #tpu.memory_space<vmem>>, vector<1x16x16x128xbf16>
    tpu.vector_store %arg4[%c0_35, %c0_36, %c0_37, %c0_38], %66 {strides = array<i32>} : memref<1x16x16x128xbf16, #tpu.memory_space<vmem>>, vector<1x16x16x128xbf16>,
    return
  }
  func.func @transform_0(%arg0: i32) -> (i32, i32, i32, i32) {
    %c0_i32 = arith.constant 0 : i32
    %c0_i32_0 = arith.constant 0 : i32
    %c0_i32_1 = arith.constant 0 : i32
    %c0_i32_2 = arith.constant 0 : i32
    return %arg0, %c0_i32, %c0_i32_0, %c0_i32_1 : i32, i32, i32, i32
  }
  func.func @transform_1(%arg0: i32) -> (i32, i32, i32) {
    %c0_i32 = arith.constant 0 : i32
    %c0_i32_0 = arith.constant 0 : i32
    %c0_i32_1 = arith.constant 0 : i32
    %c0_i32_2 = arith.constant 0 : i32
    return %c0_i32, %c0_i32_0, %c0_i32_1 : i32, i32, i32
  }
  func.func @transform_2(%arg0: i32) -> (i32, i32) {
    %c0_i32 = arith.constant 0 : i32
    %c0_i32_0 = arith.constant 0 : i32
    %c0_i32_1 = arith.constant 0 : i32
    return %c0_i32, %c0_i32_0 : i32, i32
  }
  func.func @transform_3(%arg0: i32) -> (i32, i32, i32, i32) {
    %c0_i32 = arith.constant 0 : i32
    %c0_i32_0 = arith.constant 0 : i32
    %c0_i32_1 = arith.constant 0 : i32
    %c0_i32_2 = arith.constant 0 : i32
    return %arg0, %c0_i32, %c0_i32_0, %c0_i32_1 : i32, i32, i32, i32
  }
}

module attributes {stable_mosaic.version = 11 : i64} {
  func.func @_mm_bias_res_kernel(%arg0: i32, %arg1: memref<128x1152xbf16, #tpu.memory_space<vmem>>, %arg2: memref<1152x128xbf16, #tpu.memory_space<vmem>>, %arg3: memref<1x128xf32, #tpu.memory_space<vmem>>, %arg4: memref<128x128xbf16, #tpu.memory_space<vmem>>, %arg5: memref<128x128xbf16, #tpu.memory_space<vmem>>) attributes {dimension_semantics = [#tpu.dimension_semantics<parallel>], iteration_bounds = array<i64: 1>, scalar_prefetch = 0 : i64, scratch_operands = 0 : i64, tpu.core_type = #tpu.core_type<tc>, window_params = [{transform_indices = @transform_0, window_bounds = array<i64: 128, 1152>}, {pipeline_mode = #tpu.pipeline_mode<synchronous>, transform_indices = @transform_1, window_bounds = array<i64: 1152, 128>}, {pipeline_mode = #tpu.pipeline_mode<synchronous>, transform_indices = @transform_2, window_bounds = array<i64: 1, 128>}, {transform_indices = @transform_3, window_bounds = array<i64: 128, 128>}, {transform_indices = @transform_4, window_bounds = array<i64: 128, 128>}]} {
    %c0 = arith.constant 0 : index
    %c0_0 = arith.constant 0 : index
    %0 = vector.load %arg1[%c0, %c0_0] : memref<128x1152xbf16, #tpu.memory_space<vmem>>, vector<128x1152xbf16>
    %c0_1 = arith.constant 0 : index
    %c0_2 = arith.constant 0 : index
    %1 = vector.load %arg2[%c0_1, %c0_2] : memref<1152x128xbf16, #tpu.memory_space<vmem>>, vector<1152x128xbf16>
    %cst = arith.constant dense<0.000000e+00> : vector<128x128xf32>
    %2 = tpu.matmul %0, %1, %cst {dimension_numbers = #tpu.dot_dimension_numbers<[1], [0], [0], [1], [0, 0, 1, 1], [], []>} : vector<128x1152xbf16>, vector<1152x128xbf16>, vector<128x128xf32> -> vector<128x128xf32>
    %c0_3 = arith.constant 0 : index
    %c0_4 = arith.constant 0 : index
    %3 = vector.load %arg3[%c0_3, %c0_4] : memref<1x128xf32, #tpu.memory_space<vmem>>, vector<1x128xf32>
    %4 = vector.broadcast %3 : vector<1x128xf32> to vector<128x128xf32>
    %5 = arith.addf %2, %4 : vector<128x128xf32>
    %c0_5 = arith.constant 0 : index
    %c0_6 = arith.constant 0 : index
    %6 = vector.load %arg4[%c0_5, %c0_6] : memref<128x128xbf16, #tpu.memory_space<vmem>>, vector<128x128xbf16>
    %7 = arith.extf %6 : vector<128x128xbf16> to vector<128x128xf32>
    %8 = arith.addf %5, %7 : vector<128x128xf32>
    %9 = arith.truncf %8 : vector<128x128xf32> to vector<128x128xbf16>
    %c0_7 = arith.constant 0 : index
    %c0_8 = arith.constant 0 : index
    %10 = vector.load %arg5[%c0_7, %c0_8] : memref<128x128xbf16, #tpu.memory_space<vmem>>, vector<128x128xbf16>
    tpu.vector_store %arg5[%c0_7, %c0_8], %9 {strides = array<i32>} : memref<128x128xbf16, #tpu.memory_space<vmem>>, vector<128x128xbf16>,
    return
  }
  func.func @transform_0(%arg0: i32) -> (i32, i32) {
    %c0_i32 = arith.constant 0 : i32
    %c0_i32_0 = arith.constant 0 : i32
    return %arg0, %c0_i32 : i32, i32
  }
  func.func @transform_1(%arg0: i32) -> (i32, i32) {
    %c0_i32 = arith.constant 0 : i32
    %c0_i32_0 = arith.constant 0 : i32
    %c0_i32_1 = arith.constant 0 : i32
    return %c0_i32, %c0_i32_0 : i32, i32
  }
  func.func @transform_2(%arg0: i32) -> (i32, i32) {
    %c0_i32 = arith.constant 0 : i32
    %c0_i32_0 = arith.constant 0 : i32
    %c0_i32_1 = arith.constant 0 : i32
    return %c0_i32, %c0_i32_0 : i32, i32
  }
  func.func @transform_3(%arg0: i32) -> (i32, i32) {
    %c0_i32 = arith.constant 0 : i32
    %c0_i32_0 = arith.constant 0 : i32
    return %arg0, %c0_i32 : i32, i32
  }
  func.func @transform_4(%arg0: i32) -> (i32, i32) {
    %c0_i32 = arith.constant 0 : i32
    %c0_i32_0 = arith.constant 0 : i32
    return %arg0, %c0_i32 : i32, i32
  }
}

module attributes {stable_mosaic.version = 11 : i64} {
  func.func @_mm_bias_kernel(%arg0: i32, %arg1: memref<128x128xbf16, #tpu.memory_space<vmem>>, %arg2: memref<128x128xbf16, #tpu.memory_space<vmem>>, %arg3: memref<1x128xf32, #tpu.memory_space<vmem>>, %arg4: memref<128x128xbf16, #tpu.memory_space<vmem>>) attributes {dimension_semantics = [#tpu.dimension_semantics<parallel>], iteration_bounds = array<i64: 1>, scalar_prefetch = 0 : i64, scratch_operands = 0 : i64, tpu.core_type = #tpu.core_type<tc>, window_params = [{transform_indices = @transform_0, window_bounds = array<i64: 128, 128>}, {pipeline_mode = #tpu.pipeline_mode<synchronous>, transform_indices = @transform_1, window_bounds = array<i64: 128, 128>}, {pipeline_mode = #tpu.pipeline_mode<synchronous>, transform_indices = @transform_2, window_bounds = array<i64: 1, 128>}, {transform_indices = @transform_3, window_bounds = array<i64: 128, 128>}]} {
    %c0 = arith.constant 0 : index
    %c0_0 = arith.constant 0 : index
    %0 = vector.load %arg1[%c0, %c0_0] : memref<128x128xbf16, #tpu.memory_space<vmem>>, vector<128x128xbf16>
    %c0_1 = arith.constant 0 : index
    %c0_2 = arith.constant 0 : index
    %1 = vector.load %arg2[%c0_1, %c0_2] : memref<128x128xbf16, #tpu.memory_space<vmem>>, vector<128x128xbf16>
    %cst = arith.constant dense<0.000000e+00> : vector<128x128xf32>
    %2 = tpu.matmul %0, %1, %cst {dimension_numbers = #tpu.dot_dimension_numbers<[1], [0], [0], [1], [0, 0, 1, 1], [], []>} : vector<128x128xbf16>, vector<128x128xbf16>, vector<128x128xf32> -> vector<128x128xf32>
    %c0_3 = arith.constant 0 : index
    %c0_4 = arith.constant 0 : index
    %3 = vector.load %arg3[%c0_3, %c0_4] : memref<1x128xf32, #tpu.memory_space<vmem>>, vector<1x128xf32>
    %4 = vector.broadcast %3 : vector<1x128xf32> to vector<128x128xf32>
    %5 = arith.addf %2, %4 : vector<128x128xf32>
    %6 = arith.truncf %5 : vector<128x128xf32> to vector<128x128xbf16>
    %c0_5 = arith.constant 0 : index
    %c0_6 = arith.constant 0 : index
    %7 = vector.load %arg4[%c0_5, %c0_6] : memref<128x128xbf16, #tpu.memory_space<vmem>>, vector<128x128xbf16>
    tpu.vector_store %arg4[%c0_5, %c0_6], %6 {strides = array<i32>} : memref<128x128xbf16, #tpu.memory_space<vmem>>, vector<128x128xbf16>,
    return
  }
  func.func @transform_0(%arg0: i32) -> (i32, i32) {
    %c0_i32 = arith.constant 0 : i32
    %c0_i32_0 = arith.constant 0 : i32
    return %arg0, %c0_i32 : i32, i32
  }
  func.func @transform_1(%arg0: i32) -> (i32, i32) {
    %c0_i32 = arith.constant 0 : i32
    %c0_i32_0 = arith.constant 0 : i32
    %c0_i32_1 = arith.constant 0 : i32
    return %c0_i32, %c0_i32_0 : i32, i32
  }
  func.func @transform_2(%arg0: i32) -> (i32, i32) {
    %c0_i32 = arith.constant 0 : i32
    %c0_i32_0 = arith.constant 0 : i32
    %c0_i32_1 = arith.constant 0 : i32
    return %c0_i32, %c0_i32_0 : i32, i32
  }
  func.func @transform_3(%arg0: i32) -> (i32, i32) {
    %c0_i32 = arith.constant 0 : i32
    %c0_i32_0 = arith.constant 0 : i32
    return %arg0, %c0_i32 : i32, i32
  }
}

</mosaic_0001>

<bundles_post_ra>
// kernel: down_block_forward.4
= control target key start
LH: loop header
LB: loop body
LE: loop exit
PB: predicated region body
PF: predicated region fallthrough
CT: control target
= control target key end

     0   :  { %s478_s1 = inlined_call_operand.vmem [shape: bf16[128,128], index: 1, kind: input, shape index: {}]   ;;  %s479_s2 = inlined_call_operand.vmem [shape: f32[1,128], index: 2, kind: input, shape index: {}]   ;;  %s480_s0 = inlined_call_operand.vmem [shape: bf16[128,128], index: 0, kind: input, shape index: {}]   ;;  %s481_s3 = inlined_call_operand.vmem [shape: bf16[128,128], index: 3, kind: output, shape index: {}]  }
   0x1   :  { %v310_v0 = vld [vmem:[%s478_s1 + $0x38] sm:$0xff]  ;;  %v309_v1 = vld [vmem:[%s478_s1 + $0x30] sm:$0xff]  ;;  %v308_v2 = vld [vmem:[%s478_s1 + $0x28] sm:$0xff] }
   0x2   :  { %146 = vmatpush.bf16.msra.mxu0 %v310_v0  ;;  %358 = vmatpush.bf16.msra.mxu1 %v310_v0  ;;  %v307_v3 = vld [vmem:[%s478_s1 + $0x20] sm:$0xff]  ;;  %v306_v4 = vld [vmem:[%s478_s1 + $0x18] sm:$0xff]  ;;  %v305_v5 = vld [vmem:[%s478_s1 + $0x10] sm:$0xff] }
   0x3   :  { %359 = vmatpush.bf16.msra.mxu2 %v310_v0  ;;  %360 = vmatpush.bf16.msra.mxu3 %v310_v0  ;;  %v304_v6 = vld [vmem:[%s478_s1 + $0x8] sm:$0xff]  ;;  %v303_v7 = vld [vmem:[%s478_s1] sm:$0xff]  ;;  %v297_v9 = vld [vmem:[%s480_s0 + $0x10] sm:$0xff] }
   0x4   :  { %v295_v8 = vld [vmem:[%s480_s0] sm:$0xff]  ;;  %v301_v11 = vld [vmem:[%s480_s0 + $0x30] sm:$0xff]  ;;  %v296_v12 = vld [vmem:[%s480_s0 + $0x8] sm:$0xff] }
   0x5   :  { %v299_v10 = vld [vmem:[%s480_s0 + $0x20] sm:$0xff]  ;;  %v298_v13 = vld [vmem:[%s480_s0 + $0x18] sm:$0xff]  ;;  %v300_v14 = vld [vmem:[%s480_s0 + $0x28] sm:$0xff] }
   0x6   :  { %147 = vmatpush.bf16.msra.mxu0 %v309_v1  ;;  %361 = vmatpush.bf16.msra.mxu1 %v309_v1  ;;  %v302_v15 = vld [vmem:[%s480_s0 + $0x38] sm:$0xff]  ;;  %v382_v18 = vld [vmem:[%s479_s2] ss:$0 sm:$0xff] }
   0x7   :  { %362 = vmatpush.bf16.msra.mxu2 %v309_v1  ;;  %363 = vmatpush.bf16.msra.mxu3 %v309_v1 }
   0xa   :  { %148 = vmatpush.bf16.msra.mxu0 %v308_v2  ;;  %364 = vmatpush.bf16.msra.mxu1 %v308_v2 }
   0xb   :  { %365 = vmatpush.bf16.msra.mxu2 %v308_v2  ;;  %366 = vmatpush.bf16.msra.mxu3 %v308_v2 }
   0xe   :  { %149 = vmatpush.bf16.msra.mxu0 %v307_v3  ;;  %367 = vmatpush.bf16.msra.mxu1 %v307_v3 }
   0xf   :  { %368 = vmatpush.bf16.msra.mxu2 %v307_v3  ;;  %369 = vmatpush.bf16.msra.mxu3 %v307_v3 }
  0x12   :  { %150 = vmatpush.bf16.msra.mxu0 %v306_v4  ;;  %370 = vmatpush.bf16.msra.mxu1 %v306_v4 }
  0x13   :  { %371 = vmatpush.bf16.msra.mxu2 %v306_v4  ;;  %372 = vmatpush.bf16.msra.mxu3 %v306_v4 }
  0x16   :  { %151 = vmatpush.bf16.msra.mxu0 %v305_v5  ;;  %373 = vmatpush.bf16.msra.mxu1 %v305_v5 }
  0x17   :  { %374 = vmatpush.bf16.msra.mxu2 %v305_v5  ;;  %375 = vmatpush.bf16.msra.mxu3 %v305_v5 }
  0x1a   :  { %152 = vmatpush.bf16.msra.mxu0 %v304_v6  ;;  %376 = vmatpush.bf16.msra.mxu1 %v304_v6 }
  0x1b   :  { %377 = vmatpush.bf16.msra.mxu2 %v304_v6  ;;  %378 = vmatpush.bf16.msra.mxu3 %v304_v6 }
  0x1e   :  { %153 = vmatpush.bf16.msra.mxu0 %v303_v7  ;;  %379 = vmatpush.bf16.msra.mxu1 %v303_v7 }
  0x1f   :  { %380 = vmatpush.bf16.msra.mxu2 %v303_v7  ;;  %381 = vmatpush.bf16.msra.mxu3 %v303_v7 }
  0x21   :  { %154 = vmatmul.bf16.vlgmr.msra.gmra.mxu0 %v295_v8  ;;  %164 = vmatmul.bf16.vlgmr.msra.gmra.mxu1 %v297_v9 }
  0x22   :  { %174 = vmatmul.bf16.vlgmr.msra.gmra.mxu2 %v299_v10  ;;  %184 = vmatmul.bf16.vlgmr.msra.gmra.mxu3 %v301_v11 }
  0x31   :  { %159 = vmatmul.bf16.gmra.mxu0 %v296_v12  ;;  %169 = vmatmul.bf16.gmra.mxu1 %v298_v13 }
  0x32   :  { %179 = vmatmul.bf16.gmra.mxu2 %v300_v14  ;;  %189 = vmatmul.bf16.gmra.mxu3 %v302_v15 }
  0x9e   :  { %v155_v16 = vpop.f32.mrf.mxu0  ;;  %v165_v17 = vpop.f32.mrf.mxu1 }
  0x9f   :  { %v156_v23 = vadd.f32 %v382_v18, %v155_v16  ;;  %v166_v24 = vadd.f32 %v382_v18, %v165_v17 }
  0xa5   :  { %v175_v19 = vpop.f32.mrf.mxu2  ;;  %v185_v20 = vpop.f32.mrf.mxu3 }
  0xa6   :  { %v157_v21 = vpop.f32.mrf.mxu0  ;;  %v167_v22 = vpop.f32.mrf.mxu1  ;;  %v176_v31 = vadd.f32 %v382_v18, %v175_v19  ;;  %v186_v32 = vadd.f32 %v382_v18, %v185_v20 }
  0xa7   :  { %v158_v25 = vadd.f32 %v382_v18, %v157_v21  ;;  %v168_v26 = vadd.f32 %v382_v18, %v167_v22 }
  0xa9   :  { %v314_v27 = vpack.c.bf16 %v158_v25, %v156_v23  ;;  %v324_v28 = vpack.c.bf16 %v168_v26, %v166_v24 }
  0xab   :  { %315 = vst [vmem:[%s481_s3] sm:$0xff] %v314_v27  }
  0xac   :  { %352 = vst [vmem:[%s481_s3 + $0x10] sm:$0xff] %v324_v28  }
  0xad   :  { %v177_v29 = vpop.f32.mrf.mxu2  ;;  %v187_v30 = vpop.f32.mrf.mxu3 }
  0xae   :  { %v178_v33 = vadd.f32 %v382_v18, %v177_v29  ;;  %v188_v34 = vadd.f32 %v382_v18, %v187_v30  ;;  %v160_v35 = vpop.f32.mrf.mxu0  ;;  %v170_v36 = vpop.f32.mrf.mxu1 }
  0xaf   :  { %v161_v43 = vadd.f32 %v382_v18, %v160_v35  ;;  %v171_v44 = vadd.f32 %v382_v18, %v170_v36 }
  0xb0   :  { %v334_v37 = vpack.c.bf16 %v178_v33, %v176_v31  ;;  %v344_v38 = vpack.c.bf16 %v188_v34, %v186_v32 }
  0xb2   :  { %354 = vst [vmem:[%s481_s3 + $0x20] sm:$0xff] %v334_v37  }
  0xb3   :  { %356 = vst [vmem:[%s481_s3 + $0x30] sm:$0xff] %v344_v38  }
  0xb5   :  { %v180_v39 = vpop.f32.mrf.mxu2  ;;  %v190_v40 = vpop.f32.mrf.mxu3 }
  0xb6   :  { %v162_v41 = vpop.f32.mrf.mxu0  ;;  %v172_v42 = vpop.f32.mrf.mxu1  ;;  %v181_v51 = vadd.f32 %v382_v18, %v180_v39  ;;  %v191_v52 = vadd.f32 %v382_v18, %v190_v40 }
  0xb7   :  { %v163_v45 = vadd.f32 %v382_v18, %v162_v41  ;;  %v173_v46 = vadd.f32 %v382_v18, %v172_v42 }
  0xb9   :  { %v319_v47 = vpack.c.bf16 %v163_v45, %v161_v43  ;;  %v329_v48 = vpack.c.bf16 %v173_v46, %v171_v44 }
  0xbb   :  { %351 = vst [vmem:[%s481_s3 + $0x8] sm:$0xff] %v319_v47  }
  0xbc   :  { %353 = vst [vmem:[%s481_s3 + $0x18] sm:$0xff] %v329_v48  }
  0xbd   :  { %v182_v49 = vpop.f32.mrf.mxu2  ;;  %v192_v50 = vpop.f32.mrf.mxu3 }
  0xbe   :  { %v183_v53 = vadd.f32 %v382_v18, %v182_v49  ;;  %v193_v54 = vadd.f32 %v382_v18, %v192_v50 }
  0xc0   :  { %v339_v55 = vpack.c.bf16 %v183_v53, %v181_v51  ;;  %v349_v56 = vpack.c.bf16 %v193_v54, %v191_v52 }
  0xc2   :  { %355 = vst [vmem:[%s481_s3 + $0x28] sm:$0xff] %v339_v55  }
  0xc3   :  { %357 = vst [vmem:[%s481_s3 + $0x38] sm:$0xff] %v349_v56  }

// kernel: down_block_forward.7
= control target key start
LH: loop header
LB: loop body
LE: loop exit
PB: predicated region body
PF: predicated region fallthrough
CT: control target
= control target key end

     0   :  { %s3227_s1 = inlined_call_operand.vmem [shape: bf16[1152,128], index: 1, kind: input, shape index: {}]   ;;  %s3228_s2 = inlined_call_operand.vmem [shape: f32[1,128], index: 2, kind: input, shape index: {}]   ;;  %s3229_s0 = inlined_call_operand.vmem [shape: bf16[128,1152], index: 0, kind: input, shape index: {}]   ;;  %s3230_s3 = inlined_call_operand.vmem [shape: bf16[128,128], index: 3, kind: input, shape index: {}]   ;;  %s3231_s4 = inlined_call_operand.vmem [shape: bf16[128,128], index: 4, kind: output, shape index: {}]  }
   0x1   :  { %v2225_v0 = vld [vmem:[%s3227_s1 + $0x38] sm:$0xff]  ;;  %v2224_v1 = vld [vmem:[%s3227_s1 + $0x30] sm:$0xff]  ;;  %v2223_v2 = vld [vmem:[%s3227_s1 + $0x28] sm:$0xff] }
   0x2   :  { %2376 = vmatpush.bf16.msra.mxu1 %v2225_v0  ;;  %2377 = vmatpush.bf16.msra.mxu2 %v2225_v0  ;;  %v2222_v3 = vld [vmem:[%s3227_s1 + $0x20] sm:$0xff]  ;;  %v2221_v4 = vld [vmem:[%s3227_s1 + $0x18] sm:$0xff]  ;;  %v2220_v5 = vld [vmem:[%s3227_s1 + $0x10] sm:$0xff] }
   0x3   :  { %2378 = vmatpush.bf16.msra.mxu3 %v2225_v0  ;;  %1045 = vmatpush.bf16.msra.mxu0 %v2225_v0  ;;  %v2219_v6 = vld [vmem:[%s3227_s1 + $0x8] sm:$0xff]  ;;  %v2218_v7 = vld [vmem:[%s3227_s1] sm:$0xff]  ;;  %v1644_v8 = vld [vmem:[%s3229_s0 + $0x90] sm:$0xf] }
   0x4   :  { %v2168_v9 = vld [vmem:[%s3229_s0 + $0xb0] sm:$0xf0]  ;;  %v1716_v10 = vld [vmem:[%s3229_s0 + $0x120] sm:$0xf]  ;;  %v2186_v11 = vld [vmem:[%s3229_s0 + $0x140] sm:$0xf0] }
   0x5   :  { %v1788_v12 = vld [vmem:[%s3229_s0 + $0x1b0] sm:$0xf]  ;;  %v2204_v13 = vld [vmem:[%s3229_s0 + $0x1d0] sm:$0xf0]  ;;  %v1572_v14 = vld [vmem:[%s3229_s0] sm:$0xf]  ;;  %v1645_v18 = vor.u32 %v2168_v9, %v1644_v8  ;;  %v1717_v19 = vor.u32 %v2186_v11, %v1716_v10 }
   0x6   :  { %2379 = vmatpush.bf16.msra.mxu1 %v2224_v1  ;;  %2380 = vmatpush.bf16.msra.mxu2 %v2224_v1  ;;  %v2150_v15 = vld [vmem:[%s3229_s0 + $0x20] sm:$0xf0]  ;;  %v2241_v16 = vld [vmem:[%s3227_s1 + $0xb8] sm:$0xff]  ;;  %v1789_v20 = vor.u32 %v2204_v13, %v1788_v12  ;;  %v2240_v24 = vld [vmem:[%s3227_s1 + $0xb0] sm:$0xff] }
   0x7   :  { %2381 = vmatpush.bf16.msra.mxu3 %v2224_v1  ;;  %1046 = vmatpush.bf16.msra.mxu0 %v2224_v1  ;;  %v2233_v17 = vld [vmem:[%s3227_s1 + $0x78] sm:$0xff]  ;;  %v1573_v21 = vor.u32 %v2150_v15, %v1572_v14  ;;  %v2232_v25 = vld [vmem:[%s3227_s1 + $0x70] sm:$0xff]  ;;  %v2239_v28 = vld [vmem:[%s3227_s1 + $0xa8] sm:$0xff] }
   0x8   :  { %v2249_v22 = vld [vmem:[%s3227_s1 + $0xf8] sm:$0xff]  ;;  %v2248_v26 = vld [vmem:[%s3227_s1 + $0xf0] sm:$0xff]  ;;  %v2231_v29 = vld [vmem:[%s3227_s1 + $0x68] sm:$0xff] }
   0x9   :  { %v2257_v23 = vld [vmem:[%s3227_s1 + $0x138] sm:$0xff]  ;;  %v2256_v27 = vld [vmem:[%s3227_s1 + $0x130] sm:$0xff]  ;;  %v2247_v30 = vld [vmem:[%s3227_s1 + $0xe8] sm:$0xff] }
   0xa   :  { %2382 = vmatpush.bf16.msra.mxu1 %v2223_v2  ;;  %2383 = vmatpush.bf16.msra.mxu2 %v2223_v2  ;;  %v2255_v31 = vld [vmem:[%s3227_s1 + $0x128] sm:$0xff]  ;;  %v2238_v32 = vld [vmem:[%s3227_s1 + $0xa0] sm:$0xff]  ;;  %v1680_v36 = vld [vmem:[%s3229_s0 + $0xd8] sm:$0xf] }
   0xb   :  { %2384 = vmatpush.bf16.msra.mxu3 %v2223_v2  ;;  %1047 = vmatpush.bf16.msra.mxu0 %v2223_v2  ;;  %v2230_v33 = vld [vmem:[%s3227_s1 + $0x60] sm:$0xff]  ;;  %v2177_v37 = vld [vmem:[%s3229_s0 + $0xf8] sm:$0xf0]  ;;  %v1752_v38 = vld [vmem:[%s3229_s0 + $0x168] sm:$0xf] }
   0xc   :  { %v2246_v34 = vld [vmem:[%s3227_s1 + $0xe0] sm:$0xff]  ;;  %v2195_v39 = vld [vmem:[%s3229_s0 + $0x188] sm:$0xf0]  ;;  %v1824_v40 = vld [vmem:[%s3229_s0 + $0x1f8] sm:$0xf]  ;;  %v1681_v46 = vor.u32 %v2177_v37, %v1680_v36 }
   0xd   :  { %v2254_v35 = vld [vmem:[%s3227_s1 + $0x120] sm:$0xff]  ;;  %v2213_v41 = vld [vmem:[%s3229_s0 + $0x218] sm:$0xf0]  ;;  %v1608_v42 = vld [vmem:[%s3229_s0 + $0x48] sm:$0xf]  ;;  %v1753_v47 = vor.u32 %v2195_v39, %v1752_v38 }
   0xe   :  { %2385 = vmatpush.bf16.msra.mxu1 %v2222_v3  ;;  %2386 = vmatpush.bf16.msra.mxu2 %v2222_v3  ;;  %v2159_v43 = vld [vmem:[%s3229_s0 + $0x68] sm:$0xf0]  ;;  %v2237_v44 = vld [vmem:[%s3227_s1 + $0x98] sm:$0xff]  ;;  %v1825_v48 = vor.u32 %v2213_v41, %v1824_v40  ;;  %v2236_v52 = vld [vmem:[%s3227_s1 + $0x90] sm:$0xff] }
   0xf   :  { %2387 = vmatpush.bf16.msra.mxu3 %v2222_v3  ;;  %1048 = vmatpush.bf16.msra.mxu0 %v2222_v3  ;;  %v2229_v45 = vld [vmem:[%s3227_s1 + $0x58] sm:$0xff]  ;;  %v1609_v49 = vor.u32 %v2159_v43, %v1608_v42  ;;  %v2228_v53 = vld [vmem:[%s3227_s1 + $0x50] sm:$0xff]  ;;  %v2235_v56 = vld [vmem:[%s3227_s1 + $0x88] sm:$0xff] }
  0x10   :  { %v2245_v50 = vld [vmem:[%s3227_s1 + $0xd8] sm:$0xff]  ;;  %v2244_v54 = vld [vmem:[%s3227_s1 + $0xd0] sm:$0xff]  ;;  %v2227_v57 = vld [vmem:[%s3227_s1 + $0x48] sm:$0xff] }
  0x11   :  { %v2253_v51 = vld [vmem:[%s3227_s1 + $0x118] sm:$0xff]  ;;  %v2252_v55 = vld [vmem:[%s3227_s1 + $0x110] sm:$0xff]  ;;  %v2243_v58 = vld [vmem:[%s3227_s1 + $0xc8] sm:$0xff] }
  0x12   :  { %2388 = vmatpush.bf16.msra.mxu1 %v2221_v4  ;;  %2389 = vmatpush.bf16.msra.mxu2 %v2221_v4  ;;  %v2251_v59 = vld [vmem:[%s3227_s1 + $0x108] sm:$0xff]  ;;  %v2234_v60 = vld [vmem:[%s3227_s1 + $0x80] sm:$0xff]  ;;  %v2273_v2 = vld [vmem:[%s3227_s1 + $0x1b8] sm:$0xff] }
  0x13   :  { %2390 = vmatpush.bf16.msra.mxu3 %v2221_v4  ;;  %1049 = vmatpush.bf16.msra.mxu0 %v2221_v4  ;;  %v2226_v61 = vld [vmem:[%s3227_s1 + $0x40] sm:$0xff]  ;;  %v1574_v1 = vld [vmem:[%s3229_s0 + $0x24] sm:$0xf0]  ;;  %v2265_v3 = vld [vmem:[%s3227_s1 + $0x178] sm:$0xff] }
  0x14   :  { %v2146_v62 = vld [vmem:[%s3229_s0 + $0x4] sm:$0xf]  ;;  %v1580_v4 = vld [vmem:[%s3229_s0 + $0x8] sm:$0xf]  ;;  %v1588_v8 = vld [vmem:[%s3229_s0 + $0x10] sm:$0xf] }
  0x15   :  { %v2242_v63 = vld [vmem:[%s3227_s1 + $0xc0] sm:$0xff]  ;;  %v2152_v9 = vld [vmem:[%s3229_s0 + $0x30] sm:$0xf0]  ;;  %v2281_v10 = vld [vmem:[%s3227_s1 + $0x1f8] sm:$0xff]  ;;  %v1577_v12 = vor.u32 %v2146_v62, %v1574_v1 }
  0x16   :  { %2391 = vmatpush.bf16.msra.mxu1 %v2220_v5  ;;  %2392 = vmatpush.bf16.msra.mxu2 %v2220_v5  ;;  %v2250_v0 = vld [vmem:[%s3227_s1 + $0x100] sm:$0xff]  ;;  %v2289_v11 = vld [vmem:[%s3227_s1 + $0x238] sm:$0xff]  ;;  %v1589_v15 = vor.u32 %v2152_v9, %v1588_v8  ;;  %v2164_v40 = vld [vmem:[%s3229_s0 + $0x94] sm:$0xf] }
  0x17   :  { %2393 = vmatpush.bf16.msra.mxu3 %v2220_v5  ;;  %1050 = vmatpush.bf16.msra.mxu0 %v2220_v5  ;;  %v2151_v5 = vld [vmem:[%s3229_s0 + $0x28] sm:$0xf0]  ;;  %v2270_v36 = vld [vmem:[%s3227_s1 + $0x1a0] sm:$0xff]  ;;  %v1646_v41 = vld [vmem:[%s3229_s0 + $0xb4] sm:$0xf0] }
  0x18   :  { %v1581_v13 = vor.u32 %v2151_v5, %v1580_v4  ;;  %v2278_v37 = vld [vmem:[%s3227_s1 + $0x1e0] sm:$0xff]  ;;  %v1652_v42 = vld [vmem:[%s3229_s0 + $0x98] sm:$0xf]  ;;  %v2169_v43 = vld [vmem:[%s3229_s0 + $0xb8] sm:$0xf0] }
  0x19   :  { %v2262_v38 = vld [vmem:[%s3227_s1 + $0x160] sm:$0xff]  ;;  %v1696_v62 = vld [vmem:[%s3229_s0 + $0xe8] sm:$0xf]  ;;  %v2268_v4 = vld [vmem:[%s3227_s1 + $0x190] sm:$0xff] }
  0x1a   :  { %2394 = vmatpush.bf16.msra.mxu1 %v2219_v6  ;;  %2395 = vmatpush.bf16.msra.mxu2 %v2219_v6  ;;  %v2286_v39 = vld [vmem:[%s3227_s1 + $0x220] sm:$0xff]  ;;  %v2276_v5 = vld [vmem:[%s3227_s1 + $0x1d0] sm:$0xff]  ;;  %v1718_v9 = vld [vmem:[%s3229_s0 + $0x144] sm:$0xf0] }
  0x1b   :  { %2396 = vmatpush.bf16.msra.mxu3 %v2219_v6  ;;  %1051 = vmatpush.bf16.msra.mxu0 %v2219_v6  ;;  %v2147_v6 = vld [vmem:[%s3229_s0 + $0xc] sm:$0xf]  ;;  %v2182_v8 = vld [vmem:[%s3229_s0 + $0x124] sm:$0xf] }
  0x1e   :  { %2397 = vmatpush.bf16.msra.mxu1 %v2218_v7  ;;  %2398 = vmatpush.bf16.msra.mxu2 %v2218_v7 }
  0x1f   :  { %2399 = vmatpush.bf16.msra.mxu3 %v2218_v7  ;;  %1052 = vmatpush.bf16.msra.mxu0 %v2218_v7  ;;  %v1582_v7 = vld [vmem:[%s3229_s0 + $0x2c] sm:$0xf0] }
  0x20   :  { %v1585_v14 = vor.u32 %v2147_v6, %v1582_v7  ;;  %v2260_v6 = vld [vmem:[%s3227_s1 + $0x150] sm:$0xff] }
  0x21   :  { %1063 = vmatmul.bf16.vlgmr.msra.gmra.mxu1 %v1645_v18  ;;  %1073 = vmatmul.bf16.vlgmr.msra.gmra.mxu2 %v1717_v19  ;;  %v2280_v18 = vld [vmem:[%s3227_s1 + $0x1f0] sm:$0xff] }
  0x22   :  { %1143 = vmatpush.bf16.msrb.mxu2 %v2241_v16  ;;  %1094 = vmatpush.bf16.msrb.mxu1 %v2233_v17  ;;  %v2272_v16 = vld [vmem:[%s3227_s1 + $0x1b0] sm:$0xff] }
  0x23   :  { %1083 = vmatmul.bf16.vlgmr.msra.gmra.mxu3 %v1789_v20  ;;  %1053 = vmatmul.bf16.vlgmr.msra.gmra.mxu0 %v1573_v21  ;;  %v2264_v17 = vld [vmem:[%s3227_s1 + $0x170] sm:$0xff]  ;;  %v2271_v20 = vld [vmem:[%s3227_s1 + $0x1a8] sm:$0xff] }
  0x24   :  { %1192 = vmatpush.bf16.msrb.mxu3 %v2249_v22  ;;  %1241 = vmatpush.bf16.msrb.mxu0 %v2257_v23  ;;  %v2288_v19 = vld [vmem:[%s3227_s1 + $0x230] sm:$0xff]  ;;  %v2263_v21 = vld [vmem:[%s3227_s1 + $0x168] sm:$0xff] }
  0x25   :  { %v2279_v22 = vld [vmem:[%s3227_s1 + $0x1e8] sm:$0xff]  ;;  %v2284_v7 = vld [vmem:[%s3227_s1 + $0x210] sm:$0xff] }
  0x26   :  { %1144 = vmatpush.bf16.msrb.mxu2 %v2240_v24  ;;  %1095 = vmatpush.bf16.msrb.mxu1 %v2232_v25  ;;  %v2287_v23 = vld [vmem:[%s3227_s1 + $0x228] sm:$0xff]  ;;  %v1610_v25 = vld [vmem:[%s3229_s0 + $0x6c] sm:$0xf0] }
  0x27   :  { %v2155_v24 = vld [vmem:[%s3229_s0 + $0x4c] sm:$0xf] }
  0x28   :  { %1193 = vmatpush.bf16.msrb.mxu3 %v2248_v26  ;;  %1242 = vmatpush.bf16.msrb.mxu0 %v2256_v27  ;;  %v1616_v26 = vld [vmem:[%s3229_s0 + $0x50] sm:$0xf]  ;;  %v2160_v27 = vld [vmem:[%s3229_s0 + $0x70] sm:$0xf0] }
  0x2a   :  { %1145 = vmatpush.bf16.msrb.mxu2 %v2239_v28  ;;  %1096 = vmatpush.bf16.msrb.mxu1 %v2231_v29  ;;  %v2156_v28 = vld [vmem:[%s3229_s0 + $0x54] sm:$0xf]  ;;  %v1618_v29 = vld [vmem:[%s3229_s0 + $0x74] sm:$0xf0] }
  0x2c   :  { %1194 = vmatpush.bf16.msrb.mxu3 %v2247_v30  ;;  %1243 = vmatpush.bf16.msrb.mxu0 %v2255_v31  ;;  %v1624_v30 = vld [vmem:[%s3229_s0 + $0x58] sm:$0xf]  ;;  %v2161_v31 = vld [vmem:[%s3229_s0 + $0x78] sm:$0xf0] }
  0x2e   :  { %1146 = vmatpush.bf16.msrb.mxu2 %v2238_v32  ;;  %1097 = vmatpush.bf16.msrb.mxu1 %v2230_v33  ;;  %v1613_v32 = vor.u32 %v2155_v24, %v1610_v25  ;;  %v1617_v33 = vor.u32 %v2160_v27, %v1616_v26  ;;  %v2191_v24 = vld [vmem:[%s3229_s0 + $0x16c] sm:$0xf]  ;;  %v1754_v25 = vld [vmem:[%s3229_s0 + $0x18c] sm:$0xf0]  ;;  %v2196_v27 = vld [vmem:[%s3229_s0 + $0x190] sm:$0xf0] }
  0x2f   :  { %v1760_v26 = vld [vmem:[%s3229_s0 + $0x170] sm:$0xf] }
  0x30   :  { %1195 = vmatpush.bf16.msrb.mxu3 %v2246_v34  ;;  %1244 = vmatpush.bf16.msrb.mxu0 %v2254_v35  ;;  %v1621_v34 = vor.u32 %v2156_v28, %v1618_v29  ;;  %v1625_v35 = vor.u32 %v2161_v31, %v1624_v30  ;;  %v2192_v28 = vld [vmem:[%s3229_s0 + $0x174] sm:$0xf]  ;;  %v1762_v29 = vld [vmem:[%s3229_s0 + $0x194] sm:$0xf0]  ;;  %v2197_v31 = vld [vmem:[%s3229_s0 + $0x198] sm:$0xf0] }
  0x31   :  { %1068 = vmatmul.bf16.gmra.mxu1 %v1681_v46  ;;  %1078 = vmatmul.bf16.gmra.mxu2 %v1753_v47  ;;  %v1660_v46 = vld [vmem:[%s3229_s0 + $0xa0] sm:$0xf]  ;;  %v2170_v47 = vld [vmem:[%s3229_s0 + $0xc0] sm:$0xf0]  ;;  %v1768_v30 = vld [vmem:[%s3229_s0 + $0x178] sm:$0xf] }
  0x32   :  { %1147 = vmatpush.bf16.msrb.mxu2 %v2237_v44  ;;  %1098 = vmatpush.bf16.msrb.mxu1 %v2229_v45  ;;  %v2165_v44 = vld [vmem:[%s3229_s0 + $0x9c] sm:$0xf]  ;;  %v1654_v45 = vld [vmem:[%s3229_s0 + $0xbc] sm:$0xf0] }
  0x33   :  { %1088 = vmatmul.bf16.gmra.mxu3 %v1825_v48  ;;  %1058 = vmatmul.bf16.gmra.mxu0 %v1609_v49  ;;  %v1649_v48 = vor.u32 %v2164_v40, %v1646_v41  ;;  %v1653_v49 = vor.u32 %v2169_v43, %v1652_v42  ;;  %v2200_v40 = vld [vmem:[%s3229_s0 + $0x1b4] sm:$0xf]  ;;  %v1790_v41 = vld [vmem:[%s3229_s0 + $0x1d4] sm:$0xf0]  ;;  %v2205_v43 = vld [vmem:[%s3229_s0 + $0x1d8] sm:$0xf0] }
  0x34   :  { %1196 = vmatpush.bf16.msrb.mxu3 %v2245_v50  ;;  %1245 = vmatpush.bf16.msrb.mxu0 %v2253_v51  ;;  %v1657_v50 = vor.u32 %v2165_v44, %v1654_v45  ;;  %v1661_v51 = vor.u32 %v2170_v47, %v1660_v46  ;;  %v1796_v42 = vld [vmem:[%s3229_s0 + $0x1b8] sm:$0xf]  ;;  %v2201_v44 = vld [vmem:[%s3229_s0 + $0x1bc] sm:$0xf]  ;;  %v1798_v45 = vld [vmem:[%s3229_s0 + $0x1dc] sm:$0xf0] }
  0x35   :  { %v1804_v46 = vld [vmem:[%s3229_s0 + $0x1c0] sm:$0xf]  ;;  %v2206_v47 = vld [vmem:[%s3229_s0 + $0x1e0] sm:$0xf0] }
  0x36   :  { %1148 = vmatpush.bf16.msrb.mxu2 %v2236_v52  ;;  %1099 = vmatpush.bf16.msrb.mxu1 %v2228_v53  ;;  %v2269_v52 = vld [vmem:[%s3227_s1 + $0x198] sm:$0xff] }
  0x37   :  { %v2277_v53 = vld [vmem:[%s3227_s1 + $0x1d8] sm:$0xff] }
  0x38   :  { %1197 = vmatpush.bf16.msrb.mxu3 %v2244_v54  ;;  %1246 = vmatpush.bf16.msrb.mxu0 %v2252_v55  ;;  %v2261_v54 = vld [vmem:[%s3227_s1 + $0x158] sm:$0xff] }
  0x39   :  { %v2285_v55 = vld [vmem:[%s3227_s1 + $0x218] sm:$0xff] }
  0x3a   :  { %1149 = vmatpush.bf16.msrb.mxu2 %v2235_v56  ;;  %1100 = vmatpush.bf16.msrb.mxu1 %v2227_v57  ;;  %v2173_v56 = vld [vmem:[%s3229_s0 + $0xdc] sm:$0xf]  ;;  %v1682_v57 = vld [vmem:[%s3229_s0 + $0xfc] sm:$0xf0] }
  0x3c   :  { %1198 = vmatpush.bf16.msrb.mxu3 %v2243_v58  ;;  %1247 = vmatpush.bf16.msrb.mxu0 %v2251_v59  ;;  %v1688_v58 = vld [vmem:[%s3229_s0 + $0xe0] sm:$0xf]  ;;  %v2178_v59 = vld [vmem:[%s3229_s0 + $0x100] sm:$0xf0] }
  0x3d   :  { %v1689_v1 = vor.u32 %v2178_v59, %v1688_v58 }
  0x3e   :  { %1150 = vmatpush.bf16.msrb.mxu2 %v2234_v60  ;;  %1101 = vmatpush.bf16.msrb.mxu1 %v2226_v61  ;;  %v2174_v60 = vld [vmem:[%s3229_s0 + $0xe4] sm:$0xf]  ;;  %v1690_v61 = vld [vmem:[%s3229_s0 + $0x104] sm:$0xf0] }
  0x40   :  { %1199 = vmatpush.bf16.msrb.mxu3 %v2242_v63  ;;  %1248 = vmatpush.bf16.msrb.mxu0 %v2250_v0  ;;  %v2179_v63 = vld [vmem:[%s3229_s0 + $0x108] sm:$0xf0]  ;;  %v1685_v0 = vor.u32 %v2173_v56, %v1682_v57 }
  0x41   :  { %1102 = vmatmul.bf16.vlgmr.msrb.gmra.mxu1 %v1577_v12  ;;  %1151 = vmatmul.bf16.vlgmr.msrb.gmra.mxu2 %v1581_v13  ;;  %v2183_v12 = vld [vmem:[%s3229_s0 + $0x12c] sm:$0xf]  ;;  %v1726_v13 = vld [vmem:[%s3229_s0 + $0x14c] sm:$0xf0] }
  0x42   :  { %1339 = vmatpush.bf16.msra.mxu2 %v2273_v2  ;;  %1290 = vmatpush.bf16.msra.mxu1 %v2265_v3  ;;  %v1693_v2 = vor.u32 %v2174_v60, %v1690_v61  ;;  %v1697_v3 = vor.u32 %v2179_v63, %v1696_v62  ;;  %v2209_v61 = vld [vmem:[%s3229_s0 + $0x1fc] sm:$0xf]  ;;  %v1826_v62 = vld [vmem:[%s3229_s0 + $0x21c] sm:$0xf0] }
  0x43   :  { %1200 = vmatmul.bf16.vlgmr.msrb.gmra.mxu3 %v1585_v14  ;;  %1249 = vmatmul.bf16.vlgmr.msrb.gmra.mxu0 %v1589_v15  ;;  %v1732_v14 = vld [vmem:[%s3229_s0 + $0x130] sm:$0xf]  ;;  %v2188_v15 = vld [vmem:[%s3229_s0 + $0x150] sm:$0xf0]  ;;  %v1832_v63 = vld [vmem:[%s3229_s0 + $0x200] sm:$0xf] }
  0x44   :  { %1388 = vmatpush.bf16.msra.mxu3 %v2281_v10  ;;  %1437 = vmatpush.bf16.msra.mxu0 %v2289_v11  ;;  %v1724_v10 = vld [vmem:[%s3229_s0 + $0x128] sm:$0xf]  ;;  %v2187_v11 = vld [vmem:[%s3229_s0 + $0x148] sm:$0xf0] }
  0x46   :  { %1340 = vmatpush.bf16.msra.mxu2 %v2272_v16  ;;  %1291 = vmatpush.bf16.msra.mxu1 %v2264_v17  ;;  %v1721_v16 = vor.u32 %v2182_v8, %v1718_v9  ;;  %v1725_v17 = vor.u32 %v2187_v11, %v1724_v10  ;;  %v1829_v8 = vor.u32 %v2209_v61, %v1826_v62  ;;  %v1640_v61 = vld [vmem:[%s3229_s0 + $0x68] sm:$0xf]  ;;  %v2163_v62 = vld [vmem:[%s3229_s0 + $0x88] sm:$0xf0] }
  0x48   :  { %1389 = vmatpush.bf16.msra.mxu3 %v2280_v18  ;;  %1438 = vmatpush.bf16.msra.mxu0 %v2288_v19  ;;  %v1729_v18 = vor.u32 %v2183_v12, %v1726_v13  ;;  %v1733_v19 = vor.u32 %v2188_v15, %v1732_v14 }
  0x4a   :  { %1341 = vmatpush.bf16.msra.mxu2 %v2271_v20  ;;  %1292 = vmatpush.bf16.msra.mxu1 %v2263_v21  ;;  %v2267_v20 = vld [vmem:[%s3227_s1 + $0x188] sm:$0xff] }
  0x4b   :  { %v2275_v21 = vld [vmem:[%s3227_s1 + $0x1c8] sm:$0xff] }
  0x4c   :  { %1390 = vmatpush.bf16.msra.mxu3 %v2279_v22  ;;  %1439 = vmatpush.bf16.msra.mxu0 %v2287_v23  ;;  %v2259_v22 = vld [vmem:[%s3227_s1 + $0x148] sm:$0xff] }
  0x4d   :  { %v2283_v23 = vld [vmem:[%s3227_s1 + $0x208] sm:$0xff] }
  0x4e   :  { %1342 = vmatpush.bf16.msra.mxu2 %v2270_v36  ;;  %1293 = vmatpush.bf16.msra.mxu1 %v2262_v38  ;;  %v2266_v36 = vld [vmem:[%s3227_s1 + $0x180] sm:$0xff] }
  0x4f   :  { %v2258_v38 = vld [vmem:[%s3227_s1 + $0x140] sm:$0xff] }
  0x50   :  { %1391 = vmatpush.bf16.msra.mxu3 %v2278_v37  ;;  %1440 = vmatpush.bf16.msra.mxu0 %v2286_v39  ;;  %v2274_v37 = vld [vmem:[%s3227_s1 + $0x1c0] sm:$0xff] }
  0x51   :  { %1107 = vmatmul.bf16.gmra.mxu1 %v1613_v32  ;;  %1156 = vmatmul.bf16.gmra.mxu2 %v1617_v33  ;;  %v1757_v32 = vor.u32 %v2191_v24, %v1754_v25  ;;  %v1761_v33 = vor.u32 %v2196_v27, %v1760_v26  ;;  %v2282_v39 = vld [vmem:[%s3227_s1 + $0x200] sm:$0xff]  ;;  %v2153_v24 = vld [vmem:[%s3229_s0 + $0x38] sm:$0xf0] }
  0x52   :  { %1343 = vmatpush.bf16.msra.mxu2 %v2269_v52  ;;  %1294 = vmatpush.bf16.msra.mxu1 %v2261_v54  ;;  %v1805_v52 = vor.u32 %v2206_v47, %v1804_v46  ;;  %v2863_v54 = vld [vmem:[%s3228_s2] ss:$0 sm:$0xff]  ;;  %v2149_v25 = vld [vmem:[%s3229_s0 + $0x1c] sm:$0xf] }
  0x53   :  { %1205 = vmatmul.bf16.gmra.mxu3 %v1621_v34  ;;  %1254 = vmatmul.bf16.gmra.mxu0 %v1625_v35  ;;  %v1765_v34 = vor.u32 %v2192_v28, %v1762_v29  ;;  %v1769_v35 = vor.u32 %v2197_v31, %v1768_v30  ;;  %v1598_v26 = vld [vmem:[%s3229_s0 + $0x3c] sm:$0xf0]  ;;  %v2154_v28 = vld [vmem:[%s3229_s0 + $0x40] sm:$0xf0] }
  0x54   :  { %1392 = vmatpush.bf16.msra.mxu3 %v2277_v53  ;;  %1441 = vmatpush.bf16.msra.mxu0 %v2285_v55  ;;  %v1604_v27 = vld [vmem:[%s3229_s0 + $0x20] sm:$0xf] }
  0x56   :  { %1344 = vmatpush.bf16.msra.mxu2 %v2268_v4  ;;  %1295 = vmatpush.bf16.msra.mxu1 %v2260_v6  ;;  %v2215_v4 = vld [vmem:[%s3229_s0 + $0x228] sm:$0xf0] }
  0x58   :  { %1393 = vmatpush.bf16.msra.mxu3 %v2276_v5  ;;  %1442 = vmatpush.bf16.msra.mxu0 %v2284_v7 }
  0x5a   :  { %1345 = vmatpush.bf16.msra.mxu2 %v2267_v20  ;;  %1296 = vmatpush.bf16.msra.mxu1 %v2259_v22  ;;  %v1590_v22 = vld [vmem:[%s3229_s0 + $0x34] sm:$0xf0] }
  0x5c   :  { %1394 = vmatpush.bf16.msra.mxu3 %v2275_v21  ;;  %1443 = vmatpush.bf16.msra.mxu0 %v2283_v23  ;;  %v2148_v21 = vld [vmem:[%s3229_s0 + $0x14] sm:$0xf]  ;;  %v1596_v23 = vld [vmem:[%s3229_s0 + $0x18] sm:$0xf] }
  0x5e   :  { %1346 = vmatpush.bf16.msra.mxu2 %v2266_v36  ;;  %1297 = vmatpush.bf16.msra.mxu1 %v2258_v38  ;;  %v1605_v38 = vor.u32 %v2154_v28, %v1604_v27  ;;  %v2166_v27 = vld [vmem:[%s3229_s0 + $0xa4] sm:$0xf]  ;;  %v1662_v28 = vld [vmem:[%s3229_s0 + $0xc4] sm:$0xf0] }
  0x60   :  { %1395 = vmatpush.bf16.msra.mxu3 %v2274_v37  ;;  %1444 = vmatpush.bf16.msra.mxu0 %v2282_v39  ;;  %v1601_v37 = vor.u32 %v2149_v25, %v1598_v26 }
  0x61   :  { %1112 = vmatmul.bf16.gmra.mxu1 %v1649_v48  ;;  %1161 = vmatmul.bf16.gmra.mxu2 %v1653_v49  ;;  %v1793_v48 = vor.u32 %v2200_v40, %v1790_v41  ;;  %v1797_v49 = vor.u32 %v2205_v43, %v1796_v42 }
  0x63   :  { %1210 = vmatmul.bf16.gmra.mxu3 %v1657_v50  ;;  %1259 = vmatmul.bf16.gmra.mxu0 %v1661_v51  ;;  %v1801_v51 = vor.u32 %v2201_v44, %v1798_v45 }
  0x71   :  { %1117 = vmatmul.bf16.gmra.mxu1 %v1685_v0  ;;  %1166 = vmatmul.bf16.gmra.mxu2 %v1689_v1  ;;  %v2214_v0 = vld [vmem:[%s3229_s0 + $0x220] sm:$0xf0] }
  0x72   :  { %v2210_v1 = vld [vmem:[%s3229_s0 + $0x204] sm:$0xf]  ;;  %v1833_v9 = vor.u32 %v2214_v0, %v1832_v63 }
  0x73   :  { %1215 = vmatmul.bf16.gmra.mxu3 %v1693_v2  ;;  %1264 = vmatmul.bf16.gmra.mxu0 %v1697_v3  ;;  %v1834_v2 = vld [vmem:[%s3229_s0 + $0x224] sm:$0xf0] }
  0x74   :  { %v1840_v3 = vld [vmem:[%s3229_s0 + $0x208] sm:$0xf]  ;;  %v1837_v12 = vor.u32 %v2210_v1, %v1834_v2 }
  0x75   :  { %v1841_v13 = vor.u32 %v2215_v4, %v1840_v3 }
  0x81   :  { %1122 = vmatmul.bf16.gmra.mxu1 %v1721_v16  ;;  %1171 = vmatmul.bf16.gmra.mxu2 %v1725_v17 }
  0x83   :  { %1220 = vmatmul.bf16.gmra.mxu3 %v1729_v18  ;;  %1269 = vmatmul.bf16.gmra.mxu0 %v1733_v19 }
  0x91   :  { %1127 = vmatmul.bf16.gmra.mxu1 %v1757_v32  ;;  %1176 = vmatmul.bf16.gmra.mxu2 %v1761_v33  ;;  %v1593_v33 = vor.u32 %v2148_v21, %v1590_v22 }
  0x93   :  { %1225 = vmatmul.bf16.gmra.mxu3 %v1765_v34  ;;  %1274 = vmatmul.bf16.gmra.mxu0 %v1769_v35  ;;  %v1597_v34 = vor.u32 %v2153_v24, %v1596_v23 }
  0x9e   :  { %v2858_v50 = vpop.f32.mrf.mxu1 }
  0xa0   :  { %v1054_v53 = vpop.f32.mrf.mxu0 }
  0xa1   :  { %1132 = vmatmul.bf16.gmra.mxu1 %v1793_v48  ;;  %1181 = vmatmul.bf16.gmra.mxu2 %v1797_v49  ;;  %v1055_v30 = vadd.f32 %v2863_v54, %v1054_v53  ;;  %v2157_v49 = vld [vmem:[%s3229_s0 + $0x5c] sm:$0xf]  ;;  %v1632_v53 = vld [vmem:[%s3229_s0 + $0x60] sm:$0xf] }
  0xa3   :  { %1230 = vmatmul.bf16.gmra.mxu3 %v1801_v51  ;;  %1279 = vmatmul.bf16.gmra.mxu0 %v1805_v52  ;;  %v1626_v51 = vld [vmem:[%s3229_s0 + $0x7c] sm:$0xf0] }
  0xa4   :  { %v1074_v55 = vpop.f32.mrf.mxu2  ;;  %v1629_v3 = vor.u32 %v2157_v49, %v1626_v51 }
  0xa5   :  { %v2866_v56 = vadd.f32 %v2863_v54, %v1074_v55  ;;  %v2162_v55 = vld [vmem:[%s3229_s0 + $0x80] sm:$0xf0] }
  0xa6   :  { %v1084_v57 = vpop.f32.mrf.mxu3  ;;  %v2871_v59 = vpop.f32.mrf.mxu1  ;;  %v1633_v4 = vor.u32 %v2162_v55, %v1632_v53 }
  0xa7   :  { %v2869_v58 = vadd.f32 %v2863_v54, %v1084_v57  ;;  %v2158_v57 = vld [vmem:[%s3229_s0 + $0x64] sm:$0xf] }
  0xa8   :  { %v1056_v60 = vpop.f32.mrf.mxu0 }
  0xa9   :  { %v1057_v42 = vadd.f32 %v2863_v54, %v1056_v60  ;;  %v1634_v60 = vld [vmem:[%s3229_s0 + $0x84] sm:$0xf0] }
  0xac   :  { %v1076_v5 = vpop.f32.mrf.mxu2 }
  0xad   :  { %v2898_v6 = vadd.f32 %v2863_v54, %v1076_v5 }
  0xae   :  { %v1086_v7 = vpop.f32.mrf.mxu3  ;;  %v2903_v11 = vpop.f32.mrf.mxu1 }
  0xaf   :  { %v2901_v10 = vadd.f32 %v2863_v54, %v1086_v7  ;;  %v1637_v7 = vor.u32 %v2158_v57, %v1634_v60 }
  0xb0   :  { %v1059_v14 = vpop.f32.mrf.mxu0 }
  0xb1   :  { %1137 = vmatmul.bf16.gmra.mxu1 %v1829_v8  ;;  %1186 = vmatmul.bf16.gmra.mxu2 %v1833_v9  ;;  %v1060_v0 = vadd.f32 %v2863_v54, %v1059_v14  ;;  %v1641_v8 = vor.u32 %v2163_v62, %v1640_v61 }
  0xb3   :  { %1235 = vmatmul.bf16.gmra.mxu3 %v1837_v12  ;;  %1284 = vmatmul.bf16.gmra.mxu0 %v1841_v13 }
  0xb4   :  { %v1079_v15 = vpop.f32.mrf.mxu2 }
  0xb5   :  { %v2906_v16 = vadd.f32 %v2863_v54, %v1079_v15 }
  0xb6   :  { %v1089_v17 = vpop.f32.mrf.mxu3  ;;  %v2911_v19 = vpop.f32.mrf.mxu1 }
  0xb7   :  { %v2909_v18 = vadd.f32 %v2863_v54, %v1089_v17 }
  0xb8   :  { %v1061_v20 = vpop.f32.mrf.mxu0 }
  0xb9   :  { %v1062_v21 = vadd.f32 %v2863_v54, %v1061_v20  ;;  %v1668_v20 = vld [vmem:[%s3229_s0 + $0xa8] sm:$0xf] }
  0xbc   :  { %v1081_v29 = vpop.f32.mrf.mxu2 }
  0xbd   :  { %v2939_v31 = vadd.f32 %v2863_v54, %v1081_v29 }
  0xbe   :  { %v1091_v32 = vpop.f32.mrf.mxu3  ;;  %v1103_v36 = vpop.f32.mrf.mxu1 }
  0xbf   :  { %v2942_v35 = vadd.f32 %v2863_v54, %v1091_v32  ;;  %v1104_v39 = vadd.f32 %v1103_v36, %v1055_v30  ;;  %v2171_v30 = vld [vmem:[%s3229_s0 + $0xc8] sm:$0xf0]  ;;  %v2172_v36 = vld [vmem:[%s3229_s0 + $0xd0] sm:$0xf0] }
  0xc0   :  { %v1250_v40 = vpop.f32.mrf.mxu0  ;;  %v2167_v32 = vld [vmem:[%s3229_s0 + $0xac] sm:$0xf] }
  0xc1   :  { %1298 = vmatmul.bf16.vlgmr.msra.gmra.mxu1 %v1593_v33  ;;  %1347 = vmatmul.bf16.vlgmr.msra.gmra.mxu2 %v1597_v34  ;;  %v1670_v33 = vld [vmem:[%s3229_s0 + $0xcc] sm:$0xf0] }
  0xc2   :  { %v1676_v34 = vld [vmem:[%s3229_s0 + $0xb0] sm:$0xf] }
  0xc3   :  { %1396 = vmatmul.bf16.vlgmr.msra.gmra.mxu3 %v1601_v37  ;;  %1445 = vmatmul.bf16.vlgmr.msra.gmra.mxu0 %v1605_v38  ;;  %v1065_v38 = vadd.f32 %v2863_v54, %v2858_v50  ;;  %v1067_v50 = vadd.f32 %v2863_v54, %v2871_v59  ;;  %v1704_v59 = vld [vmem:[%s3229_s0 + $0xf0] sm:$0xf] }
  0xc4   :  { %v1152_v41 = vpop.f32.mrf.mxu2 }
  0xc5   :  { %v1153_v43 = vadd.f32 %v1152_v41, %v1104_v39  ;;  %v1665_v41 = vor.u32 %v2166_v27, %v1662_v28 }
  0xc6   :  { %v1201_v44 = vpop.f32.mrf.mxu3  ;;  %v1105_v45 = vpop.f32.mrf.mxu1 }
  0xc7   :  { %v1202_v46 = vadd.f32 %v1201_v44, %v1153_v43  ;;  %v1106_v47 = vadd.f32 %v1105_v45, %v1057_v42  ;;  %v1669_v42 = vor.u32 %v2171_v30, %v1668_v20  ;;  %v1673_v44 = vor.u32 %v2167_v32, %v1670_v33 }
  0xc8   :  { %v1252_v48 = vpop.f32.mrf.mxu0  ;;  %v1677_v45 = vor.u32 %v2172_v36, %v1676_v34 }
  0xc9   :  { %v2951_v52 = vadd.f32 %v1250_v40, %v1202_v46 }
  0xcc   :  { %v1154_v63 = vpop.f32.mrf.mxu2 }
  0xcd   :  { %v1155_v1 = vadd.f32 %v1154_v63, %v1106_v47  ;;  %v2175_v63 = vld [vmem:[%s3229_s0 + $0xec] sm:$0xf] }
  0xce   :  { %v1203_v2 = vpop.f32.mrf.mxu3  ;;  %v1108_v5 = vpop.f32.mrf.mxu1 }
  0xcf   :  { %v1204_v9 = vadd.f32 %v1203_v2, %v1155_v1  ;;  %v1109_v12 = vadd.f32 %v1108_v5, %v1060_v0  ;;  %v1698_v0 = vld [vmem:[%s3229_s0 + $0x10c] sm:$0xf0]  ;;  %v2180_v2 = vld [vmem:[%s3229_s0 + $0x110] sm:$0xf0]  ;;  %v1712_v5 = vld [vmem:[%s3229_s0 + $0xf8] sm:$0xf] }
  0xd0   :  { %v1255_v13 = vpop.f32.mrf.mxu0 }
  0xd1   :  { %1303 = vmatmul.bf16.gmra.mxu1 %v1629_v3  ;;  %1352 = vmatmul.bf16.gmra.mxu2 %v1633_v4  ;;  %v2972_v15 = vadd.f32 %v1252_v48, %v1204_v9  ;;  %v2176_v3 = vld [vmem:[%s3229_s0 + $0xf4] sm:$0xf]  ;;  %v1706_v4 = vld [vmem:[%s3229_s0 + $0x114] sm:$0xf0]  ;;  %v1070_v9 = vadd.f32 %v2863_v54, %v2903_v11  ;;  %v1072_v11 = vadd.f32 %v2863_v54, %v2911_v19  ;;  %v2189_v19 = vld [vmem:[%s3229_s0 + $0x158] sm:$0xf0] }
  0xd2   :  { %v1740_v54 = vld [vmem:[%s3229_s0 + $0x138] sm:$0xf] }
  0xd3   :  { %1401 = vmatmul.bf16.gmra.mxu3 %v1637_v7  ;;  %1450 = vmatmul.bf16.gmra.mxu0 %v1641_v8  ;;  %v2181_v7 = vld [vmem:[%s3229_s0 + $0x118] sm:$0xf0] }
  0xd4   :  { %v1157_v17 = vpop.f32.mrf.mxu2 }
  0xd5   :  { %v1158_v14 = vadd.f32 %v1157_v17, %v1109_v12  ;;  %v1701_v17 = vor.u32 %v2175_v63, %v1698_v0 }
  0xd6   :  { %v1206_v22 = vpop.f32.mrf.mxu3  ;;  %v1110_v23 = vpop.f32.mrf.mxu1 }
  0xd7   :  { %v1207_v24 = vadd.f32 %v1206_v22, %v1158_v14  ;;  %v1111_v25 = vadd.f32 %v1110_v23, %v1062_v21  ;;  %v1705_v21 = vor.u32 %v2180_v2, %v1704_v59  ;;  %v1709_v22 = vor.u32 %v2176_v3, %v1706_v4 }
  0xd8   :  { %v1257_v26 = vpop.f32.mrf.mxu0  ;;  %v1713_v23 = vor.u32 %v2181_v7, %v1712_v5  ;;  %v2193_v5 = vld [vmem:[%s3229_s0 + $0x17c] sm:$0xf] }
  0xd9   :  { %v2981_v29 = vadd.f32 %v1255_v13, %v1207_v24 }
  0xdc   :  { %v1159_v37 = vpop.f32.mrf.mxu2 }
  0xdd   :  { %v1160_v39 = vadd.f32 %v1159_v37, %v1111_v25  ;;  %v2184_v37 = vld [vmem:[%s3229_s0 + $0x134] sm:$0xf] }
  0xde   :  { %v1208_v40 = vpop.f32.mrf.mxu3  ;;  %v1113_v43 = vpop.f32.mrf.mxu1 }
  0xdf   :  { %v1209_v46 = vadd.f32 %v1208_v40, %v1160_v39  ;;  %v1114_v47 = vadd.f32 %v1113_v43, %v1065_v38  ;;  %v1734_v38 = vld [vmem:[%s3229_s0 + $0x154] sm:$0xf0]  ;;  %v2185_v40 = vld [vmem:[%s3229_s0 + $0x13c] sm:$0xf]  ;;  %v2190_v43 = vld [vmem:[%s3229_s0 + $0x160] sm:$0xf0] }
  0xe0   :  { %v1260_v48 = vpop.f32.mrf.mxu0 }
  0xe1   :  { %1308 = vmatmul.bf16.gmra.mxu1 %v1665_v41  ;;  %1357 = vmatmul.bf16.gmra.mxu2 %v1669_v42  ;;  %v3003_v49 = vadd.f32 %v1257_v26, %v1209_v46  ;;  %v1742_v41 = vld [vmem:[%s3229_s0 + $0x15c] sm:$0xf0] }
  0xe2   :  { %v1748_v42 = vld [vmem:[%s3229_s0 + $0x140] sm:$0xf] }
  0xe3   :  { %1406 = vmatmul.bf16.gmra.mxu3 %v1673_v44  ;;  %1455 = vmatmul.bf16.gmra.mxu0 %v1677_v45 }
  0xe4   :  { %v1162_v51 = vpop.f32.mrf.mxu2 }
  0xe5   :  { %v1163_v53 = vadd.f32 %v1162_v51, %v1114_v47  ;;  %v1737_v47 = vor.u32 %v2184_v37, %v1734_v38 }
  0xe6   :  { %v1211_v55 = vpop.f32.mrf.mxu3  ;;  %v1115_v57 = vpop.f32.mrf.mxu1 }
  0xe7   :  { %v1212_v60 = vadd.f32 %v1211_v55, %v1163_v53  ;;  %v1116_v61 = vadd.f32 %v1115_v57, %v1067_v50  ;;  %v1745_v50 = vor.u32 %v2185_v40, %v1742_v41  ;;  %v1749_v53 = vor.u32 %v2190_v43, %v1748_v42  ;;  %v2202_v40 = vld [vmem:[%s3229_s0 + $0x1c4] sm:$0xf]  ;;  %v1812_v42 = vld [vmem:[%s3229_s0 + $0x1c8] sm:$0xf]  ;;  %v2207_v43 = vld [vmem:[%s3229_s0 + $0x1e8] sm:$0xf0] }
  0xe8   :  { %v1262_v62 = vpop.f32.mrf.mxu0 }
  0xe9   :  { %v3013_v1 = vadd.f32 %v1260_v48, %v1212_v60  ;;  %v1741_v48 = vor.u32 %v2189_v19, %v1740_v54 }
  0xec   :  { %v1164_v8 = vpop.f32.mrf.mxu2 }
  0xed   :  { %v1165_v12 = vadd.f32 %v1164_v8, %v1116_v61  ;;  %v1776_v8 = vld [vmem:[%s3229_s0 + $0x180] sm:$0xf] }
  0xee   :  { %v1213_v13 = vpop.f32.mrf.mxu3  ;;  %v1118_v14 = vpop.f32.mrf.mxu1 }
  0xef   :  { %v1214_v24 = vadd.f32 %v1213_v13, %v1165_v12  ;;  %v1119_v25 = vadd.f32 %v1118_v14, %v1070_v9  ;;  %v2198_v9 = vld [vmem:[%s3229_s0 + $0x1a0] sm:$0xf0]  ;;  %v1778_v12 = vld [vmem:[%s3229_s0 + $0x1a4] sm:$0xf0] }
  0xf0   :  { %v1265_v26 = vpop.f32.mrf.mxu0  ;;  %v1784_v13 = vld [vmem:[%s3229_s0 + $0x188] sm:$0xf] }
  0xf1   :  { %1313 = vmatmul.bf16.gmra.mxu1 %v1701_v17  ;;  %1362 = vmatmul.bf16.gmra.mxu2 %v1705_v21  ;;  %v3035_v27 = vadd.f32 %v1262_v62, %v1214_v24  ;;  %v2199_v17 = vld [vmem:[%s3229_s0 + $0x1a8] sm:$0xf0]  ;;  %v1777_v24 = vor.u32 %v2198_v9, %v1776_v8 }
  0xf3   :  { %1411 = vmatmul.bf16.gmra.mxu3 %v1709_v22  ;;  %1460 = vmatmul.bf16.gmra.mxu0 %v1713_v23 }
  0xf4   :  { %v1167_v28 = vpop.f32.mrf.mxu2 }
  0xf5   :  { %v1168_v20 = vadd.f32 %v1167_v28, %v1119_v25  ;;  %v1785_v28 = vor.u32 %v2199_v17, %v1784_v13  ;;  %v1848_v13 = vld [vmem:[%s3229_s0 + $0x210] sm:$0xf]  ;;  %v2216_v17 = vld [vmem:[%s3229_s0 + $0x230] sm:$0xf0] }
  0xf6   :  { %v1216_v30 = vpop.f32.mrf.mxu3  ;;  %v1120_v32 = vpop.f32.mrf.mxu1 }
  0xf7   :  { %v1217_v33 = vadd.f32 %v1216_v30, %v1168_v20  ;;  %v1121_v34 = vadd.f32 %v1120_v32, %v1072_v11 }
  0xf8   :  { %v1267_v36 = vpop.f32.mrf.mxu0 }
  0xf9   :  { %v3045_v39 = vadd.f32 %v1265_v26, %v1217_v33 }
  0xfc   :  { %v1169_v44 = vpop.f32.mrf.mxu2 }
  0xfd   :  { %v1170_v45 = vadd.f32 %v1169_v44, %v1121_v34  ;;  %v1814_v44 = vld [vmem:[%s3229_s0 + $0x1ec] sm:$0xf0] }
  0xfe   :  { %v1218_v46 = vpop.f32.mrf.mxu3  ;;  %v1123_v51 = vpop.f32.mrf.mxu1 }
  0xff   :  { %v1219_v55 = vadd.f32 %v1218_v46, %v1170_v45  ;;  %v1124_v57 = vadd.f32 %v1123_v51, %v2866_v56  ;;  %v1770_v56 = vld [vmem:[%s3229_s0 + $0x19c] sm:$0xf0]  ;;  %v1820_v45 = vld [vmem:[%s3229_s0 + $0x1d0] sm:$0xf]  ;;  %v2208_v46 = vld [vmem:[%s3229_s0 + $0x1f0] sm:$0xf0] }
 0x100   :  { %v1270_v60 = vpop.f32.mrf.mxu0  ;;  %v1773_v23 = vor.u32 %v2193_v5, %v1770_v56 }
 0x101   :  { %1318 = vmatmul.bf16.gmra.mxu1 %v1737_v47  ;;  %1367 = vmatmul.bf16.gmra.mxu2 %v1741_v48  ;;  %v3066_v61 = vadd.f32 %v1267_v36, %v1219_v55 }
 0x103   :  { %1416 = vmatmul.bf16.gmra.mxu3 %v1745_v50  ;;  %1465 = vmatmul.bf16.gmra.mxu0 %v1749_v53  ;;  %v1813_v53 = vor.u32 %v2207_v43, %v1812_v42 }
 0x104   :  { %v1172_v62 = vpop.f32.mrf.mxu2 }
 0x105   :  { %v1173_v63 = vadd.f32 %v1172_v62, %v1124_v57 }
 0x106   :  { %v1221_v0 = vpop.f32.mrf.mxu3  ;;  %v1125_v59 = vpop.f32.mrf.mxu1 }
 0x107   :  { %v1222_v2 = vadd.f32 %v1221_v0, %v1173_v63  ;;  %v1126_v3 = vadd.f32 %v1125_v59, %v2898_v6  ;;  %v2194_v6 = vld [vmem:[%s3229_s0 + $0x184] sm:$0xf] }
 0x108   :  { %v1272_v4 = vpop.f32.mrf.mxu0  ;;  %v1781_v26 = vor.u32 %v2194_v6, %v1778_v12  ;;  %v2211_v6 = vld [vmem:[%s3229_s0 + $0x20c] sm:$0xf] }
 0x109   :  { %v3075_v7 = vadd.f32 %v1270_v60, %v1222_v2  ;;  %v1821_v60 = vor.u32 %v2208_v46, %v1820_v45 }
 0x10c   :  { %v1174_v21 = vpop.f32.mrf.mxu2 }
 0x10d   :  { %v1175_v14 = vadd.f32 %v1174_v21, %v1126_v3  ;;  %v1850_v21 = vld [vmem:[%s3229_s0 + $0x234] sm:$0xf0] }
 0x10e   :  { %v1223_v22 = vpop.f32.mrf.mxu3  ;;  %v1128_v25 = vpop.f32.mrf.mxu1 }
 0x10f   :  { %v1224_v11 = vadd.f32 %v1223_v22, %v1175_v14  ;;  %v1129_v20 = vadd.f32 %v1128_v25, %v2906_v16  ;;  %v1806_v16 = vld [vmem:[%s3229_s0 + $0x1e4] sm:$0xf0]  ;;  %v1856_v14 = vld [vmem:[%s3229_s0 + $0x218] sm:$0xf]  ;;  %v2217_v22 = vld [vmem:[%s3229_s0 + $0x238] sm:$0xf0] }
 0x110   :  { %v1275_v30 = vpop.f32.mrf.mxu0  ;;  %v1809_v50 = vor.u32 %v2202_v40, %v1806_v16 }
 0x111   :  { %1323 = vmatmul.bf16.gmra.mxu1 %v1773_v23  ;;  %1372 = vmatmul.bf16.gmra.mxu2 %v1777_v24  ;;  %v3096_v32 = vadd.f32 %v1272_v4, %v1224_v11 }
 0x113   :  { %1421 = vmatmul.bf16.gmra.mxu3 %v1781_v26  ;;  %1470 = vmatmul.bf16.gmra.mxu0 %v1785_v28  ;;  %v1849_v28 = vor.u32 %v2216_v17, %v1848_v13 }
 0x114   :  { %v1177_v33 = vpop.f32.mrf.mxu2 }
 0x115   :  { %v1178_v34 = vadd.f32 %v1177_v33, %v1129_v20 }
 0x116   :  { %v1226_v36 = vpop.f32.mrf.mxu3  ;;  %v1130_v37 = vpop.f32.mrf.mxu1 }
 0x117   :  { %v1227_v38 = vadd.f32 %v1226_v36, %v1178_v34  ;;  %v1131_v54 = vadd.f32 %v1130_v37, %v2939_v31  ;;  %v2203_v31 = vld [vmem:[%s3229_s0 + $0x1cc] sm:$0xf] }
 0x118   :  { %v1277_v19 = vpop.f32.mrf.mxu0  ;;  %v1817_v57 = vor.u32 %v2203_v31, %v1814_v44 }
 0x119   :  { %v3105_v41 = vadd.f32 %v1275_v30, %v1227_v38  ;;  %v1857_v30 = vor.u32 %v2217_v22, %v1856_v14 }
 0x11c   :  { %v1179_v47 = vpop.f32.mrf.mxu2 }
 0x11d   :  { %v1180_v48 = vadd.f32 %v1179_v47, %v1131_v54 }
 0x11e   :  { %v1228_v51 = vpop.f32.mrf.mxu3  ;;  %v1133_v55 = vpop.f32.mrf.mxu1 }
 0x11f   :  { %v1229_v62 = vadd.f32 %v1228_v51, %v1180_v48  ;;  %v1134_v63 = vadd.f32 %v1133_v55, %v2869_v58  ;;  %v1842_v58 = vld [vmem:[%s3229_s0 + $0x22c] sm:$0xf0] }
 0x120   :  { %v1280_v0 = vpop.f32.mrf.mxu0  ;;  %v1845_v26 = vor.u32 %v2211_v6, %v1842_v58 }
 0x121   :  { %1328 = vmatmul.bf16.gmra.mxu1 %v1809_v50  ;;  %1377 = vmatmul.bf16.gmra.mxu2 %v1813_v53  ;;  %v3126_v59 = vadd.f32 %v1277_v19, %v1229_v62 }
 0x123   :  { %1426 = vmatmul.bf16.gmra.mxu3 %v1817_v57  ;;  %1475 = vmatmul.bf16.gmra.mxu0 %v1821_v60 }
 0x124   :  { %v1182_v2 = vpop.f32.mrf.mxu2 }
 0x125   :  { %v1183_v3 = vadd.f32 %v1182_v2, %v1134_v63 }
 0x126   :  { %v1231_v4 = vpop.f32.mrf.mxu3  ;;  %v1135_v5 = vpop.f32.mrf.mxu1 }
 0x127   :  { %v1232_v56 = vadd.f32 %v1231_v4, %v1183_v3  ;;  %v1136_v8 = vadd.f32 %v1135_v5, %v2901_v10  ;;  %v2212_v10 = vld [vmem:[%s3229_s0 + $0x214] sm:$0xf] }
 0x128   :  { %v1282_v9 = vpop.f32.mrf.mxu0  ;;  %v1853_v20 = vor.u32 %v2212_v10, %v1850_v21 }
 0x129   :  { %v3135_v12 = vadd.f32 %v1280_v0, %v1232_v56  ;;  %v2291_v0 = vld [vmem:[%s3230_s3] sm:$0xff]  }
 0x12a   :  { %v2293_v6 = vunpack.c.h.bf16 %v2291_v0 }
 0x12c   :  { %v1184_v23 = vpop.f32.mrf.mxu2 }
 0x12d   :  { %v1185_v24 = vadd.f32 %v1184_v23, %v1136_v8  ;;  %v2292_v8 = vunpack.c.l.bf16 %v2291_v0 }
 0x12e   :  { %v1233_v25 = vpop.f32.mrf.mxu3  ;;  %v1138_v11 = vpop.f32.mrf.mxu1 }
 0x12f   :  { %v1234_v33 = vadd.f32 %v1233_v25, %v1185_v24  ;;  %v1139_v34 = vadd.f32 %v1138_v11, %v2909_v18 }
 0x130   :  { %v1285_v36 = vpop.f32.mrf.mxu0 }
 0x131   :  { %1333 = vmatmul.bf16.gmra.mxu1 %v1845_v26  ;;  %1382 = vmatmul.bf16.gmra.mxu2 %v1849_v28  ;;  %v3156_v37 = vadd.f32 %v1282_v9, %v1234_v33  ;;  %v2362_v28 = vld [vmem:[%s3230_s3 + $0x8] sm:$0xff]  }
 0x133   :  { %1431 = vmatmul.bf16.gmra.mxu3 %v1853_v20  ;;  %1480 = vmatmul.bf16.gmra.mxu0 %v1857_v30 }
 0x134   :  { %v1187_v38 = vpop.f32.mrf.mxu2 }
 0x135   :  { %v1188_v54 = vadd.f32 %v1187_v38, %v1139_v34  ;;  %v2296_v34 = vunpack.c.l.bf16 %v2362_v28  ;;  %v2297_v38 = vunpack.c.h.bf16 %v2362_v28 }
 0x136   :  { %v1236_v19 = vpop.f32.mrf.mxu3  ;;  %v1140_v40 = vpop.f32.mrf.mxu1 }
 0x137   :  { %v1237_v16 = vadd.f32 %v1236_v19, %v1188_v54  ;;  %v1141_v42 = vadd.f32 %v1140_v40, %v2942_v35 }
 0x138   :  { %v1287_v43 = vpop.f32.mrf.mxu0 }
 0x139   :  { %v3159_v31 = vadd.f32 %v1285_v36, %v1237_v16 }
 0x13c   :  { %v1189_v44 = vpop.f32.mrf.mxu2 }
 0x13d   :  { %v1190_v45 = vadd.f32 %v1189_v44, %v1141_v42 }
 0x13e   :  { %v1238_v18 = vpop.f32.mrf.mxu3  ;;  %v1299_v46 = vpop.f32.mrf.mxu1 }
 0x13f   :  { %v1239_v47 = vadd.f32 %v1238_v18, %v1190_v45  ;;  %v1300_v53 = vadd.f32 %v1299_v46, %v2951_v52 }
 0x140   :  { %v1446_v48 = vpop.f32.mrf.mxu0 }
 0x141   :  { %v3161_v51 = vadd.f32 %v1287_v43, %v1239_v47 }
 0x144   :  { %v1348_v50 = vpop.f32.mrf.mxu2 }
 0x145   :  { %v1349_v60 = vadd.f32 %v1348_v50, %v1300_v53  ;;  %v2363_v50 = vld [vmem:[%s3230_s3 + $0x10] sm:$0xff]  }
 0x146   :  { %v1397_v55 = vpop.f32.mrf.mxu3  ;;  %v1301_v57 = vpop.f32.mrf.mxu1 }
 0x147   :  { %v1398_v63 = vadd.f32 %v1397_v55, %v1349_v60  ;;  %v1302_v35 = vadd.f32 %v1301_v57, %v2972_v15 }
 0x148   :  { %v1448_v62 = vpop.f32.mrf.mxu0 }
 0x149   :  { %v1447_v56 = vadd.f32 %v1446_v48, %v1398_v63 }
 0x14b   :  { %v1518_v13 = vadd.f32 %v2292_v8, %v1447_v56 }
 0x14c   :  { %v1350_v2 = vpop.f32.mrf.mxu2 }
 0x14d   :  { %v1351_v3 = vadd.f32 %v1350_v2, %v1302_v35  ;;  %v2301_v35 = vunpack.c.h.bf16 %v2363_v50 }
 0x14e   :  { %v1399_v4 = vpop.f32.mrf.mxu3  ;;  %v1304_v5 = vpop.f32.mrf.mxu1 }
 0x14f   :  { %v1400_v9 = vadd.f32 %v1399_v4, %v1351_v3  ;;  %v1305_v15 = vadd.f32 %v1304_v5, %v2981_v29 }
 0x150   :  { %v1451_v52 = vpop.f32.mrf.mxu0 }
 0x151   :  { %v1449_v58 = vadd.f32 %v1448_v62, %v1400_v9  ;;  %v2300_v62 = vunpack.c.l.bf16 %v2363_v50 }
 0x153   :  { %v1519_v17 = vadd.f32 %v2293_v6, %v1449_v58 }
 0x154   :  { %v1353_v10 = vpop.f32.mrf.mxu2 }
 0x155   :  { %v2325_v21 = vpack.c.bf16 %v1519_v17, %v1518_v13  ;;  %v1354_v23 = vadd.f32 %v1353_v10, %v1305_v15  ;;  %v2364_v17 = vld [vmem:[%s3230_s3 + $0x18] sm:$0xff]  }
 0x156   :  { %v1402_v14 = vpop.f32.mrf.mxu3  ;;  %v1306_v22 = vpop.f32.mrf.mxu1 }
 0x157   :  { %2326 = vst [vmem:[%s3231_s4] sm:$0xff] %v2325_v21   ;;  %v1403_v25 = vadd.f32 %v1402_v14, %v1354_v23  ;;  %v1307_v26 = vadd.f32 %v1306_v22, %v3003_v49  ;;  %v2304_v22 = vunpack.c.l.bf16 %v2364_v17 }
 0x158   :  { %v1453_v24 = vpop.f32.mrf.mxu0 }
 0x159   :  { %v1452_v29 = vadd.f32 %v1451_v52, %v1403_v25 }
 0x15b   :  { %v1520_v40 = vadd.f32 %v2296_v34, %v1452_v29 }
 0x15c   :  { %v1355_v11 = vpop.f32.mrf.mxu2 }
 0x15d   :  { %v1356_v20 = vadd.f32 %v1355_v11, %v1307_v26 }
 0x15e   :  { %v1404_v30 = vpop.f32.mrf.mxu3  ;;  %v1309_v33 = vpop.f32.mrf.mxu1 }
 0x15f   :  { %v1405_v36 = vadd.f32 %v1404_v30, %v1356_v20  ;;  %v1310_v49 = vadd.f32 %v1309_v33, %v3013_v1 }
 0x160   :  { %v1456_v54 = vpop.f32.mrf.mxu0 }
 0x161   :  { %v1454_v19 = vadd.f32 %v1453_v24, %v1405_v36  ;;  %v2305_v24 = vunpack.c.h.bf16 %v2364_v17 }
 0x163   :  { %v1521_v16 = vadd.f32 %v2297_v38, %v1454_v19  ;;  %v2365_v19 = vld [vmem:[%s3230_s3 + $0x20] sm:$0xff]  }
 0x164   :  { %v1358_v42 = vpop.f32.mrf.mxu2 }
 0x165   :  { %v2330_v43 = vpack.c.bf16 %v1521_v16, %v1520_v40  ;;  %v1359_v18 = vadd.f32 %v1358_v42, %v1310_v49  ;;  %v2308_v49 = vunpack.c.l.bf16 %v2365_v19 }
 0x166   :  { %v1407_v44 = vpop.f32.mrf.mxu3  ;;  %v1311_v45 = vpop.f32.mrf.mxu1 }
 0x167   :  { %2369 = vst [vmem:[%s3231_s4 + $0x8] sm:$0xff] %v2330_v43   ;;  %v1408_v47 = vadd.f32 %v1407_v44, %v1359_v18  ;;  %v1312_v48 = vadd.f32 %v1311_v45, %v3035_v27  ;;  %v2309_v45 = vunpack.c.h.bf16 %v2365_v19 }
 0x168   :  { %v1458_v46 = vpop.f32.mrf.mxu0 }
 0x169   :  { %v1457_v1 = vadd.f32 %v1456_v54, %v1408_v47 }
 0x16b   :  { %v1522_v3 = vadd.f32 %v2300_v62, %v1457_v1 }
 0x16c   :  { %v1360_v53 = vpop.f32.mrf.mxu2 }
 0x16d   :  { %v1361_v55 = vadd.f32 %v1360_v53, %v1312_v48 }
 0x16e   :  { %v1409_v57 = vpop.f32.mrf.mxu3  ;;  %v1314_v60 = vpop.f32.mrf.mxu1 }
 0x16f   :  { %v1410_v63 = vadd.f32 %v1409_v57, %v1361_v55  ;;  %v1315_v27 = vadd.f32 %v1314_v60, %v3045_v39 }
 0x170   :  { %v1461_v0 = vpop.f32.mrf.mxu0 }
 0x171   :  { %v1459_v2 = vadd.f32 %v1458_v46, %v1410_v63 }
 0x173   :  { %v1523_v4 = vadd.f32 %v2301_v35, %v1459_v2  ;;  %v2366_v35 = vld [vmem:[%s3230_s3 + $0x28] sm:$0xff]  }
 0x174   :  { %v1363_v5 = vpop.f32.mrf.mxu2 }
 0x175   :  { %v2335_v56 = vpack.c.bf16 %v1523_v4, %v1522_v3  ;;  %v1364_v6 = vadd.f32 %v1363_v5, %v1315_v27  ;;  %v2312_v5 = vunpack.c.l.bf16 %v2366_v35  ;;  %v2313_v27 = vunpack.c.h.bf16 %v2366_v35 }
 0x176   :  { %v1412_v8 = vpop.f32.mrf.mxu3  ;;  %v1316_v9 = vpop.f32.mrf.mxu1 }
 0x177   :  { %2370 = vst [vmem:[%s3231_s4 + $0x10] sm:$0xff] %v2335_v56   ;;  %v1413_v58 = vadd.f32 %v1412_v8, %v1364_v6  ;;  %v1317_v13 = vadd.f32 %v1316_v9, %v3066_v61 }
 0x178   :  { %v1463_v52 = vpop.f32.mrf.mxu0 }
 0x179   :  { %v1462_v39 = vadd.f32 %v1461_v0, %v1413_v58 }
 0x17b   :  { %v1524_v28 = vadd.f32 %v2304_v22, %v1462_v39  ;;  %v2367_v39 = vld [vmem:[%s3230_s3 + $0x30] sm:$0xff]  }
 0x17c   :  { %v1365_v10 = vpop.f32.mrf.mxu2 }
 0x17d   :  { %v1366_v21 = vadd.f32 %v1365_v10, %v1317_v13 }
 0x17e   :  { %v1414_v15 = vpop.f32.mrf.mxu3  ;;  %v1319_v14 = vpop.f32.mrf.mxu1 }
 0x17f   :  { %v1415_v23 = vadd.f32 %v1414_v15, %v1366_v21  ;;  %v1320_v61 = vadd.f32 %v1319_v14, %v3075_v7 }
 0x180   :  { %v1466_v25 = vpop.f32.mrf.mxu0 }
 0x181   :  { %v1464_v26 = vadd.f32 %v1463_v52, %v1415_v23 }
 0x183   :  { %v1525_v11 = vadd.f32 %v2305_v24, %v1464_v26 }
 0x184   :  { %v1368_v20 = vpop.f32.mrf.mxu2 }
 0x185   :  { %v2340_v30 = vpack.c.bf16 %v1525_v11, %v1524_v28  ;;  %v1369_v34 = vadd.f32 %v1368_v20, %v1320_v61  ;;  %v2316_v28 = vunpack.c.l.bf16 %v2367_v39  ;;  %v2317_v20 = vunpack.c.h.bf16 %v2367_v39 }
 0x186   :  { %v1417_v33 = vpop.f32.mrf.mxu3  ;;  %v1321_v29 = vpop.f32.mrf.mxu1 }
 0x187   :  { %2371 = vst [vmem:[%s3231_s4 + $0x18] sm:$0xff] %v2340_v30   ;;  %v1418_v38 = vadd.f32 %v1417_v33, %v1369_v34  ;;  %v1322_v54 = vadd.f32 %v1321_v29, %v3096_v32 }
 0x188   :  { %v1468_v36 = vpop.f32.mrf.mxu0 }
 0x189   :  { %v1467_v7 = vadd.f32 %v1466_v25, %v1418_v38 }
 0x18b   :  { %v1526_v47 = vadd.f32 %v2308_v49, %v1467_v7 }
 0x18c   :  { %v1370_v40 = vpop.f32.mrf.mxu2 }
 0x18d   :  { %v1371_v16 = vadd.f32 %v1370_v40, %v1322_v54 }
 0x18e   :  { %v1419_v42 = vpop.f32.mrf.mxu3  ;;  %v1324_v43 = vpop.f32.mrf.mxu1 }
 0x18f   :  { %v1420_v44 = vadd.f32 %v1419_v42, %v1371_v16  ;;  %v1325_v32 = vadd.f32 %v1324_v43, %v3105_v41  ;;  %v2368_v42 = vld [vmem:[%s3230_s3 + $0x38] sm:$0xff]  }
 0x190   :  { %v1471_v18 = vpop.f32.mrf.mxu0 }
 0x191   :  { %v1469_v46 = vadd.f32 %v1468_v36, %v1420_v44 }
 0x193   :  { %v1527_v48 = vadd.f32 %v2309_v45, %v1469_v46 }
 0x194   :  { %v1373_v50 = vpop.f32.mrf.mxu2 }
 0x195   :  { %v2345_v53 = vpack.c.bf16 %v1527_v48, %v1526_v47  ;;  %v1374_v60 = vadd.f32 %v1373_v50, %v1325_v32 }
 0x196   :  { %v1422_v55 = vpop.f32.mrf.mxu3  ;;  %v1326_v57 = vpop.f32.mrf.mxu1 }
 0x197   :  { %2372 = vst [vmem:[%s3231_s4 + $0x20] sm:$0xff] %v2345_v53   ;;  %v1423_v62 = vadd.f32 %v1422_v55, %v1374_v60  ;;  %v1327_v63 = vadd.f32 %v1326_v57, %v3126_v59 }
 0x198   :  { %v1473_v1 = vpop.f32.mrf.mxu0 }
 0x199   :  { %v1472_v41 = vadd.f32 %v1471_v18, %v1423_v62  ;;  %v2321_v18 = vunpack.c.h.bf16 %v2368_v42 }
 0x19b   :  { %v1528_v6 = vadd.f32 %v2312_v5, %v1472_v41 }
 0x19c   :  { %v1375_v0 = vpop.f32.mrf.mxu2 }
 0x19d   :  { %v1376_v2 = vadd.f32 %v1375_v0, %v1327_v63 }
 0x19e   :  { %v1424_v3 = vpop.f32.mrf.mxu3  ;;  %v1329_v4 = vpop.f32.mrf.mxu1 }
 0x19f   :  { %v1425_v56 = vadd.f32 %v1424_v3, %v1376_v2  ;;  %v1330_v59 = vadd.f32 %v1329_v4, %v3135_v12 }
 0x1a0   :  { %v1476_v9 = vpop.f32.mrf.mxu0 }
 0x1a1   :  { %v1474_v8 = vadd.f32 %v1473_v1, %v1425_v56 }
 0x1a3   :  { %v1529_v52 = vadd.f32 %v2313_v27, %v1474_v8 }
 0x1a4   :  { %v1378_v58 = vpop.f32.mrf.mxu2 }
 0x1a5   :  { %v2350_v13 = vpack.c.bf16 %v1529_v52, %v1528_v6  ;;  %v1379_v21 = vadd.f32 %v1378_v58, %v1330_v59 }
 0x1a6   :  { %v1427_v17 = vpop.f32.mrf.mxu3  ;;  %v1331_v10 = vpop.f32.mrf.mxu1 }
 0x1a7   :  { %2373 = vst [vmem:[%s3231_s4 + $0x28] sm:$0xff] %v2350_v13   ;;  %v1428_v15 = vadd.f32 %v1427_v17, %v1379_v21  ;;  %v1332_v14 = vadd.f32 %v1331_v10, %v3156_v37 }
 0x1a8   :  { %v1478_v22 = vpop.f32.mrf.mxu0 }
 0x1a9   :  { %v1477_v12 = vadd.f32 %v1476_v9, %v1428_v15 }
 0x1ab   :  { %v1530_v61 = vadd.f32 %v2316_v28, %v1477_v12 }
 0x1ac   :  { %v1380_v23 = vpop.f32.mrf.mxu2 }
 0x1ad   :  { %v1381_v24 = vadd.f32 %v1380_v23, %v1332_v14 }
 0x1ae   :  { %v1429_v25 = vpop.f32.mrf.mxu3  ;;  %v1334_v26 = vpop.f32.mrf.mxu1 }
 0x1af   :  { %v1430_v11 = vadd.f32 %v1429_v25, %v1381_v24  ;;  %v1335_v37 = vadd.f32 %v1334_v26, %v3159_v31  ;;  %v2320_v31 = vunpack.c.l.bf16 %v2368_v42 }
 0x1b0   :  { %v1481_v38 = vpop.f32.mrf.mxu0 }
 0x1b1   :  { %v1479_v30 = vadd.f32 %v1478_v22, %v1430_v11 }
 0x1b3   :  { %v1531_v33 = vadd.f32 %v2317_v20, %v1479_v30 }
 0x1b4   :  { %v1383_v29 = vpop.f32.mrf.mxu2 }
 0x1b5   :  { %v2355_v34 = vpack.c.bf16 %v1531_v33, %v1530_v61  ;;  %v1384_v54 = vadd.f32 %v1383_v29, %v1335_v37 }
 0x1b6   :  { %v1432_v36 = vpop.f32.mrf.mxu3  ;;  %v1336_v19 = vpop.f32.mrf.mxu1 }
 0x1b7   :  { %2374 = vst [vmem:[%s3231_s4 + $0x30] sm:$0xff] %v2355_v34   ;;  %v1433_v40 = vadd.f32 %v1432_v36, %v1384_v54  ;;  %v1337_v16 = vadd.f32 %v1336_v19, %v3161_v51 }
 0x1b8   :  { %v1483_v46 = vpop.f32.mrf.mxu0 }
 0x1b9   :  { %v1482_v44 = vadd.f32 %v1481_v38, %v1433_v40 }
 0x1bb   :  { %v1532_v48 = vadd.f32 %v2320_v31, %v1482_v44 }
 0x1bc   :  { %v1385_v43 = vpop.f32.mrf.mxu2 }
 0x1bd   :  { %v1386_v7 = vadd.f32 %v1385_v43, %v1337_v16 }
 0x1be   :  { %v1434_v49 = vpop.f32.mrf.mxu3 }
 0x1bf   :  { %v1435_v45 = vadd.f32 %v1434_v49, %v1386_v7 }
 0x1c1   :  { %v1484_v47 = vadd.f32 %v1483_v46, %v1435_v45 }
 0x1c3   :  { %v1533_v50 = vadd.f32 %v2321_v18, %v1484_v47 }
 0x1c5   :  { %v2360_v53 = vpack.c.bf16 %v1533_v50, %v1532_v48 }
 0x1c7   :  { %2375 = vst [vmem:[%s3231_s4 + $0x38] sm:$0xff] %v2360_v53  }

// kernel: down_block_forward.5
= control target key start
LH: loop header
LB: loop body
LE: loop exit
PB: predicated region body
PF: predicated region fallthrough
CT: control target
= control target key end

     0   :  { %s3701_s12 = smov 0   ;;  %s4821_s0 = inlined_call_operand.vmem [shape: bf16[2,18,18,128], index: 0, kind: input, shape index: {}]   ;;  %s4822_s1 = inlined_call_operand.vmem [shape: bf16[9,128,128], index: 1, kind: input, shape index: {}]   ;;  %s4823_s2 = inlined_call_operand.vmem [shape: f32[1,128], index: 2, kind: input, shape index: {}]   ;;  %s4824_s3 = inlined_call_operand.vmem [shape: bf16[2,16,16,128], index: 3, kind: output, shape index: {}]  }
   0x1 LB: > { %s2919_s13 = sadd.s32 4294967295, %s3679_s12   ;;  %p2923_p0 = scmp.ge.s32.totalorder %s3679_s12, 1  ;;  %s3679_s12 = sphi %s3701_s12, %s13_s12  }
   0x2   : > { %p137_p1 = scmp.lt.s32.totalorder %s3679_s12, 3 }
   0x4   : > { %p138_p2 = pnand %p2923_p0, %p137_p1 }
   0x6   : > { %141 = sbr.rel (%p138_p2) target bundleno = 761 (0x2f9), region = 32 }
   0xb   : > { %v3469_v0 = vld [vmem:[%s4822_s1 + $0x78] sm:$0xff]  ;;  %p161_p3 = scmp.lt.s32.totalorder %s2919_s13, 1  ;;  %v3468_v1 = vld [vmem:[%s4822_s1 + $0x70] sm:$0xff]  ;;  %v3467_v2 = vld [vmem:[%s4822_s1 + $0x68] sm:$0xff]  ;;  %vm241_vm0 = vsmask.f32 3328 }
   0xc   : > { %3621 = vmatpush.bf16.msra.mxu1 %v3469_v0  ;;  %3622 = vmatpush.bf16.msra.mxu2 %v3469_v0  ;;  %vm242_vm1 = vsmask.f32 7440  ;;  %v3466_v6 = vld [vmem:[%s4822_s1 + $0x60] sm:$0xff]  ;;  %v3465_v35 = vld [vmem:[%s4822_s1 + $0x58] sm:$0xff]  ;;  %v3464_v54 = vld [vmem:[%s4822_s1 + $0x50] sm:$0xff]  ;;  %vm1095_vm3 = vcmask 1042432  }
   0xd   : > { %s4944_s13 = smov (!%p161_p3, %s2919_s13), 1  ;;  %3623 = vmatpush.bf16.msra.mxu3 %v3469_v0  ;;  %757 = vmatpush.bf16.msra.mxu0 %v3469_v0  ;;  %vm3739_vm2 = vmor %vm241_vm0, %vm242_vm1  ;;  %vm1096_vm4 = vcmask 1046532  }
   0xe   : > { %s3645_s18 = smul.u32 216, %s4944_s13  ;;  %vm4112_vm5 = vmor %vm1095_vm3, %vm1096_vm4  ;;  %s3435_s19 = sshll.u32 %s4944_s13, 7 }
   0xf   : > { %s4692_s22 = scalar_lea.vmem %s4824_s3, %s3435_s19 }
  0x10   : > { %3624 = vmatpush.bf16.msra.mxu1 %v3468_v1  ;;  %3625 = vmatpush.bf16.msra.mxu2 %v3468_v1  ;;  %s3724_s23 = scalar_lea.vmem %s4821_s0, %s3645_s18 }
  0x11   : > { %3626 = vmatpush.bf16.msra.mxu3 %v3468_v1  ;;  %758 = vmatpush.bf16.msra.mxu0 %v3468_v1  ;;  %v183_v3 = vld [vmem:[%s3724_s23 + $0x30] sm:$0xf]  ;;  %v184_v4 = vld [vmem:[%s3724_s23 + $0x34] sm:$0xf]  ;;  %v185_v5 = vld [vmem:[%s3724_s23 + $0x38] sm:$0x1] }
  0x12   : > { %v341_v7 = vshrl.u32 %v183_v3, 16  ;;  %v344_v8 = vshll.u32 %v183_v3, 16  ;;  %v350_v9 = vshll.u32 %v184_v4, 16  ;;  %v354_v10 = vshrl.u32 %v184_v4, 16  ;;  %v195_v11 = vld [vmem:[%s3724_s23 + $0x60] sm:$0xf] }
  0x13   : > { %v360_v12 = vshll.u32 %v185_v5, 16  ;;  %v196_v13 = vld [vmem:[%s3724_s23 + $0x64] sm:$0xf]  ;;  %v197_v14 = vld [vmem:[%s3724_s23 + $0x68] sm:$0x1]  ;;  %v437_v15 = vshrl.u32 %v195_v11, 16 }
  0x14   : > { %3627 = vmatpush.bf16.msra.mxu1 %v3467_v2  ;;  %3628 = vmatpush.bf16.msra.mxu2 %v3467_v2  ;;  %v343_v16 = vrot.slane %v341_v7, 4  ;;  %v346_v17 = vrot.slane %v344_v8, 5  ;;  %v352_v18 = vrot.slane %v350_v9, 5  ;;  %v356_v19 = vrot.slane %v354_v10, 4  ;;  %v207_v20 = vld [vmem:[%s3724_s23 + $0x90] sm:$0xf] }
  0x15   : > { %3629 = vmatpush.bf16.msra.mxu3 %v3467_v2  ;;  %759 = vmatpush.bf16.msra.mxu0 %v3467_v2  ;;  %v362_v21 = vrot.slane %v360_v12, 5  ;;  %v439_v22 = vrot.slane %v437_v15, 4  ;;  %v440_v23 = vshll.u32 %v195_v11, 16  ;;  %v446_v24 = vshll.u32 %v196_v13, 16  ;;  %v208_v29 = vld [vmem:[%s3724_s23 + $0x94] sm:$0xf] }
  0x16   : > { %v347_v25 = vor.u32 %v346_v17, %v343_v16  ;;  %v357_v26 = vor.u32 %v356_v19, %v352_v18  ;;  %v450_v27 = vshrl.u32 %v196_v13, 16  ;;  %v456_v28 = vshll.u32 %v197_v14, 16  ;;  %v209_v41 = vld [vmem:[%s3724_s23 + $0x98] sm:$0x1]  ;;  %v3752_v49 = vld [vmem:[%s3724_s23] sm:$0xf] }
  0x17   : > { %v442_v31 = vrot.slane %v440_v23, 5  ;;  %v448_v32 = vrot.slane %v446_v24, 5  ;;  %v533_v33 = vshrl.u32 %v207_v20, 16  ;;  %v536_v34 = vshll.u32 %v207_v20, 16  ;;  %v3762_v62 = vld [vmem:[%s3724_s23 + $0x4] sm:$0xf] }
  0x18   : > { %3630 = vmatpush.bf16.msra.mxu1 %v3466_v6  ;;  %3631 = vmatpush.bf16.msra.mxu2 %v3466_v6  ;;  %v348_v36 = vrot.slane %v347_v25, 4  ;;  %v358_v37 = vrot.slane %v357_v26, 4  ;;  %v452_v38 = vrot.slane %v450_v27, 4  ;;  %v458_v39 = vrot.slane %v456_v28, 5  ;;  %v3768_v4 = vld [vmem:[%s3724_s23 + $0x8] sm:$0x1] }
  0x19   : > { %3632 = vmatpush.bf16.msra.mxu3 %v3466_v6  ;;  %760 = vmatpush.bf16.msra.mxu0 %v3466_v6  ;;  %v443_v40 = vor.u32 %v442_v31, %v439_v22  ;;  %v535_v42 = vrot.slane %v533_v33, 4  ;;  %v538_v43 = vrot.slane %v536_v34, 5  ;;  %v542_v44 = vshll.u32 %v208_v29, 16  ;;  %v3771_v5 = vld [vmem:[%s3724_s23 + $0x3c] sm:$0xf]  ;;  %v3463_v10 = vld [vmem:[%s4822_s1 + $0x48] sm:$0xff] }
  0x1a   : > { %v353_v45 = vsel %vm3739_vm2, %v348_v36, %v352_v18  ;;  %v363_v46 = vsel %vm3739_vm2, %v358_v37, %v362_v21  ;;  %v453_v47 = vor.u32 %v452_v38, %v448_v32  ;;  %v546_v48 = vshrl.u32 %v208_v29, 16  ;;  %v3782_v15 = vld [vmem:[%s3724_s23 + $0x40] sm:$0xf]  ;;  %v3788_v19 = vld [vmem:[%s3724_s23 + $0x44] sm:$0x1]  ;;  %v3477_v37 = vld [vmem:[%s4822_s1 + $0xb8] sm:$0xff] }
  0x1b   : > { %v653_v50 = vunpack.c.l.b16 %v353_v45  ;;  %v654_v51 = vunpack.c.l.b16 %v363_v46  ;;  %v444_v52 = vrot.slane %v443_v40, 4  ;;  %v539_v53 = vor.u32 %v538_v43, %v535_v42  ;;  %v198_v25 = vld [vmem:[%s3724_s23 + $0x6c] sm:$0xf]  ;;  %v3462_v31 = vld [vmem:[%s4822_s1 + $0x40] sm:$0xff]  ;;  %v199_v40 = vld [vmem:[%s3724_s23 + $0x70] sm:$0xf] }
  0x1c   : > { %3633 = vmatpush.bf16.msra.mxu1 %v3465_v35  ;;  %3634 = vmatpush.bf16.msra.mxu2 %v3465_v35  ;;  %v454_v55 = vrot.slane %v453_v47, 4  ;;  %v544_v56 = vrot.slane %v542_v44, 5  ;;  %v548_v57 = vrot.slane %v546_v48, 4  ;;  %v552_v58 = vshll.u32 %v209_v41, 16  ;;  %v3485_v43 = vld [vmem:[%s4822_s1 + $0xf8] sm:$0xff] }
  0x1d   : > { %3635 = vmatpush.bf16.msra.mxu3 %v3465_v35  ;;  %761 = vmatpush.bf16.msra.mxu0 %v3465_v35  ;;  %v3757_v59 = vpack.c.b16 %v654_v51, %v653_v50  ;;  %v449_v60 = vsel %vm3739_vm2, %v444_v52, %v448_v32  ;;  %v540_v61 = vrot.slane %v539_v53, 4  ;;  %v245_v63 = vshrl.u32 %v3752_v49, 16  ;;  %v200_v47 = vld [vmem:[%s3724_s23 + $0x74] sm:$0x1]  ;;  %v210_v53 = vld [vmem:[%s3724_s23 + $0x9c] sm:$0xf] }
  0x1e   : > { %v459_v0 = vsel %vm3739_vm2, %v454_v55, %v458_v39  ;;  %v661_v1 = vunpack.c.l.b16 %v449_v60  ;;  %v549_v2 = vor.u32 %v548_v57, %v544_v56  ;;  %v554_v3 = vrot.slane %v552_v58, 5 }
  0x1f   : > { %v662_v6 = vunpack.c.l.b16 %v459_v0  ;;  %v545_v7 = vsel %vm3739_vm2, %v540_v61, %v544_v56  ;;  %v247_v8 = vrot.slane %v245_v63, 4  ;;  %v248_v9 = vshll.u32 %v3752_v49, 16  ;;  %v3461_v56 = vld [vmem:[%s4822_s1 + $0x38] sm:$0xff]  ;;  %v3476_v61 = vld [vmem:[%s4822_s1 + $0xb0] sm:$0xff] }
  0x20   : > { %3636 = vmatpush.bf16.msra.mxu1 %v3464_v54  ;;  %3637 = vmatpush.bf16.msra.mxu2 %v3464_v54  ;;  %v550_v11 = vrot.slane %v549_v2, 4  ;;  %v669_v12 = vunpack.c.l.b16 %v545_v7  ;;  %v254_v13 = vshll.u32 %v3762_v62, 16  ;;  %v258_v14 = vshrl.u32 %v3762_v62, 16  ;;  %v3484_v2 = vld [vmem:[%s4822_s1 + $0xf0] sm:$0xff] }
  0x21   : > { %3638 = vmatpush.bf16.msra.mxu3 %v3464_v54  ;;  %762 = vmatpush.bf16.msra.mxu0 %v3464_v54  ;;  %v3784_v16 = vpack.c.b16 %v662_v6, %v661_v1  ;;  %v250_v17 = vrot.slane %v248_v9, 5  ;;  %v264_v18 = vshll.u32 %v3768_v4, 16  ;;  %v365_v20 = vshrl.u32 %v3771_v5, 16 }
  0x22   : > { %v555_v21 = vsel %vm3739_vm2, %v550_v11, %v554_v3  ;;  %v256_v22 = vrot.slane %v254_v13, 5  ;;  %v260_v23 = vrot.slane %v258_v14, 4  ;;  %v368_v24 = vshll.u32 %v3771_v5, 16  ;;  %v3493_v11 = vld [vmem:[%s4822_s1 + $0x138] sm:$0xff] }
  0x23   : > { %4859 = vst [vmem:[#allocation2_spill] sm:$0xff] %v3784_v16  ;;  %v670_v26 = vunpack.c.l.b16 %v555_v21  ;;  %v251_v27 = vor.u32 %v250_v17, %v247_v8  ;;  %v266_v28 = vrot.slane %v264_v18, 5  ;;  %v367_v29 = vrot.slane %v365_v20, 4  ;;  %v211_v8 = vld [vmem:[%s3724_s23 + $0xa0] sm:$0xf]  ;;  %v3460_v20 = vld [vmem:[%s4822_s1 + $0x30] sm:$0xff] }
  0x24   : > { %3639 = vmatpush.bf16.msra.mxu1 %v3463_v10  ;;  %3640 = vmatpush.bf16.msra.mxu2 %v3463_v10  ;;  %v261_v32 = vor.u32 %v260_v23, %v256_v22  ;;  %v370_v33 = vrot.slane %v368_v24, 5  ;;  %v374_v34 = vshll.u32 %v3782_v15, 16  ;;  %v378_v35 = vshrl.u32 %v3782_v15, 16  ;;  %v212_v17 = vld [vmem:[%s3724_s23 + $0xa4] sm:$0x1] }
  0x25   : > { %3641 = vmatpush.bf16.msra.mxu3 %v3463_v10  ;;  %763 = vmatpush.bf16.msra.mxu0 %v3463_v10  ;;  %v3800_v36 = vpack.c.b16 %v670_v26, %v669_v12  ;;  %v252_v38 = vrot.slane %v251_v27, 4  ;;  %v384_v39 = vshll.u32 %v3788_v19, 16  ;;  %v461_v41 = vshrl.u32 %v198_v25, 16  ;;  %v3835_v18 = vld [vmem:[%s3724_s23 + $0xc] sm:$0xf] }
  0x26   : > { %v262_v42 = vrot.slane %v261_v32, 4  ;;  %v371_v44 = vor.u32 %v370_v33, %v367_v29  ;;  %v376_v45 = vrot.slane %v374_v34, 5  ;;  %v380_v46 = vrot.slane %v378_v35, 4  ;;  %v3475_v29 = vld [vmem:[%s4822_s1 + $0xa8] sm:$0xff]  ;;  %v3847_v34 = vld [vmem:[%s3724_s23 + $0x10] sm:$0xf] }
  0x27   : > { %v257_v48 = vsel %vm3739_vm2, %v252_v38, %v256_v22  ;;  %v386_v50 = vrot.slane %v384_v39, 5  ;;  %v463_v51 = vrot.slane %v461_v41, 4  ;;  %v464_v52 = vshll.u32 %v198_v25, 16 }
  0x28   : > { %3642 = vmatpush.bf16.msra.mxu1 %v3462_v31  ;;  %3643 = vmatpush.bf16.msra.mxu2 %v3462_v31  ;;  %v267_v54 = vsel %vm3739_vm2, %v262_v42, %v266_v28  ;;  %v645_v55 = vunpack.c.l.b16 %v257_v48  ;;  %v372_v57 = vrot.slane %v371_v44, 4  ;;  %v381_v58 = vor.u32 %v380_v46, %v376_v45  ;;  %v3858_v42 = vld [vmem:[%s3724_s23 + $0x14] sm:$0x1]  ;;  %v3459_v48 = vld [vmem:[%s4822_s1 + $0x28] sm:$0xff] }
  0x29   : > { %3644 = vmatpush.bf16.msra.mxu3 %v3462_v31  ;;  %764 = vmatpush.bf16.msra.mxu0 %v3462_v31  ;;  %v646_v60 = vunpack.c.l.b16 %v267_v54  ;;  %v466_v63 = vrot.slane %v464_v52, 5  ;;  %v470_v0 = vshll.u32 %v199_v40, 16  ;;  %v474_v1 = vshrl.u32 %v199_v40, 16  ;;  %v3869_v54 = vld [vmem:[%s3724_s23 + $0x48] sm:$0xf] }
  0x2a   : > { %v377_v3 = vsel %vm3739_vm2, %v372_v57, %v376_v45  ;;  %v382_v6 = vrot.slane %v381_v58, 4  ;;  %v480_v7 = vshll.u32 %v200_v47, 16  ;;  %v557_v9 = vshrl.u32 %v210_v53, 16 }
  0x2b   : > { %785 = vmatmul.bf16.vlgmr.msra.gmra.mxu1 %v3757_v59  ;;  %805 = vmatmul.bf16.vlgmr.msra.gmra.mxu2 %v3784_v16  ;;  %v677_v10 = vpack.c.b16 %v646_v60, %v645_v55  ;;  %v655_v12 = vunpack.c.l.b16 %v377_v3  ;;  %v467_v13 = vor.u32 %v466_v63, %v463_v51  ;;  %v472_v14 = vrot.slane %v470_v0, 5  ;;  %v3474_v60 = vld [vmem:[%s4822_s1 + $0xa0] sm:$0xff]  ;;  %v3491_v3 = vld [vmem:[%s4822_s1 + $0x128] sm:$0xff] }
  0x2c   : > { %1339 = vmatpush.bf16.msrb.mxu2 %v3477_v37  ;;  %825 = vmatmul.bf16.vlgmr.msra.gmra.mxu3 %v3800_v36  ;;  %v387_v21 = vsel %vm3739_vm2, %v382_v6, %v386_v50  ;;  %v476_v22 = vrot.slane %v474_v1, 4  ;;  %v482_v23 = vrot.slane %v480_v7, 5  ;;  %v559_v24 = vrot.slane %v557_v9, 4  ;;  %v3483_v37 = vld [vmem:[%s4822_s1 + $0xe8] sm:$0xff]  ;;  %v3458_v6 = vld [vmem:[%s4822_s1 + $0x20] sm:$0xff] }
  0x2d   : > { %1531 = vmatpush.bf16.msrb.mxu3 %v3485_v43  ;;  %990 = vmatpush.bf16.msrb.mxu1 %v3461_v56  ;;  %v656_v25 = vunpack.c.l.b16 %v387_v21  ;;  %v468_v26 = vrot.slane %v467_v13, 4  ;;  %v560_v27 = vshll.u32 %v210_v53, 16  ;;  %v566_v28 = vshll.u32 %v211_v8, 16  ;;  %v3492_v43 = vld [vmem:[%s4822_s1 + $0x130] sm:$0xff]  ;;  %v3900_v21 = vld [vmem:[%s3724_s23 + $0x78] sm:$0xf] }
  0x2e   : > { %765 = vmatmul.bf16.vlgmr.msra.gmra.mxu0 %v677_v10  ;;  %v477_v31 = vor.u32 %v476_v22, %v472_v14  ;;  %v570_v32 = vshrl.u32 %v211_v8, 16  ;;  %v576_v33 = vshll.u32 %v212_v17, 16  ;;  %v269_v35 = vshrl.u32 %v3835_v18, 16  ;;  %v3888_v10 = vld [vmem:[%s3724_s23 + $0x4c] sm:$0xf] }
  0x2f   : > { %1745 = vmatpush.bf16.msrb.mxu0 %v3493_v11  ;;  %v3853_v38 = vpack.c.b16 %v656_v25, %v655_v12  ;;  %v473_v39 = vsel %vm3739_vm2, %v468_v26, %v472_v14  ;;  %v562_v40 = vrot.slane %v560_v27, 5  ;;  %v568_v41 = vrot.slane %v566_v28, 5  ;;  %v3896_v17 = vld [vmem:[%s3724_s23 + $0x50] sm:$0x1]  ;;  %v3473_v26 = vld [vmem:[%s4822_s1 + $0x98] sm:$0xff] }
  0x30   : > { %1340 = vmatpush.bf16.msrb.mxu2 %v3476_v61  ;;  %v478_v44 = vrot.slane %v477_v31, 4  ;;  %v663_v45 = vunpack.c.l.b16 %v473_v39  ;;  %v572_v46 = vrot.slane %v570_v32, 4  ;;  %v578_v47 = vrot.slane %v576_v33, 5  ;;  %v3482_v61 = vld [vmem:[%s4822_s1 + $0xe0] sm:$0xff]  ;;  %v3481_v27 = vld [vmem:[%s4822_s1 + $0xd8] sm:$0xff] }
  0x31   : > { %1532 = vmatpush.bf16.msrb.mxu3 %v3484_v2  ;;  %4860 = vst [vmem:[#allocation3_spill] sm:$0xff] %v3853_v38  ;;  %991 = vmatpush.bf16.msrb.mxu1 %v3460_v20  ;;  %v563_v50 = vor.u32 %v562_v40, %v559_v24  ;;  %v271_v51 = vrot.slane %v269_v35, 4  ;;  %v272_v52 = vshll.u32 %v3835_v18, 16  ;;  %v278_v53 = vshll.u32 %v3847_v34, 16  ;;  %v3490_v40 = vld [vmem:[%s4822_s1 + $0x120] sm:$0xff] }
  0x32   : > { %v483_v55 = vsel %vm3739_vm2, %v478_v44, %v482_v23  ;;  %v573_v56 = vor.u32 %v572_v46, %v568_v41  ;;  %v282_v57 = vshrl.u32 %v3847_v34, 16  ;;  %v288_v58 = vshll.u32 %v3858_v42, 16  ;;  %v3922_v46 = vld [vmem:[%s3724_s23 + $0x7c] sm:$0xf] }
  0x33   : > { %v664_v63 = vunpack.c.l.b16 %v483_v55  ;;  %v564_v0 = vrot.slane %v563_v50, 4  ;;  %v274_v1 = vrot.slane %v272_v52, 5  ;;  %v280_v2 = vrot.slane %v278_v53, 5  ;;  %1746 = vmatpush.bf16.msrb.mxu0 %v3492_v43  ;;  %v213_v55 = vld [vmem:[%s3724_s23 + $0xa8] sm:$0xf] }
  0x34   : > { %1341 = vmatpush.bf16.msrb.mxu2 %v3475_v29  ;;  %v574_v7 = vrot.slane %v573_v56, 4  ;;  %v284_v8 = vrot.slane %v282_v57, 4  ;;  %v290_v9 = vrot.slane %v288_v58, 5  ;;  %v389_v11 = vshrl.u32 %v3869_v54, 16  ;;  %v3472_v56 = vld [vmem:[%s4822_s1 + $0x90] sm:$0xff] }
  0x35   : > { %1533 = vmatpush.bf16.msrb.mxu3 %v3483_v37  ;;  %992 = vmatpush.bf16.msrb.mxu1 %v3459_v48  ;;  %v3891_v12 = vpack.c.b16 %v664_v63, %v663_v45  ;;  %v569_v13 = vsel %vm3739_vm2, %v564_v0, %v568_v41  ;;  %v275_v14 = vor.u32 %v274_v1, %v271_v51  ;;  %v392_v20 = vshll.u32 %v3869_v54, 16  ;;  %v3457_v48 = vld [vmem:[%s4822_s1 + $0x18] sm:$0xff]  ;;  %v3480_v57 = vld [vmem:[%s4822_s1 + $0xd0] sm:$0xff] }
  0x36   : > { %v579_v22 = vsel %vm3739_vm2, %v574_v7, %v578_v47  ;;  %v671_v23 = vunpack.c.l.b16 %v569_v13  ;;  %v285_v24 = vor.u32 %v284_v8, %v280_v2  ;;  %v391_v25 = vrot.slane %v389_v11, 4  ;;  %v3925_v47 = vld [vmem:[%s3724_s23 + $0x80] sm:$0x1]  ;;  %v214_v11 = vld [vmem:[%s3724_s23 + $0xac] sm:$0xf] }
  0x37   : > { %v672_v28 = vunpack.c.l.b16 %v579_v22  ;;  %v276_v29 = vrot.slane %v275_v14, 4  ;;  %1747 = vmatpush.bf16.msrb.mxu0 %v3491_v3  ;;  %v394_v31 = vrot.slane %v392_v20, 5  ;;  %v398_v32 = vshll.u32 %v3888_v10, 16  ;;  %v3456_v14 = vld [vmem:[%s4822_s1 + $0x10] sm:$0xff] }
  0x38   : > { %1342 = vmatpush.bf16.msrb.mxu2 %v3474_v60  ;;  %v286_v33 = vrot.slane %v285_v24, 4  ;;  %v402_v35 = vshrl.u32 %v3888_v10, 16  ;;  %v408_v37 = vshll.u32 %v3896_v17, 16  ;;  %v485_v39 = vshrl.u32 %v3900_v21, 16 }
  0x39   : > { %1534 = vmatpush.bf16.msrb.mxu3 %v3482_v61  ;;  %993 = vmatpush.bf16.msrb.mxu1 %v3458_v6  ;;  %v3917_v41 = vpack.c.b16 %v672_v28, %v671_v23  ;;  %v281_v43 = vsel %vm3739_vm2, %v276_v29, %v280_v2  ;;  %v395_v44 = vor.u32 %v394_v31, %v391_v25  ;;  %v400_v45 = vrot.slane %v398_v32, 5  ;;  %v3489_v6 = vld [vmem:[%s4822_s1 + $0x118] sm:$0xff]  ;;  %v215_v25 = vld [vmem:[%s3724_s23 + $0xb0] sm:$0x1] }
  0x3a   : > { %v291_v50 = vsel %vm3739_vm2, %v286_v33, %v290_v9  ;;  %v647_v51 = vunpack.c.l.b16 %v281_v43  ;;  %v404_v52 = vrot.slane %v402_v35, 4  ;;  %v410_v53 = vrot.slane %v408_v37, 5  ;;  %v3960_v31 = vld [vmem:[%s3724_s23 + $0x18] sm:$0xf] }
  0x3b   : > { %4861 = vst [vmem:[#allocation4_spill] sm:$0xff] %v3917_v41  ;;  %790 = vmatmul.bf16.gmra.mxu1 %v3853_v38  ;;  %810 = vmatmul.bf16.gmra.mxu2 %v3891_v12  ;;  %v648_v58 = vunpack.c.l.b16 %v291_v50  ;;  %v396_v60 = vrot.slane %v395_v44, 4  ;;  %v487_v61 = vrot.slane %v485_v39, 4  ;;  %v488_v63 = vshll.u32 %v3900_v21, 16 }
  0x3c   : > { %1343 = vmatpush.bf16.msrb.mxu2 %v3473_v26  ;;  %830 = vmatmul.bf16.gmra.mxu3 %v3917_v41  ;;  %v405_v0 = vor.u32 %v404_v52, %v400_v45  ;;  %v494_v1 = vshll.u32 %v3922_v46, 16  ;;  %v498_v2 = vshrl.u32 %v3922_v46, 16  ;;  %v504_v3 = vshll.u32 %v3925_v47, 16  ;;  %v3968_v52 = vld [vmem:[%s3724_s23 + $0x1c] sm:$0xf] }
  0x3d   : > { %1535 = vmatpush.bf16.msrb.mxu3 %v3481_v27  ;;  %1748 = vmatpush.bf16.msrb.mxu0 %v3490_v40  ;;  %v3949_v7 = vpack.c.b16 %v648_v58, %v647_v51  ;;  %v401_v8 = vsel %vm3739_vm2, %v396_v60, %v400_v45  ;;  %v490_v9 = vrot.slane %v488_v63, 5  ;;  %v581_v13 = vshrl.u32 %v213_v55, 16  ;;  %v3471_v45 = vld [vmem:[%s4822_s1 + $0x88] sm:$0xff]  ;;  %v3976_v60 = vld [vmem:[%s3724_s23 + $0x20] sm:$0x1] }
  0x3e   : > { %994 = vmatpush.bf16.msrb.mxu1 %v3457_v48  ;;  %v406_v20 = vrot.slane %v405_v0, 4  ;;  %v657_v22 = vunpack.c.l.b16 %v401_v8  ;;  %v496_v23 = vrot.slane %v494_v1, 5  ;;  %v500_v24 = vrot.slane %v498_v2, 4 }
  0x3f   : > { %770 = vmatmul.bf16.gmra.mxu0 %v3949_v7  ;;  %v491_v26 = vor.u32 %v490_v9, %v487_v61  ;;  %v506_v27 = vrot.slane %v504_v3, 5  ;;  %v583_v28 = vrot.slane %v581_v13, 4  ;;  %v584_v29 = vshll.u32 %v213_v55, 16  ;;  %v3979_v61 = vld [vmem:[%s3724_s23 + $0x54] sm:$0xf] }
  0x40   : > { %1344 = vmatpush.bf16.msrb.mxu2 %v3472_v56  ;;  %v411_v32 = vsel %vm3739_vm2, %v406_v20, %v410_v53  ;;  %v501_v33 = vor.u32 %v500_v24, %v496_v23  ;;  %v590_v35 = vshll.u32 %v214_v11, 16  ;;  %v594_v37 = vshrl.u32 %v214_v11, 16  ;;  %v3479_v11 = vld [vmem:[%s4822_s1 + $0xc8] sm:$0xff]  ;;  %v3488_v13 = vld [vmem:[%s4822_s1 + $0x110] sm:$0xff] }
  0x41   : > { %1536 = vmatpush.bf16.msrb.mxu3 %v3480_v57  ;;  %1749 = vmatpush.bf16.msrb.mxu0 %v3489_v6  ;;  %v658_v39 = vunpack.c.l.b16 %v411_v32  ;;  %v492_v40 = vrot.slane %v491_v26, 4  ;;  %v586_v43 = vrot.slane %v584_v29, 5  ;;  %v600_v44 = vshll.u32 %v215_v25, 16  ;;  %v3470_v25 = vld [vmem:[%s4822_s1 + $0x80] sm:$0xff]  ;;  %v4005_v32 = vld [vmem:[%s3724_s23 + $0x58] sm:$0xf] }
  0x42   : > { %995 = vmatpush.bf16.msrb.mxu1 %v3456_v14  ;;  %v502_v48 = vrot.slane %v501_v33, 4  ;;  %v592_v50 = vrot.slane %v590_v35, 5  ;;  %v596_v51 = vrot.slane %v594_v37, 4  ;;  %v293_v53 = vshrl.u32 %v3960_v31, 16  ;;  %v3455_v14 = vld [vmem:[%s4822_s1 + $0x8] sm:$0xff] }
  0x43   : > { %v3971_v55 = vpack.c.b16 %v658_v39, %v657_v22  ;;  %v497_v56 = vsel %vm3739_vm2, %v492_v40, %v496_v23  ;;  %v587_v57 = vor.u32 %v586_v43, %v583_v28  ;;  %v602_v58 = vrot.slane %v600_v44, 5  ;;  %v4008_v33 = vld [vmem:[%s3724_s23 + $0x5c] sm:$0x1]  ;;  %v4013_v43 = vld [vmem:[%s3724_s23 + $0x84] sm:$0xf] }
  0x44   : > { %1345 = vmatpush.bf16.msrb.mxu2 %v3471_v45  ;;  %v507_v63 = vsel %vm3739_vm2, %v502_v48, %v506_v27  ;;  %v665_v0 = vunpack.c.l.b16 %v497_v56  ;;  %v597_v1 = vor.u32 %v596_v51, %v592_v50  ;;  %v295_v2 = vrot.slane %v293_v53, 4  ;;  %v3478_v44 = vld [vmem:[%s4822_s1 + $0xc0] sm:$0xff]  ;;  %v3487_v45 = vld [vmem:[%s4822_s1 + $0x108] sm:$0xff] }
  0x45   : > { %4862 = vst [vmem:[#allocation5_spill] sm:$0xff] %v3971_v55  ;;  %v666_v3 = vunpack.c.l.b16 %v507_v63  ;;  %v588_v6 = vrot.slane %v587_v57, 4  ;;  %v296_v8 = vshll.u32 %v3960_v31, 16  ;;  %v302_v9 = vshll.u32 %v3968_v52, 16  ;;  %1537 = vmatpush.bf16.msrb.mxu3 %v3479_v11  ;;  %1750 = vmatpush.bf16.msrb.mxu0 %v3488_v13  ;;  %v3454_v56 = vld [vmem:[%s4822_s1] sm:$0xff] }
  0x46   : > { %v598_v20 = vrot.slane %v597_v1, 4  ;;  %v306_v22 = vshrl.u32 %v3968_v52, 16  ;;  %v312_v23 = vshll.u32 %v3976_v60, 16  ;;  %v413_v24 = vshrl.u32 %v3979_v61, 16  ;;  %996 = vmatpush.bf16.msrb.mxu1 %v3455_v14 }
  0x47   : > { %v4000_v26 = vpack.c.b16 %v666_v3, %v665_v0  ;;  %v593_v27 = vsel %vm3739_vm2, %v588_v6, %v592_v50  ;;  %v298_v28 = vrot.slane %v296_v8, 5  ;;  %v304_v29 = vrot.slane %v302_v9, 5  ;;  %v4033_v6 = vld [vmem:[%s3724_s23 + $0x88] sm:$0xf] }
  0x48   : > { %v603_v35 = vsel %vm3739_vm2, %v598_v20, %v602_v58  ;;  %v673_v37 = vunpack.c.l.b16 %v593_v27  ;;  %v308_v39 = vrot.slane %v306_v22, 4  ;;  %v314_v40 = vrot.slane %v312_v23, 5  ;;  %1346 = vmatpush.bf16.msrb.mxu2 %v3470_v25  ;;  %v3486_v20 = vld [vmem:[%s4822_s1 + $0x100] sm:$0xff] }
  0x49   : > { %v674_v48 = vunpack.c.l.b16 %v603_v35  ;;  %v299_v50 = vor.u32 %v298_v28, %v295_v2  ;;  %v415_v51 = vrot.slane %v413_v24, 4  ;;  %v416_v53 = vshll.u32 %v3979_v61, 16  ;;  %1538 = vmatpush.bf16.msrb.mxu3 %v3478_v44  ;;  %1751 = vmatpush.bf16.msrb.mxu0 %v3487_v45  ;;  %v4043_v24 = vld [vmem:[%s3724_s23 + $0x8c] sm:$0x1]  ;;  %v4047_v28 = vld [vmem:[%s3724_s23 + $0xb4] sm:$0xf] }
  0x4a   : > { %v309_v57 = vor.u32 %v308_v39, %v304_v29  ;;  %v422_v58 = vshll.u32 %v4005_v32, 16  ;;  %v426_v63 = vshrl.u32 %v4005_v32, 16  ;;  %v432_v0 = vshll.u32 %v4008_v33, 16  ;;  %4864 = vst [vmem:[#allocation7_spill] sm:$0xff] %v4047_v28  ;;  %997 = vmatpush.bf16.msrb.mxu1 %v3454_v56 }
  0x4b   : > { %795 = vmatmul.bf16.gmra.mxu1 %v3971_v55  ;;  %815 = vmatmul.bf16.gmra.mxu2 %v4000_v26  ;;  %v4030_v1 = vpack.c.b16 %v674_v48, %v673_v37  ;;  %v300_v2 = vrot.slane %v299_v50, 4  ;;  %v418_v3 = vrot.slane %v416_v53, 5  ;;  %v509_v8 = vshrl.u32 %v4013_v43, 16 }
  0x4c   : > { %v310_v9 = vrot.slane %v309_v57, 4  ;;  %v424_v11 = vrot.slane %v422_v58, 5  ;;  %v428_v13 = vrot.slane %v426_v63, 4  ;;  %v434_v14 = vrot.slane %v432_v0, 5  ;;  %v4055_v58 = vld [vmem:[%s3724_s23 + $0xb8] sm:$0xf] }
  0x4d   : > { %4863 = vst [vmem:[#allocation6_spill] sm:$0xff] %v4030_v1  ;;  %835 = vmatmul.bf16.gmra.mxu3 %v4030_v1  ;;  %v305_v22 = vsel %vm3739_vm2, %v300_v2, %v304_v29  ;;  %v419_v23 = vor.u32 %v418_v3, %v415_v51  ;;  %v511_v25 = vrot.slane %v509_v8, 4  ;;  %v512_v27 = vshll.u32 %v4013_v43, 16  ;;  %1752 = vmatpush.bf16.msrb.mxu0 %v3486_v20  ;;  %v4063_v3 = vld [vmem:[%s3724_s23 + $0xbc] sm:$0x1] }
  0x4e   : > { %v315_v35 = vsel %vm3739_vm2, %v310_v9, %v314_v40  ;;  %v649_v37 = vunpack.c.l.b16 %v305_v22  ;;  %v429_v39 = vor.u32 %v428_v13, %v424_v11  ;;  %v518_v44 = vshll.u32 %v4033_v6, 16  ;;  %4865 = vst [vmem:[#allocation8_spill] sm:$0xff] %v4055_v58  ;;  %v4066_v8 = vld [vmem:[%s3724_s23 + $0x24] sm:$0xf]  ;;  %v3509_v9 = vld [vmem:[%s4822_s1 + $0x1b8] sm:$0xff] }
  0x4f   : > { %v650_v29 = vunpack.c.l.b16 %v315_v35  ;;  %v420_v45 = vrot.slane %v419_v23, 4  ;;  %v514_v48 = vrot.slane %v512_v27, 5  ;;  %v522_v50 = vshrl.u32 %v4033_v6, 16  ;;  %4866 = vst [vmem:[#allocation9_spill] sm:$0xff] %v4063_v3  ;;  %2135 = vmatpush.bf16.msra.mxu2 %v3509_v9 }
  0x50   : > { %v430_v51 = vrot.slane %v429_v39, 4  ;;  %v520_v53 = vrot.slane %v518_v44, 5  ;;  %v528_v57 = vshll.u32 %v4043_v24, 16  ;;  %v605_v56 = vshrl.u32 %v4047_v28, 16 }
  0x51   : > { %v4058_v40 = vpack.c.b16 %v650_v29, %v649_v37  ;;  %v425_v63 = vsel %vm3739_vm2, %v420_v45, %v424_v11  ;;  %v515_v0 = vor.u32 %v514_v48, %v511_v25  ;;  %v524_v2 = vrot.slane %v522_v50, 4  ;;  %v4079_v29 = vld [vmem:[%s3724_s23 + $0x28] sm:$0xf] }
  0x52   : > { %v435_v13 = vsel %vm3739_vm2, %v430_v51, %v434_v14  ;;  %v659_v20 = vunpack.c.l.b16 %v425_v63  ;;  %v530_v22 = vrot.slane %v528_v57, 5  ;;  %v607_v23 = vrot.slane %v605_v56, 4  ;;  %v3517_v57 = vld [vmem:[%s4822_s1 + $0x1f8] sm:$0xff] }
  0x53   : > { %775 = vmatmul.bf16.gmra.mxu0 %v4058_v40  ;;  %v660_v11 = vunpack.c.l.b16 %v435_v13  ;;  %v516_v25 = vrot.slane %v515_v0, 4  ;;  %v525_v27 = vor.u32 %v524_v2, %v520_v53  ;;  %v608_v35 = vshll.u32 %v4047_v28, 16  ;;  %v3501_v56 = vld [vmem:[%s4822_s1 + $0x178] sm:$0xff]  ;;  %2349 = vmatpush.bf16.msra.mxu3 %v3517_v57 }
  0x54   : > { %v614_v37 = vshll.u32 %v4055_v58, 16  ;;  %v618_v39 = vshrl.u32 %v4055_v58, 16  ;;  %v624_v44 = vshll.u32 %v4063_v3, 16  ;;  %v317_v14 = vshrl.u32 %v4066_v8, 16  ;;  %v3525_v63 = vld [vmem:[%s4822_s1 + $0x238] sm:$0xff]  ;;  %1943 = vmatpush.bf16.msra.mxu1 %v3501_v56 }
  0x55   : > { %v4082_v45 = vpack.c.b16 %v660_v11, %v659_v20  ;;  %v521_v48 = vsel %vm3739_vm2, %v516_v25, %v520_v53  ;;  %v526_v50 = vrot.slane %v525_v27, 4  ;;  %v610_v51 = vrot.slane %v608_v35, 5  ;;  %v4096_v20 = vld [vmem:[%s3724_s23 + $0x2c] sm:$0x1]  ;;  %2547 = vmatpush.bf16.msra.mxu0 %v3525_v63 }
  0x56   : > { %v667_v0 = vunpack.c.l.b16 %v521_v48  ;;  %v616_v2 = vrot.slane %v614_v37, 5  ;;  %v620_v9 = vrot.slane %v618_v39, 4  ;;  %v626_v13 = vrot.slane %v624_v44, 5 }
  0x57   : > { %4867 = vst [vmem:[#allocation10_spill] sm:$0xff] %v4082_v45  ;;  %v531_v53 = vsel %vm3739_vm2, %v526_v50, %v530_v22  ;;  %v611_v11 = vor.u32 %v610_v51, %v607_v23  ;;  %v319_v25 = vrot.slane %v317_v14, 4  ;;  %v320_v27 = vshll.u32 %v4066_v8, 16 }
  0x58   : > { %v668_v35 = vunpack.c.l.b16 %v531_v53  ;;  %v621_v3 = vor.u32 %v620_v9, %v616_v2  ;;  %v326_v28 = vshll.u32 %v4079_v29, 16  ;;  %v330_v48 = vshrl.u32 %v4079_v29, 16 }
  0x59   : > { %v612_v37 = vrot.slane %v611_v11, 4  ;;  %v322_v39 = vrot.slane %v320_v27, 5  ;;  %v336_v44 = vshll.u32 %v4096_v20, 16  ;;  %v1103_v11 = vrot.slane %v3768_v4, 5 }
  0x5a   : > { %v4104_v58 = vpack.c.b16 %v668_v35, %v667_v0  ;;  %v622_v22 = vrot.slane %v621_v3, 4  ;;  %v328_v23 = vrot.slane %v326_v28, 5  ;;  %v332_v14 = vrot.slane %v330_v48, 4 }
  0x5b   : > { %800 = vmatmul.bf16.gmra.mxu1 %v4082_v45  ;;  %v617_v50 = vsel %vm3739_vm2, %v612_v37, %v616_v2  ;;  %v323_v51 = vor.u32 %v322_v39, %v319_v25  ;;  %v338_v57 = vrot.slane %v336_v44, 5  ;;  %v4868_v0 = vmov 0 }
  0x5c   : > { %820 = vmatmul.bf16.gmra.mxu2 %v4104_v58  ;;  %v627_v56 = vsel %vm3739_vm2, %v622_v22, %v626_v13  ;;  %v675_v63 = vunpack.c.l.b16 %v617_v50  ;;  %v333_v9 = vor.u32 %v332_v14, %v328_v23  ;;  %v4869_v0 = vsel %vm4112_vm5, 4294967295, %v4868_v0 }
  0x5d   : > { %4870 = vst [vmem:[#allocation11_spill] sm:$0xff] %v4869_v0  ;;  %v3071_v28 = vrot.slane %v3752_v49, 9  ;;  %v676_v3 = vunpack.c.l.b16 %v627_v56  ;;  %v324_v53 = vrot.slane %v323_v51, 4  ;;  %v1100_v2 = vrot.slane %v3762_v62, 5 }
  0x5e   : > { %v334_v25 = vrot.slane %v333_v9, 4  ;;  %v3072_v27 = vrot.slane %v3835_v18, 9  ;;  %v1107_v35 = vrot.slane %v3847_v34, 5  ;;  %v1110_v13 = vrot.slane %v3858_v42, 5  ;;  %v3436_v9 = vld [vmem:[%s3724_s23] sm:$0xff] }
  0x5f   : > { %v4122_v48 = vpack.c.b16 %v676_v3, %v675_v63  ;;  %v329_v37 = vsel %vm3739_vm2, %v324_v53, %v328_v23  ;;  %v1101_v49 = vsel %vm4112_vm5, %v3071_v28, %v1100_v2  ;;  %v1102_v39 = vrot.slane %v1100_v2, 4  ;;  %v3437_v28 = vld [vmem:[%s3724_s23 + $0xc] sm:$0xff] }
  0x60   : > { %v339_v62 = vsel %vm3739_vm2, %v334_v25, %v338_v57  ;;  %v651_v4 = vunpack.c.l.b16 %v329_v37  ;;  %v1227_v44 = vunpack.c.l.b16 %v1101_v49  ;;  %v1108_v18 = vsel %vm4112_vm5, %v3072_v27, %v1107_v35  ;;  %v3508_v3 = vld [vmem:[%s4822_s1 + $0x1b0] sm:$0xff] }
  0x61   : > { %840 = vmatmul.bf16.gmra.mxu3 %v4122_v48  ;;  %v652_v34 = vunpack.c.l.b16 %v339_v62  ;;  %v1104_v42 = vsel %vm4112_vm5, %v1102_v39, %v1103_v11  ;;  %v1109_v22 = vrot.slane %v1107_v35, 4  ;;  %v1229_v14 = vunpack.c.l.b16 %v1108_v18  ;;  %2136 = vmatpush.bf16.msra.mxu2 %v3508_v3  ;;  %v3516_v53 = vld [vmem:[%s4822_s1 + $0x1f0] sm:$0xff] }
  0x62   : > { %v1228_v23 = vunpack.c.l.b16 %v1104_v42  ;;  %v3500_v2 = vld [vmem:[%s4822_s1 + $0x170] sm:$0xff]  ;;  %2350 = vmatpush.bf16.msra.mxu3 %v3516_v53  ;;  %v1114_v25 = vrot.slane %v3968_v52, 5  ;;  %v3073_v27 = vrot.slane %v3960_v31, 9  ;;  %v4176_v31 = vld [vmem:[%s3724_s23 + $0x24] sm:$0xff]  ;;  %v1124_v18 = vrot.slane %v4096_v20, 5 }
  0x63   : > { %v4135_v50 = vpack.c.b16 %v652_v34, %v651_v4  ;;  %v1111_v51 = vsel %vm4112_vm5, %v1109_v22, %v1110_v13  ;;  %v3524_v11 = vld [vmem:[%s4822_s1 + $0x230] sm:$0xff]  ;;  %1944 = vmatpush.bf16.msra.mxu1 %v3500_v2  ;;  %v1117_v13 = vrot.slane %v3976_v60, 5  ;;  %v1121_v4 = vrot.slane %v4079_v29, 5  ;;  %v3507_v42 = vld [vmem:[%s4822_s1 + $0x1a8] sm:$0xff]  ;;  %v3657_v2 = vld [vmem:[%s3724_s23 + $0x38] sm:$0x1] }
  0x64   : > { %v1259_v57 = vpack.c.b16 %v1228_v23, %v1227_v44  ;;  %v1230_v56 = vunpack.c.l.b16 %v1111_v51  ;;  %2548 = vmatpush.bf16.msra.mxu0 %v3524_v11  ;;  %v1116_v35 = vrot.slane %v1114_v25, 4  ;;  %v1115_v37 = vsel %vm4112_vm5, %v3073_v27, %v1114_v25  ;;  %v3515_v20 = vld [vmem:[%s4822_s1 + $0x1e8] sm:$0xff] }
  0x65   : > { %780 = vmatmul.bf16.gmra.mxu0 %v4135_v50  ;;  %v1231_v52 = vunpack.c.l.b16 %v1115_v37  ;;  %v3074_v60 = vrot.slane %v4066_v8, 9  ;;  %v1123_v44 = vrot.slane %v1121_v4, 4  ;;  %2137 = vmatpush.bf16.msra.mxu2 %v3507_v42  ;;  %v3499_v23 = vld [vmem:[%s4822_s1 + $0x168] sm:$0xff]  ;;  %v1131_v11 = vrot.slane %v3657_v2, 5 }
  0x66   : > { %v4140_v63 = vpack.c.b16 %v1230_v56, %v1229_v14  ;;  %v1118_v49 = vsel %vm4112_vm5, %v1116_v35, %v1117_v13  ;;  %v3523_v14 = vld [vmem:[%s4822_s1 + $0x228] sm:$0xff]  ;;  %2351 = vmatpush.bf16.msra.mxu3 %v3515_v20  ;;  %v1142_v2 = vrot.slane %v3888_v10, 5 }
  0x67   : > { %v1232_v39 = vunpack.c.l.b16 %v1118_v49  ;;  %v1122_v34 = vsel %vm4112_vm5, %v3074_v60, %v1121_v4  ;;  %v1125_v29 = vsel %vm4112_vm5, %v1123_v44, %v1124_v18  ;;  %1945 = vmatpush.bf16.msra.mxu1 %v3499_v23  ;;  %v4224_v4 = vld [vmem:[%s3724_s23 + $0x3c] sm:$0xff]  ;;  %v3076_v60 = vrot.slane %v3771_v5, 9 }
  0x68   : > { %v1233_v8 = vunpack.c.l.b16 %v1122_v34  ;;  %v1234_v22 = vunpack.c.l.b16 %v1125_v29  ;;  %2549 = vmatpush.bf16.msra.mxu0 %v3523_v14  ;;  %v1138_v18 = vrot.slane %v3788_v19, 5  ;;  %v3506_v5 = vld [vmem:[%s4822_s1 + $0x1a0] sm:$0xff] }
  0x69   : > { %v4170_v62 = vpack.c.b16 %v1232_v39, %v1231_v52  ;;  %v1135_v52 = vrot.slane %v3782_v15, 5  ;;  %2138 = vmatpush.bf16.msra.mxu2 %v3506_v5  ;;  %v3514_v23 = vld [vmem:[%s4822_s1 + $0x1e0] sm:$0xff] }
  0x6a   : > { %v4198_v51 = vpack.c.b16 %v1234_v22, %v1233_v8  ;;  %v3498_v14 = vld [vmem:[%s4822_s1 + $0x160] sm:$0xff]  ;;  %2352 = vmatpush.bf16.msra.mxu3 %v3514_v23  ;;  %v1149_v23 = vrot.slane %v4005_v32, 5 }
  0x6b   : > { %998 = vmatmul.bf16.vlgmr.msrb.gmra.mxu1 %v3436_v9  ;;  %v4204_v9 = vld [vmem:[%s3724_s23 + $0x30] sm:$0xff]  ;;  %v1137_v44 = vrot.slane %v1135_v52, 4  ;;  %v1136_v15 = vsel %vm4112_vm5, %v3076_v60, %v1135_v52 }
  0x6c   : > { %1347 = vmatmul.bf16.vlgmr.msrb.gmra.mxu2 %v1259_v57  ;;  %v3655_v57 = vld [vmem:[%s3724_s23 + $0x34] sm:$0xf]  ;;  %v1237_v19 = vunpack.c.l.b16 %v1136_v15  ;;  %1946 = vmatpush.bf16.msra.mxu1 %v3498_v14 }
  0x6d   : > { %v1128_v56 = vrot.slane %v3655_v57, 5  ;;  %v1139_v8 = vsel %vm4112_vm5, %v1137_v44, %v1138_v18  ;;  %v4298_v14 = vld [vmem:[%s3724_s23 + $0x54] sm:$0xff] }
  0x6e   : > { %v1238_v20 = vunpack.c.l.b16 %v1139_v8  ;;  %4878 = vst [vmem:[#allocation19_spill] sm:$0xff] %v4298_v14 }
  0x6f   : > { %v1130_v53 = vrot.slane %v1128_v56, 4 }
  0x71   : > { %1539 = vmatmul.bf16.vlgmr.msrb.gmra.mxu3 %v3437_v28  ;;  %v1132_v27 = vsel %vm4112_vm5, %v1130_v53, %v1131_v11  ;;  %v3522_v53 = vld [vmem:[%s4822_s1 + $0x220] sm:$0xff] }
  0x72   : > { %v1236_v13 = vunpack.c.l.b16 %v1132_v27  ;;  %2550 = vmatpush.bf16.msra.mxu0 %v3522_v53  ;;  %v3077_v27 = vrot.slane %v3869_v54, 9  ;;  %v3078_v53 = vrot.slane %v3979_v61, 9 }
  0x74   : > { %v1143_v44 = vsel %vm4112_vm5, %v3077_v27, %v1142_v2  ;;  %v1152_v27 = vrot.slane %v4008_v33, 5  ;;  %v3505_v33 = vld [vmem:[%s4822_s1 + $0x198] sm:$0xff] }
  0x75   : > { %1753 = vmatmul.bf16.vlgmr.msrb.gmra.mxu0 %v3949_v7  ;;  %v4160_v7 = vld [vmem:[%s3724_s23 + $0x18] sm:$0xff]  ;;  %v1239_v15 = vunpack.c.l.b16 %v1143_v44  ;;  %2139 = vmatpush.bf16.msra.mxu2 %v3505_v33 }
  0x7b   : > { %1003 = vmatmul.bf16.gmra.mxu1 %v3437_v28  ;;  %v3656_v28 = vld [vmem:[%s3724_s23 + $0x30] sm:$0xf] }
  0x7c   : > { %1352 = vmatmul.bf16.gmra.mxu2 %v4140_v63  ;;  %v3075_v3 = vrot.slane %v3656_v28, 9 }
  0x7e   : > { %v1129_v25 = vsel %vm4112_vm5, %v3075_v3, %v1128_v56  ;;  %v4257_v3 = vpack.c.b16 %v1238_v20, %v1237_v19 }
  0x7f   : > { %v1235_v35 = vunpack.c.l.b16 %v1129_v25  ;;  %v4268_v25 = vld [vmem:[%s3724_s23 + $0x48] sm:$0xff] }
  0x80   : > { %4873 = vst [vmem:[#allocation14_spill] sm:$0xff] %v4257_v3 }
  0x81   : > { %1544 = vmatmul.bf16.gmra.mxu3 %v4160_v7  ;;  %v4216_v49 = vpack.c.b16 %v1236_v13, %v1235_v35  ;;  %4874 = vst [vmem:[#allocation15_spill] sm:$0xff] %v4268_v25  ;;  %v1144_v35 = vrot.slane %v1142_v2, 4  ;;  %v1145_v13 = vrot.slane %v3896_v17, 5  ;;  %v1151_v2 = vrot.slane %v1149_v23, 4 }
  0x83   : > { %v1146_v18 = vsel %vm4112_vm5, %v1144_v35, %v1145_v13  ;;  %v1153_v61 = vsel %vm4112_vm5, %v1151_v2, %v1152_v27 }
  0x84   : > { %v1240_v54 = vunpack.c.l.b16 %v1146_v18  ;;  %v1150_v18 = vsel %vm4112_vm5, %v3078_v53, %v1149_v23  ;;  %v3497_v23 = vld [vmem:[%s4822_s1 + $0x158] sm:$0xff] }
  0x85   : > { %1758 = vmatmul.bf16.gmra.mxu0 %v4058_v40  ;;  %1947 = vmatpush.bf16.msra.mxu1 %v3497_v23  ;;  %v3659_v23 = vld [vmem:[%s3724_s23 + $0x60] sm:$0xf] }
  0x86   : > { %v4292_v20 = vpack.c.b16 %v1240_v54, %v1239_v15  ;;  %v1241_v15 = vunpack.c.l.b16 %v1150_v18  ;;  %v1242_v54 = vunpack.c.l.b16 %v1153_v61  ;;  %v3658_v61 = vld [vmem:[%s3724_s23 + $0x64] sm:$0xf] }
  0x87   : > { %v1156_v33 = vrot.slane %v3658_v61, 5 }
  0x88   : > { %4877 = vst [vmem:[#allocation18_spill] sm:$0xff] %v4292_v20  ;;  %v4329_v27 = vpack.c.b16 %v1242_v54, %v1241_v15  ;;  %v3079_v15 = vrot.slane %v3659_v23, 9 }
  0x89   : > { %v1158_v54 = vrot.slane %v1156_v33, 4 }
  0x8a   : > { %4880 = vst [vmem:[#allocation21_spill] sm:$0xff] %v4329_v27 }
  0x8b   : > { %1008 = vmatmul.bf16.gmra.mxu1 %v4160_v7 }
  0x8c   : > { %1357 = vmatmul.bf16.gmra.mxu2 %v4170_v62 }
  0x91   : > { %1549 = vmatmul.bf16.gmra.mxu3 %v4176_v31 }
  0x95   : > { %1763 = vmatmul.bf16.gmra.mxu0 %v4135_v50 }
  0x9b   : > { %1013 = vmatmul.bf16.gmra.mxu1 %v4176_v31 }
  0x9c   : > { %1362 = vmatmul.bf16.gmra.mxu2 %v4198_v51 }
  0xa1   : > { %1554 = vmatmul.bf16.gmra.mxu3 %v4204_v9 }
  0xa5   : > { %1768 = vmatmul.bf16.gmra.mxu0 %v3757_v59 }
  0xa8   : > { %v4214_v37 = vpop.f32.mrf.mxu1 }
  0xab   : > { %v4219_v39 = vpop.f32.mrf.mxu0  ;;  %1018 = vmatmul.bf16.gmra.mxu1 %v4204_v9 }
  0xac   : > { %1367 = vmatmul.bf16.gmra.mxu2 %v4216_v49 }
  0xae   : > { %v4228_v34 = vpop.f32.mrf.mxu2 }
  0xaf   : > { %v4230_v29 = vpop.f32.mrf.mxu3 }
  0xb0   : > { %4871 = vst [vmem:[#allocation12_spill] sm:$0xff] %v4230_v29  ;;  %v4232_v42 = vpop.f32.mrf.mxu1 }
  0xb1   : > { %1559 = vmatmul.bf16.gmra.mxu3 %v4224_v4 }
  0xb3   : > { %v4242_v22 = vpop.f32.mrf.mxu0 }
  0xb5   : > { %1773 = vmatmul.bf16.gmra.mxu0 %v3853_v38 }
  0xb6   : > { %v4251_v57 = vpop.f32.mrf.mxu2 }
  0xb7   : > { %v4253_v56 = vpop.f32.mrf.mxu3 }
  0xb8   : > { %4872 = vst [vmem:[#allocation13_spill] sm:$0xff] %v4253_v56  ;;  %v4255_v28 = vpop.f32.mrf.mxu1 }
  0xbb   : > { %1023 = vmatmul.bf16.gmra.mxu1 %v4224_v4 }
  0xbc   : > { %v4264_v11 = vpop.f32.mrf.mxu0  ;;  %1372 = vmatmul.bf16.gmra.mxu2 %v4257_v3 }
  0xbe   : > { %v4272_v52 = vpop.f32.mrf.mxu2 }
  0xbf   : > { %v4274_v60 = vpop.f32.mrf.mxu3 }
  0xc0   : > { %4875 = vst [vmem:[#allocation16_spill] sm:$0xff] %v4274_v60  ;;  %v4276_v10 = vpop.f32.mrf.mxu1  ;;  %v3660_v60 = vld [vmem:[%s3724_s23 + $0x68] sm:$0x1] }
  0xc1   : > { %1564 = vmatmul.bf16.gmra.mxu3 %v4268_v25  ;;  %v1159_v56 = vrot.slane %v3660_v60, 5 }
  0xc4   : > { %v4284_v17 = vpop.f32.mrf.mxu0 }
  0xc5   : > { %1778 = vmatmul.bf16.gmra.mxu0 %v3971_v55 }
  0xc6   : > { %v4286_v8 = vpop.f32.mrf.mxu2 }
  0xc7   : > { %v4288_v5 = vpop.f32.mrf.mxu3 }
  0xc8   : > { %4876 = vst [vmem:[#allocation17_spill] sm:$0xff] %v4288_v5  ;;  %v4290_v19 = vpop.f32.mrf.mxu1 }
  0xcb   : > { %1028 = vmatmul.bf16.gmra.mxu1 %v4268_v25 }
  0xcc   : > { %1377 = vmatmul.bf16.gmra.mxu2 %v4292_v20 }
  0xce   : > { %v4302_v35 = vpop.f32.mrf.mxu2 }
  0xd0   : > { %v4304_v13 = vpop.f32.mrf.mxu0  ;;  %v4306_v44 = vpop.f32.mrf.mxu3 }
  0xd1   : > { %4879 = vst [vmem:[#allocation20_spill] sm:$0xff] %v4306_v44  ;;  %1569 = vmatmul.bf16.gmra.mxu3 %v4298_v14  ;;  %v4309_v32 = vpop.f32.mrf.mxu1  ;;  %v3513_v44 = vld [vmem:[%s4822_s1 + $0x1d8] sm:$0xff] }
  0xd2   : > { %2353 = vmatpush.bf16.msra.mxu3 %v3513_v44  ;;  %v4342_v44 = vld [vmem:[%s3724_s23 + $0x60] sm:$0xff] }
  0xd3   : > { %4882 = vst [vmem:[#allocation23_spill] sm:$0xff] %v4342_v44 }
  0xd5   : > { %1783 = vmatmul.bf16.gmra.mxu0 %v4082_v45  ;;  %v3521_v45 = vld [vmem:[%s4822_s1 + $0x218] sm:$0xff] }
  0xd6   : > { %v4325_v53 = vpop.f32.mrf.mxu2  ;;  %2551 = vmatpush.bf16.msra.mxu0 %v3521_v45  ;;  %v1160_v45 = vsel %vm4112_vm5, %v1158_v54, %v1159_v56 }
  0xd7   : > { %v1244_v60 = vunpack.c.l.b16 %v1160_v45  ;;  %v3662_v45 = vld [vmem:[%s3724_s23 + $0x6c] sm:$0xf] }
  0xd8   : > { %v4327_v2 = vpop.f32.mrf.mxu0  ;;  %v4334_v5 = vpop.f32.mrf.mxu3 }
  0xd9   : > { %v4331_v18 = vpop.f32.mrf.mxu1  ;;  %4881 = vst [vmem:[#allocation22_spill] sm:$0xff] %v4334_v5 }
  0xdb   : > { %1033 = vmatmul.bf16.gmra.mxu1 %v4298_v14  ;;  %v1157_v14 = vsel %vm4112_vm5, %v3079_v15, %v1156_v33  ;;  %v3661_v33 = vld [vmem:[%s3724_s23 + $0x70] sm:$0xf] }
  0xdc   : > { %1382 = vmatmul.bf16.gmra.mxu2 %v4329_v27  ;;  %v1243_v20 = vunpack.c.l.b16 %v1157_v14  ;;  %v1163_v15 = vrot.slane %v3661_v33, 5  ;;  %v4373_v14 = vld [vmem:[%s3724_s23 + $0x6c] sm:$0xff] }
  0xde   : > { %v4362_v29 = vpack.c.b16 %v1244_v60, %v1243_v20  ;;  %v3663_v20 = vld [vmem:[%s3724_s23 + $0x74] sm:$0x1] }
  0xdf   : > { %v4346_v61 = vpop.f32.mrf.mxu2  ;;  %v1166_v60 = vrot.slane %v3663_v20, 5 }
  0xe0   : > { %4883 = vst [vmem:[#allocation24_spill] sm:$0xff] %v4346_v61 }
  0xe1   : > { %1574 = vmatmul.bf16.gmra.mxu3 %v4342_v44  ;;  %v4349_v5 = vpop.f32.mrf.mxu1  ;;  %4886 = vst [vmem:[#allocation27_spill] sm:$0xff] %v4362_v29 }
  0xe2   : > { %v4355_v27 = vpop.f32.mrf.mxu0 }
  0xe4   : > { %v4357_v23 = vpop.f32.mrf.mxu3 }
  0xe5   : > { %4884 = vst [vmem:[#allocation25_spill] sm:$0xff] %v4357_v23  ;;  %1788 = vmatmul.bf16.gmra.mxu0 %v3784_v16  ;;  %v3080_v23 = vrot.slane %v3662_v45, 9  ;;  %v1165_v16 = vrot.slane %v1163_v15, 4  ;;  %v3504_v45 = vld [vmem:[%s4822_s1 + $0x190] sm:$0xff] }
  0xe6   : > { %2140 = vmatpush.bf16.msra.mxu2 %v3504_v45 }
  0xe7   : > { %v4360_v55 = vpop.f32.mrf.mxu2 }
  0xe8   : > { %4885 = vst [vmem:[#allocation26_spill] sm:$0xff] %v4360_v55 }
  0xe9   : > { %v999_v25 = vpop.f32.mrf.mxu1 }
  0xea   : > { %v4365_v3 = vpop.f32.mrf.mxu0  ;;  %v1000_v56 = vadd.f32 %v999_v25, %v4219_v39  ;;  %v1164_v39 = vsel %vm4112_vm5, %v3080_v23, %v1163_v15  ;;  %v1167_v25 = vsel %vm4112_vm5, %v1165_v16, %v1166_v60  ;;  %v3512_v23 = vld [vmem:[%s4822_s1 + $0x1d0] sm:$0xff] }
  0xeb   : > { %1038 = vmatmul.bf16.gmra.mxu1 %v4342_v44  ;;  %v1245_v20 = vunpack.c.l.b16 %v1164_v39  ;;  %v1246_v61 = vunpack.c.l.b16 %v1167_v25  ;;  %v3496_v16 = vld [vmem:[%s4822_s1 + $0x150] sm:$0xff]  ;;  %2354 = vmatpush.bf16.msra.mxu3 %v3512_v23 }
  0xec   : > { %v4369_v54 = vpop.f32.mrf.mxu3  ;;  %1387 = vmatmul.bf16.gmra.mxu2 %v4362_v29  ;;  %1948 = vmatpush.bf16.msra.mxu1 %v3496_v16  ;;  %v3520_v25 = vld [vmem:[%s4822_s1 + $0x210] sm:$0xff] }
  0xed   : > { %4887 = vst [vmem:[#allocation28_spill] sm:$0xff] %v4369_v54  ;;  %v4395_v60 = vpack.c.b16 %v1246_v61, %v1245_v20  ;;  %2552 = vmatpush.bf16.msra.mxu0 %v3520_v25  ;;  %v3081_v61 = vrot.slane %v3900_v21, 9 }
  0xef   : > { %v1348_v55 = vpop.f32.mrf.mxu2 }
  0xf0   : > { %v1428_v38 = vadd.f32 %v1348_v55, %v1000_v56 }
  0xf1   : > { %1579 = vmatmul.bf16.gmra.mxu3 %v4373_v14  ;;  %v1001_v33 = vpop.f32.mrf.mxu1 }
  0xf2   : > { %v1754_v54 = vpop.f32.mrf.mxu0  ;;  %v1002_v29 = vadd.f32 %v1001_v33, %v4242_v22 }
  0xf4   : > { %v1540_v44 = vpop.f32.mrf.mxu3 }
  0xf5   : > { %1793 = vmatmul.bf16.gmra.mxu0 %v3891_v12  ;;  %v1620_v55 = vadd.f32 %v1540_v44, %v1428_v38  ;;  %v1170_v38 = vrot.slane %v3922_v46, 5  ;;  %v1173_v46 = vrot.slane %v3925_v47, 5 }
  0xf7   : > { %v1350_v22 = vpop.f32.mrf.mxu2  ;;  %v4393_v15 = vadd.f32 %v1754_v54, %v1620_v55  ;;  %v1172_v20 = vrot.slane %v1170_v38, 4 }
  0xf8   : > { %v1429_v56 = vadd.f32 %v1350_v22, %v1002_v29  ;;  %v4405_v29 = vld [vmem:[%s3724_s23 + $0x78] sm:$0xff]  ;;  %v1171_v22 = vsel %vm4112_vm5, %v3081_v61, %v1170_v38  ;;  %v1177_v61 = vrot.slane %v4033_v6, 5 }
  0xf9   : > { %v1004_v33 = vpop.f32.mrf.mxu1 }
  0xfa   : > { %v1756_v44 = vpop.f32.mrf.mxu0  ;;  %v1005_v39 = vadd.f32 %v1004_v33, %v4264_v11 }
  0xfb   : > { %1043 = vmatmul.bf16.gmra.mxu1 %v4373_v14 }
  0xfc   : > { %v1542_v45 = vpop.f32.mrf.mxu3  ;;  %1392 = vmatmul.bf16.gmra.mxu2 %v4395_v60 }
  0xfd   : > { %v1621_v54 = vadd.f32 %v1542_v45, %v1429_v56  ;;  %v1174_v56 = vsel %vm4112_vm5, %v1172_v20, %v1173_v46  ;;  %v1247_v45 = vunpack.c.l.b16 %v1171_v22  ;;  %v4427_v22 = vld [vmem:[%s3724_s23 + $0x84] sm:$0xff] }
  0xfe   : > { %v1248_v47 = vunpack.c.l.b16 %v1174_v56  ;;  %v1179_v56 = vrot.slane %v1177_v61, 4 }
  0xff   : > { %v1353_v55 = vpop.f32.mrf.mxu2  ;;  %v4409_v11 = vadd.f32 %v1756_v44, %v1621_v54 }
 0x100   : > { %v1430_v23 = vadd.f32 %v1353_v55, %v1005_v39 }
 0x101   : > { %4888 = vst [vmem:[#allocation29_spill] sm:$0xff] %v4409_v11  ;;  %1584 = vmatmul.bf16.gmra.mxu3 %v4405_v29  ;;  %v1006_v16 = vpop.f32.mrf.mxu1  ;;  %v4420_v11 = vpack.c.b16 %v1248_v47, %v1247_v45 }
 0x102   : > { %v1759_v33 = vpop.f32.mrf.mxu0  ;;  %v1007_v25 = vadd.f32 %v1006_v16, %v4284_v17 }
 0x104   : > { %v1545_v21 = vpop.f32.mrf.mxu3 }
 0x105   : > { %1798 = vmatmul.bf16.gmra.mxu0 %v4000_v26  ;;  %v1622_v44 = vadd.f32 %v1545_v21, %v1430_v23  ;;  %v3082_v23 = vrot.slane %v4013_v43, 9  ;;  %v3503_v43 = vld [vmem:[%s4822_s1 + $0x188] sm:$0xff] }
 0x106   : > { %2141 = vmatpush.bf16.msra.mxu2 %v3503_v43  ;;  %v3665_v43 = vld [vmem:[%s3724_s23 + $0x90] sm:$0xf] }
 0x107   : > { %v1355_v39 = vpop.f32.mrf.mxu2  ;;  %v4418_v54 = vadd.f32 %v1759_v33, %v1622_v44  ;;  %v1180_v33 = vrot.slane %v4043_v24, 5  ;;  %v1178_v45 = vsel %vm4112_vm5, %v3082_v23, %v1177_v61  ;;  %v3511_v61 = vld [vmem:[%s4822_s1 + $0x1c8] sm:$0xff] }
 0x108   : > { %v1431_v55 = vadd.f32 %v1355_v39, %v1007_v25  ;;  %2355 = vmatpush.bf16.msra.mxu3 %v3511_v61 }
 0x109   : > { %v1009_v38 = vpop.f32.mrf.mxu1  ;;  %v1181_v47 = vsel %vm4112_vm5, %v1179_v56, %v1180_v33  ;;  %v3664_v33 = vld [vmem:[%s3724_s23 + $0x94] sm:$0xf] }
 0x10a   : > { %v1761_v20 = vpop.f32.mrf.mxu0  ;;  %v1010_v46 = vadd.f32 %v1009_v38, %v4304_v13  ;;  %v1250_v38 = vunpack.c.l.b16 %v1181_v47 }
 0x10b   : > { %1048 = vmatmul.bf16.gmra.mxu1 %v4405_v29 }
 0x10c   : > { %v1547_v17 = vpop.f32.mrf.mxu3  ;;  %1397 = vmatmul.bf16.gmra.mxu2 %v4420_v11 }
 0x10d   : > { %v1623_v16 = vadd.f32 %v1547_v17, %v1431_v55  ;;  %v1249_v55 = vunpack.c.l.b16 %v1178_v45  ;;  %v3519_v45 = vld [vmem:[%s4822_s1 + $0x208] sm:$0xff] }
 0x10e   : > { %2553 = vmatpush.bf16.msra.mxu0 %v3519_v45 }
 0x10f   : > { %v1358_v25 = vpop.f32.mrf.mxu2  ;;  %v4431_v21 = vadd.f32 %v1761_v20, %v1623_v16  ;;  %v4451_v23 = vpack.c.b16 %v1250_v38, %v1249_v55  ;;  %v3666_v38 = vld [vmem:[%s3724_s23 + $0x98] sm:$0x1] }
 0x110   : > { %v1432_v6 = vadd.f32 %v1358_v25, %v1010_v46  ;;  %v1184_v25 = vrot.slane %v3664_v33, 5 }
 0x111   : > { %1589 = vmatmul.bf16.gmra.mxu3 %v4427_v22  ;;  %v1011_v13 = vpop.f32.mrf.mxu1 }
 0x112   : > { %v1764_v44 = vpop.f32.mrf.mxu0  ;;  %v1012_v39 = vadd.f32 %v1011_v13, %v4327_v2  ;;  %v3495_v2 = vld [vmem:[%s4822_s1 + $0x148] sm:$0xff]  ;;  %v1186_v55 = vrot.slane %v1184_v25, 4 }
 0x113   : > { %1949 = vmatpush.bf16.msra.mxu1 %v3495_v2 }
 0x114   : > { %v1550_v24 = vpop.f32.mrf.mxu3 }
 0x115   : > { %1803 = vmatmul.bf16.gmra.mxu0 %v4104_v58  ;;  %v1624_v20 = vadd.f32 %v1550_v24, %v1432_v6  ;;  %v3083_v24 = vrot.slane %v3665_v43, 9 }
 0x117   : > { %v1360_v46 = vpop.f32.mrf.mxu2  ;;  %v4449_v17 = vadd.f32 %v1764_v44, %v1624_v20  ;;  %v1187_v20 = vrot.slane %v3666_v38, 5 }
 0x118   : > { %v1433_v16 = vadd.f32 %v1360_v46, %v1012_v39  ;;  %v4461_v39 = vld [vmem:[%s3724_s23 + $0x90] sm:$0xff] }
 0x119   : > { %v1014_v56 = vpop.f32.mrf.mxu1 }
 0x11a   : > { %v1766_v6 = vpop.f32.mrf.mxu0  ;;  %v1015_v13 = vadd.f32 %v1014_v56, %v4355_v27  ;;  %v1185_v56 = vsel %vm4112_vm5, %v3083_v24, %v1184_v25 }
 0x11b   : > { %1053 = vmatmul.bf16.gmra.mxu1 %v4427_v22  ;;  %v1251_v43 = vunpack.c.l.b16 %v1185_v56  ;;  %v4482_v56 = vld [vmem:[%s3724_s23 + $0x9c] sm:$0xff] }
 0x11c   : > { %v1552_v47 = vpop.f32.mrf.mxu3  ;;  %1402 = vmatmul.bf16.gmra.mxu2 %v4451_v23  ;;  %4892 = vst [vmem:[#allocation33_spill] sm:$0xff] %v4482_v56 }
 0x11d   : > { %v1625_v44 = vadd.f32 %v1552_v47, %v1433_v16  ;;  %v1188_v16 = vsel %vm4112_vm5, %v1186_v55, %v1187_v20  ;;  %v3667_v55 = vld [vmem:[%s3724_s23 + $0xa0] sm:$0xf] }
 0x11e   : > { %v1252_v38 = vunpack.c.l.b16 %v1188_v16  ;;  %v1191_v20 = vrot.slane %v3667_v55, 5 }
 0x11f   : > { %v1363_v61 = vpop.f32.mrf.mxu2  ;;  %v4465_v27 = vadd.f32 %v1766_v6, %v1625_v44 }
 0x120   : > { %v1434_v2 = vadd.f32 %v1363_v61, %v1015_v13  ;;  %v4476_v25 = vpack.c.b16 %v1252_v38, %v1251_v43 }
 0x121   : > { %4889 = vst [vmem:[#allocation30_spill] sm:$0xff] %v4465_v27  ;;  %1594 = vmatmul.bf16.gmra.mxu3 %v4461_v39  ;;  %v1016_v46 = vpop.f32.mrf.mxu1 }
 0x122   : > { %v1769_v33 = vpop.f32.mrf.mxu0  ;;  %v1017_v45 = vadd.f32 %v1016_v46, %v4365_v3  ;;  %4891 = vst [vmem:[#allocation32_spill] sm:$0xff] %v4476_v25 }
 0x124   : > { %v1555_v47 = vpop.f32.mrf.mxu3 }
 0x125   : > { %1808 = vmatmul.bf16.gmra.mxu0 %v3800_v36  ;;  %v1626_v6 = vadd.f32 %v1555_v47, %v1434_v2  ;;  %v3668_v2 = vld [vmem:[%s3724_s23 + $0x9c] sm:$0xf]  ;;  %v1193_v47 = vrot.slane %v1191_v20, 4 }
 0x126   : > { %v3084_v16 = vrot.slane %v3668_v2, 9  ;;  %v3502_v2 = vld [vmem:[%s4822_s1 + $0x180] sm:$0xff] }
 0x127   : > { %v1365_v13 = vpop.f32.mrf.mxu2  ;;  %v4474_v44 = vadd.f32 %v1769_v33, %v1626_v6  ;;  %v3669_v33 = vld [vmem:[%s3724_s23 + $0xa4] sm:$0x1]  ;;  %2142 = vmatpush.bf16.msra.mxu2 %v3502_v2 }
 0x128   : > { %v1435_v61 = vadd.f32 %v1365_v13, %v1017_v45  ;;  %v1194_v6 = vrot.slane %v3669_v33, 5 }
 0x129   : > { %4890 = vst [vmem:[#allocation31_spill] sm:$0xff] %v4474_v44  ;;  %v1019_v24 = vpop.f32.mrf.mxu1  ;;  %v1192_v44 = vsel %vm4112_vm5, %v3084_v16, %v1191_v20  ;;  %v3510_v20 = vld [vmem:[%s4822_s1 + $0x1c0] sm:$0xff] }
 0x12a   : > { %v1771_v27 = vpop.f32.mrf.mxu0  ;;  %v1020_v45 = vadd.f32 %v1019_v24, %v4214_v37  ;;  %v1253_v37 = vunpack.c.l.b16 %v1192_v44  ;;  %2356 = vmatpush.bf16.msra.mxu3 %v3510_v20  ;;  %v3672_v20 = vld [vmem:[%s3724_s23 + $0xb0] sm:$0x1] }
 0x12b   : > { %1058 = vmatmul.bf16.gmra.mxu1 %v4461_v39 }
 0x12c   : > { %v1557_v3 = vpop.f32.mrf.mxu3  ;;  %1407 = vmatmul.bf16.gmra.mxu2 %v4476_v25  ;;  %v4554_v25 = vld [vmem:[%s3724_s23 + $0xc8] sm:$0x1] }
 0x12d   : > { %v1627_v46 = vadd.f32 %v1557_v3, %v1435_v61  ;;  %v1195_v61 = vsel %vm4112_vm5, %v1193_v47, %v1194_v6 }
 0x12f   : > { %v1368_v43 = vpop.f32.mrf.mxu2  ;;  %v4487_v38 = vadd.f32 %v1771_v27, %v1627_v46  ;;  %v1254_v27 = vunpack.c.l.b16 %v1195_v61  ;;  %v3494_v46 = vld [vmem:[%s4822_s1 + $0x140] sm:$0xff] }
 0x130   : > { %v1436_v13 = vadd.f32 %v1368_v43, %v1020_v45  ;;  %1950 = vmatpush.bf16.msra.mxu1 %v3494_v46  ;;  %v1201_v46 = vrot.slane %v3672_v20, 5 }
 0x131   : > { %4893 = vst [vmem:[#allocation34_spill] sm:$0xff] %v4487_v38  ;;  %1599 = vmatmul.bf16.gmra.mxu3 %v4482_v56  ;;  %v1021_v55 = vpop.f32.mrf.mxu1  ;;  %v4507_v45 = vpack.c.b16 %v1254_v27, %v1253_v37 }
 0x132   : > { %v1774_v3 = vpop.f32.mrf.mxu0  ;;  %v1022_v16 = vadd.f32 %v1021_v55, %v4232_v42 }
 0x133   : > { %4895 = vst [vmem:[#allocation36_spill] sm:$0xff] %v4507_v45 }
 0x134   : > { %v1560_v33 = vpop.f32.mrf.mxu3 }
 0x135   : > { %1813 = vmatmul.bf16.gmra.mxu0 %v3917_v41  ;;  %v1628_v24 = vadd.f32 %v1560_v33, %v1436_v13  ;;  %v3670_v13 = vld [vmem:[%s3724_s23 + $0xac] sm:$0xf]  ;;  %v3518_v33 = vld [vmem:[%s4822_s1 + $0x200] sm:$0xff] }
 0x136   : > { %v1198_v61 = vrot.slane %v3670_v13, 5  ;;  %2554 = vmatpush.bf16.msra.mxu0 %v3518_v33 }
 0x137   : > { %v1370_v47 = vpop.f32.mrf.mxu2  ;;  %v4505_v44 = vadd.f32 %v1774_v3, %v1628_v24  ;;  %v4516_v3 = vld [vmem:[%s3724_s23 + $0xa8] sm:$0xff] }
 0x138   : > { %v1437_v6 = vadd.f32 %v1370_v47, %v1022_v16  ;;  %4896 = vst [vmem:[#allocation37_spill] sm:$0xff] %v4516_v3  ;;  %v3671_v24 = vld [vmem:[%s3724_s23 + $0xa8] sm:$0xf]  ;;  %v1200_v27 = vrot.slane %v1198_v61, 4 }
 0x139   : > { %4894 = vst [vmem:[#allocation35_spill] sm:$0xff] %v4505_v44  ;;  %v1024_v43 = vpop.f32.mrf.mxu1  ;;  %v3085_v37 = vrot.slane %v3671_v24, 9 }
 0x13a   : > { %v1776_v2 = vpop.f32.mrf.mxu0  ;;  %v1025_v16 = vadd.f32 %v1024_v43, %v4255_v28  ;;  %v1202_v33 = vsel %vm4112_vm5, %v1200_v27, %v1201_v46  ;;  %v4530_v43 = vld [vmem:[%s3724_s23 + $0xc0] sm:$0xf] }
 0x13b   : > { %1063 = vmatmul.bf16.gmra.mxu1 %v4482_v56  ;;  %v1256_v20 = vunpack.c.l.b16 %v1202_v33  ;;  %4898 = vst [vmem:[#allocation39_spill] sm:$0xff] %v4530_v43  ;;  %v1653_v27 = vshrl.u32 %v4530_v43, 16 }
 0x13c   : > { %v1562_v42 = vpop.f32.mrf.mxu3  ;;  %1412 = vmatmul.bf16.gmra.mxu2 %v4507_v45 }
 0x13d   : > { %v1629_v55 = vadd.f32 %v1562_v42, %v1437_v6  ;;  %v1199_v6 = vsel %vm4112_vm5, %v3085_v37, %v1198_v61 }
 0x13e   : > { %v1255_v45 = vunpack.c.l.b16 %v1199_v6  ;;  %v4902_v6 = vld [vmem:[#allocation8_spill] sm:$0xff] }
 0x13f   : > { %v1373_v47 = vpop.f32.mrf.mxu2  ;;  %v4521_v44 = vadd.f32 %v1776_v2, %v1629_v55  ;;  %v1205_v33 = vrot.slane %v4902_v6, 5  ;;  %v4904_v6 = vld [vmem:[#allocation9_spill] sm:$0xff] }
 0x140   : > { %v1438_v13 = vadd.f32 %v1373_v47, %v1025_v16  ;;  %v4534_v16 = vld [vmem:[%s3724_s23 + $0xc4] sm:$0xf]  ;;  %v4538_v37 = vpack.c.b16 %v1256_v20, %v1255_v45  ;;  %v1655_v45 = vrot.slane %v1653_v27, 4  ;;  %v4548_v20 = vld [vmem:[%s3724_s23 + $0xb4] sm:$0xff] }
 0x141   : > { %4897 = vst [vmem:[#allocation38_spill] sm:$0xff] %v4521_v44  ;;  %1604 = vmatmul.bf16.gmra.mxu3 %v4516_v3  ;;  %v1026_v38 = vpop.f32.mrf.mxu1 }
 0x142   : > { %v1779_v42 = vpop.f32.mrf.mxu0  ;;  %v1027_v2 = vadd.f32 %v1026_v38, %v4276_v10  ;;  %4899 = vst [vmem:[#allocation40_spill] sm:$0xff] %v4534_v16  ;;  %v1666_v10 = vshrl.u32 %v4534_v16, 16 }
 0x143   : > { %4901 = vst [vmem:[#allocation42_spill] sm:$0xff] %v4538_v37 }
 0x144   : > { %v1565_v24 = vpop.f32.mrf.mxu3  ;;  %v1668_v56 = vrot.slane %v1666_v10, 4 }
 0x145   : > { %1818 = vmatmul.bf16.gmra.mxu0 %v4030_v1  ;;  %v1630_v28 = vadd.f32 %v1565_v24, %v1438_v13  ;;  %v1656_v13 = vshll.u32 %v4530_v43, 16  ;;  %v1662_v24 = vshll.u32 %v4534_v16, 16 }
 0x147   : > { %v1375_v55 = vpop.f32.mrf.mxu2  ;;  %v4536_v47 = vadd.f32 %v1779_v42, %v1630_v28  ;;  %v4903_v28 = vld [vmem:[#allocation7_spill] sm:$0xff]  ;;  %v1658_v1 = vrot.slane %v1656_v13, 5  ;;  %v1664_v41 = vrot.slane %v1662_v24, 5  ;;  %v1672_v13 = vshll.u32 %v4554_v25, 16 }
 0x148   : > { %v1439_v61 = vadd.f32 %v1375_v55, %v1027_v2  ;;  %v3086_v2 = vrot.slane %v4903_v28, 9  ;;  %v1207_v55 = vrot.slane %v1205_v33, 4 }
 0x149   : > { %4900 = vst [vmem:[#allocation41_spill] sm:$0xff] %v4536_v47  ;;  %v1029_v46 = vpop.f32.mrf.mxu1  ;;  %v1208_v47 = vrot.slane %v4904_v6, 5 }
 0x14a   : > { %v1781_v44 = vpop.f32.mrf.mxu0  ;;  %v1030_v43 = vadd.f32 %v1029_v46, %v4290_v19  ;;  %v1206_v27 = vsel %vm4112_vm5, %v3086_v2, %v1205_v33  ;;  %v1659_v19 = vor.u32 %v1658_v1, %v1655_v45  ;;  %v1669_v46 = vor.u32 %v1668_v56, %v1664_v41 }
 0x14b   : > { %1068 = vmatmul.bf16.gmra.mxu1 %v4516_v3  ;;  %v1257_v10 = vunpack.c.l.b16 %v1206_v27  ;;  %v1674_v33 = vrot.slane %v1672_v13, 5  ;;  %v4577_v27 = vld [vmem:[%s3724_s23 + $0xc0] sm:$0xff] }
 0x14c   : > { %v1567_v38 = vpop.f32.mrf.mxu3  ;;  %1417 = vmatmul.bf16.gmra.mxu2 %v4538_v37 }
 0x14d   : > { %v1631_v42 = vadd.f32 %v1567_v38, %v1439_v61  ;;  %v1209_v38 = vsel %vm4112_vm5, %v1207_v55, %v1208_v47 }
 0x14e   : > { %v1258_v6 = vunpack.c.l.b16 %v1209_v38 }
 0x14f   : > { %v1378_v16 = vpop.f32.mrf.mxu2  ;;  %v4556_v3 = vadd.f32 %v1781_v44, %v1631_v42  ;;  %v1670_v42 = vrot.slane %v1669_v46, 4 }
 0x150   : > { %v1440_v37 = vadd.f32 %v1378_v16, %v1030_v43  ;;  %v1660_v16 = vrot.slane %v1659_v19, 4  ;;  %v4568_v1 = vpack.c.b16 %v1258_v6, %v1257_v10 }
 0x151   : > { %1609 = vmatmul.bf16.gmra.mxu3 %v4548_v20  ;;  %v1031_v61 = vpop.f32.mrf.mxu1 }
 0x152   : > { %v1784_v28 = vpop.f32.mrf.mxu0  ;;  %v1032_v43 = vadd.f32 %v1031_v61, %v4309_v32  ;;  %v1665_v55 = vsel %vm3739_vm2, %v1660_v16, %v1664_v41 }
 0x153   : > { %v1693_v38 = vunpack.c.l.b16 %v1665_v55 }
 0x154   : > { %v1570_v24 = vpop.f32.mrf.mxu3 }
 0x155   : > { %1823 = vmatmul.bf16.gmra.mxu0 %v4122_v48  ;;  %v1632_v44 = vadd.f32 %v1570_v24, %v1440_v37  ;;  %v1675_v37 = vsel %vm3739_vm2, %v1670_v42, %v1674_v33 }
 0x157   : > { %v1380_v2 = vpop.f32.mrf.mxu2  ;;  %v4566_v0 = vadd.f32 %v1784_v28, %v1632_v44  ;;  %v1694_v28 = vunpack.c.l.b16 %v1675_v37 }
 0x158   : > { %v1441_v47 = vadd.f32 %v1380_v2, %v1032_v43 }
 0x159   : > { %v1034_v56 = vpop.f32.mrf.mxu1  ;;  %v4583_v41 = vpack.c.b16 %v1694_v28, %v1693_v38 }
 0x15a   : > { %v1786_v45 = vpop.f32.mrf.mxu0  ;;  %v1035_v19 = vadd.f32 %v1034_v56, %v4331_v18 }
 0x15b   : > { %1073 = vmatmul.bf16.gmra.mxu1 %v4548_v20 }
 0x15c   : > { %v1572_v32 = vpop.f32.mrf.mxu3  ;;  %1422 = vmatmul.bf16.gmra.mxu2 %v4568_v1 }
 0x15d   : > { %v1633_v61 = vadd.f32 %v1572_v32, %v1441_v47 }
 0x15f   : > { %v1383_v46 = vpop.f32.mrf.mxu2  ;;  %v4580_v13 = vadd.f32 %v1786_v45, %v1633_v61 }
 0x160   : > { %v1442_v24 = vadd.f32 %v1383_v46, %v1035_v19 }
 0x161   : > { %1614 = vmatmul.bf16.gmra.mxu3 %v4577_v27  ;;  %v1036_v10 = vpop.f32.mrf.mxu1 }
 0x162   : > { %v1789_v6 = vpop.f32.mrf.mxu0  ;;  %v1037_v16 = vadd.f32 %v1036_v10, %v4349_v5 }
 0x164   : > { %v1575_v44 = vpop.f32.mrf.mxu3 }
 0x165   : > { %1828 = vmatmul.bf16.gmra.mxu0 %v4583_v41  ;;  %v1634_v43 = vadd.f32 %v1575_v44, %v1442_v24 }
 0x167   : > { %v1385_v42 = vpop.f32.mrf.mxu2  ;;  %v4587_v33 = vadd.f32 %v1789_v6, %v1634_v43 }
 0x168   : > { %v1443_v18 = vadd.f32 %v1385_v42, %v1037_v16 }
 0x169   : > { %v1039_v2 = vpop.f32.mrf.mxu1 }
 0x16a   : > { %v1791_v47 = vpop.f32.mrf.mxu0  ;;  %v1040_v55 = vadd.f32 %v1039_v2, %v4228_v34 }
 0x16b   : > { %1951 = vmatmul.bf16.vlgmr.msra.gmra.mxu1 %v4140_v63 }
 0x16c   : > { %v1577_v56 = vpop.f32.mrf.mxu3  ;;  %2143 = vmatmul.bf16.vlgmr.msra.gmra.mxu2 %v4160_v7 }
 0x16d   : > { %v1635_v45 = vadd.f32 %v1577_v56, %v1443_v18 }
 0x16f   : > { %v1388_v37 = vpop.f32.mrf.mxu2  ;;  %v4592_v32 = vadd.f32 %v1791_v47, %v1635_v45 }
 0x170   : > { %v1444_v61 = vadd.f32 %v1388_v37, %v1040_v55 }
 0x171   : > { %2357 = vmatmul.bf16.vlgmr.msra.gmra.mxu3 %v4058_v40  ;;  %v1041_v5 = vpop.f32.mrf.mxu1 }
 0x172   : > { %v1794_v38 = vpop.f32.mrf.mxu0  ;;  %v1042_v63 = vadd.f32 %v1041_v5, %v4251_v57 }
 0x174   : > { %v1580_v28 = vpop.f32.mrf.mxu3 }
 0x175   : > { %2555 = vmatmul.bf16.vlgmr.msra.gmra.mxu0 %v4170_v62  ;;  %v1636_v19 = vadd.f32 %v1580_v28, %v1444_v61 }
 0x177   : > { %v1390_v46 = vpop.f32.mrf.mxu2  ;;  %v4597_v24 = vadd.f32 %v1794_v38, %v1636_v19 }
 0x178   : > { %v1445_v7 = vadd.f32 %v1390_v46, %v1042_v63 }
 0x179   : > { %v1044_v10 = vpop.f32.mrf.mxu1 }
 0x17a   : > { %v1796_v34 = vpop.f32.mrf.mxu0  ;;  %v1045_v44 = vadd.f32 %v1044_v10, %v4272_v52 }
 0x17b   : > { %1956 = vmatmul.bf16.gmra.mxu1 %v4170_v62 }
 0x17c   : > { %v1582_v6 = vpop.f32.mrf.mxu3  ;;  %2148 = vmatmul.bf16.gmra.mxu2 %v4176_v31 }
 0x17d   : > { %v1637_v40 = vadd.f32 %v1582_v6, %v1445_v7 }
 0x17f   : > { %v1393_v43 = vpop.f32.mrf.mxu2  ;;  %v4602_v16 = vadd.f32 %v1796_v34, %v1637_v40  ;;  %v4905_v40 = vld [vmem:[#allocation24_spill] sm:$0xff] }
 0x180   : > { %v1446_v42 = vadd.f32 %v1393_v43, %v1045_v44 }
 0x181   : > { %2362 = vmatmul.bf16.gmra.mxu3 %v4135_v50  ;;  %v1046_v57 = vpop.f32.mrf.mxu1 }
 0x182   : > { %v1799_v18 = vpop.f32.mrf.mxu0  ;;  %v1047_v62 = vadd.f32 %v1046_v57, %v4286_v8 }
 0x184   : > { %v1585_v2 = vpop.f32.mrf.mxu3 }
 0x185   : > { %2560 = vmatmul.bf16.gmra.mxu0 %v4198_v51  ;;  %v1638_v47 = vadd.f32 %v1585_v2, %v1446_v42 }
 0x187   : > { %v1395_v56 = vpop.f32.mrf.mxu2  ;;  %v4607_v45 = vadd.f32 %v1799_v18, %v1638_v47  ;;  %v4906_v18 = vld [vmem:[#allocation3_spill] sm:$0xff] }
 0x188   : > { %v1447_v31 = vadd.f32 %v1395_v56, %v1047_v62  ;;  %v4907_v62 = vld [vmem:[#allocation14_spill] sm:$0xff] }
 0x189   : > { %v1049_v55 = vpop.f32.mrf.mxu1 }
 0x18a   : > { %v1801_v52 = vpop.f32.mrf.mxu0  ;;  %v1050_v61 = vadd.f32 %v1049_v55, %v4302_v35 }
 0x18b   : > { %1961 = vmatmul.bf16.gmra.mxu1 %v4198_v51 }
 0x18c   : > { %v1587_v37 = vpop.f32.mrf.mxu3  ;;  %2153 = vmatmul.bf16.gmra.mxu2 %v4204_v9 }
 0x18d   : > { %v1639_v50 = vadd.f32 %v1587_v37, %v1447_v31  ;;  %v4908_v31 = vld [vmem:[#allocation26_spill] sm:$0xff] }
 0x18f   : > { %v1398_v5 = vpop.f32.mrf.mxu2  ;;  %v4612_v38 = vadd.f32 %v1801_v52, %v1639_v50 }
 0x190   : > { %v1448_v28 = vadd.f32 %v1398_v5, %v1050_v61  ;;  %v4909_v5 = vld [vmem:[#allocation15_spill] sm:$0xff] }
 0x191   : > { %2367 = vmatmul.bf16.gmra.mxu3 %v3757_v59  ;;  %v1051_v8 = vpop.f32.mrf.mxu1 }
 0x192   : > { %v1804_v19 = vpop.f32.mrf.mxu0  ;;  %v1052_v51 = vadd.f32 %v1051_v8, %v4325_v53  ;;  %v4910_v8 = vld [vmem:[#allocation12_spill] sm:$0xff] }
 0x194   : > { %v1590_v63 = vpop.f32.mrf.mxu3 }
 0x195   : > { %2565 = vmatmul.bf16.gmra.mxu0 %v4216_v49  ;;  %v1640_v46 = vadd.f32 %v1590_v63, %v1448_v28 }
 0x197   : > { %v1400_v7 = vpop.f32.mrf.mxu2  ;;  %v4617_v10 = vadd.f32 %v1804_v19, %v1640_v46 }
 0x198   : > { %v1449_v9 = vadd.f32 %v1400_v7, %v1052_v51  ;;  %v4911_v7 = vld [vmem:[#allocation5_spill] sm:$0xff] }
 0x199   : > { %v1054_v34 = vpop.f32.mrf.mxu1 }
 0x19a   : > { %v1806_v35 = vpop.f32.mrf.mxu0  ;;  %v1055_v44 = vadd.f32 %v1054_v34, %v4905_v40  ;;  %v4913_v40 = vld [vmem:[#allocation13_spill] sm:$0xff] }
 0x19b   : > { %1966 = vmatmul.bf16.gmra.mxu1 %v4216_v49 }
 0x19c   : > { %v1592_v6 = vpop.f32.mrf.mxu3  ;;  %2158 = vmatmul.bf16.gmra.mxu2 %v4224_v4 }
 0x19d   : > { %v1641_v59 = vadd.f32 %v1592_v6, %v1449_v9  ;;  %v4912_v6 = vld [vmem:[#allocation18_spill] sm:$0xff] }
 0x19f   : > { %v1403_v43 = vpop.f32.mrf.mxu2  ;;  %v4622_v42 = vadd.f32 %v1806_v35, %v1641_v59 }
 0x1a0   : > { %v1450_v57 = vadd.f32 %v1403_v43, %v1055_v44 }
 0x1a1   : > { %2372 = vmatmul.bf16.gmra.mxu3 %v4906_v18  ;;  %v1056_v53 = vpop.f32.mrf.mxu1 }
 0x1a2   : > { %v1809_v2 = vpop.f32.mrf.mxu0  ;;  %v1057_v49 = vadd.f32 %v1056_v53, %v4908_v31  ;;  %v4915_v31 = vld [vmem:[#allocation16_spill] sm:$0xff] }
 0x1a4   : > { %v1595_v47 = vpop.f32.mrf.mxu3 }
 0x1a5   : > { %2570 = vmatmul.bf16.gmra.mxu0 %v4907_v62  ;;  %v1642_v56 = vadd.f32 %v1595_v47, %v1450_v57 }
 0x1a7   : > { %v1405_v55 = vpop.f32.mrf.mxu2  ;;  %v4627_v52 = vadd.f32 %v1809_v2, %v1642_v56 }
 0x1a8   : > { %v1451_v4 = vadd.f32 %v1405_v55, %v1057_v49 }
 0x1a9   : > { %v1059_v37 = vpop.f32.mrf.mxu1 }
 0x1aa   : > { %v1811_v50 = vpop.f32.mrf.mxu0  ;;  %v1060_v19 = vadd.f32 %v1059_v37, %v4910_v8  ;;  %v4917_v8 = vld [vmem:[#allocation21_spill] sm:$0xff] }
 0x1ab   : > { %1971 = vmatmul.bf16.gmra.mxu1 %v4907_v62  ;;  %v4914_v62 = vld [vmem:[#allocation19_spill] sm:$0xff] }
 0x1ac   : > { %v1597_v61 = vpop.f32.mrf.mxu3  ;;  %2163 = vmatmul.bf16.gmra.mxu2 %v4909_v5 }
 0x1ad   : > { %v1643_v28 = vadd.f32 %v1597_v61, %v1451_v4 }
 0x1af   : > { %v1408_v63 = vpop.f32.mrf.mxu2  ;;  %v4632_v46 = vadd.f32 %v1811_v50, %v1643_v28  ;;  %v4916_v50 = vld [vmem:[#allocation10_spill] sm:$0xff] }
 0x1b0   : > { %v1452_v51 = vadd.f32 %v1408_v63, %v1060_v19  ;;  %v4918_v63 = vld [vmem:[#allocation17_spill] sm:$0xff] }
 0x1b1   : > { %2377 = vmatmul.bf16.gmra.mxu3 %v4911_v7  ;;  %v1061_v9 = vpop.f32.mrf.mxu1 }
 0x1b2   : > { %v1814_v34 = vpop.f32.mrf.mxu0  ;;  %v1062_v44 = vadd.f32 %v1061_v9, %v4913_v40  ;;  %v4919_v40 = vld [vmem:[#allocation23_spill] sm:$0xff] }
 0x1b4   : > { %v1600_v35 = vpop.f32.mrf.mxu3 }
 0x1b5   : > { %2575 = vmatmul.bf16.gmra.mxu0 %v4912_v6  ;;  %v1644_v59 = vadd.f32 %v1600_v35, %v1452_v51 }
 0x1b7   : > { %v1410_v43 = vpop.f32.mrf.mxu2  ;;  %v4637_v57 = vadd.f32 %v1814_v34, %v1644_v59 }
 0x1b8   : > { %v1453_v18 = vadd.f32 %v1410_v43, %v1062_v44  ;;  %v4920_v43 = vld [vmem:[#allocation20_spill] sm:$0xff] }
 0x1b9   : > { %v1064_v53 = vpop.f32.mrf.mxu1 }
 0x1ba   : > { %v1816_v2 = vpop.f32.mrf.mxu0  ;;  %v1065_v49 = vadd.f32 %v1064_v53, %v4915_v31 }
 0x1bb   : > { %1976 = vmatmul.bf16.gmra.mxu1 %v4912_v6 }
 0x1bc   : > { %v1602_v47 = vpop.f32.mrf.mxu3  ;;  %2168 = vmatmul.bf16.gmra.mxu2 %v4914_v62  ;;  %v4921_v62 = vld [vmem:[#allocation2_spill] sm:$0xff] }
 0x1bd   : > { %v1645_v56 = vadd.f32 %v1602_v47, %v1453_v18 }
 0x1bf   : > { %v1413_v55 = vpop.f32.mrf.mxu2  ;;  %v4642_v4 = vadd.f32 %v1816_v2, %v1645_v56 }
 0x1c0   : > { %v1454_v37 = vadd.f32 %v1413_v55, %v1065_v49  ;;  %v4922_v55 = vld [vmem:[#allocation27_spill] sm:$0xff] }
 0x1c1   : > { %2382 = vmatmul.bf16.gmra.mxu3 %v4916_v50  ;;  %v1066_v61 = vpop.f32.mrf.mxu1  ;;  %v4923_v50 = vld [vmem:[#allocation22_spill] sm:$0xff] }
 0x1c2   : > { %v1819_v5 = vpop.f32.mrf.mxu0  ;;  %v1067_v51 = vadd.f32 %v1066_v61, %v4918_v63 }
 0x1c4   : > { %v1605_v28 = vpop.f32.mrf.mxu3 }
 0x1c5   : > { %2580 = vmatmul.bf16.gmra.mxu0 %v4917_v8  ;;  %v1646_v19 = vadd.f32 %v1605_v28, %v1454_v37 }
 0x1c7   : > { %v1415_v7 = vpop.f32.mrf.mxu2  ;;  %v4647_v9 = vadd.f32 %v1819_v5, %v1646_v19 }
 0x1c8   : > { %v1455_v34 = vadd.f32 %v1415_v7, %v1067_v51 }
 0x1c9   : > { %v1069_v35 = vpop.f32.mrf.mxu1 }
 0x1ca   : > { %v1821_v6 = vpop.f32.mrf.mxu0  ;;  %v1070_v18 = vadd.f32 %v1069_v35, %v4920_v43 }
 0x1cb   : > { %1981 = vmatmul.bf16.gmra.mxu1 %v4917_v8 }
 0x1cc   : > { %v1607_v59 = vpop.f32.mrf.mxu3  ;;  %2173 = vmatmul.bf16.gmra.mxu2 %v4919_v40 }
 0x1cd   : > { %v1647_v44 = vadd.f32 %v1607_v59, %v1455_v34  ;;  %v4924_v34 = vld [vmem:[#allocation25_spill] sm:$0xff] }
 0x1cf   : > { %v1418_v53 = vpop.f32.mrf.mxu2  ;;  %v4652_v2 = vadd.f32 %v1821_v6, %v1647_v44 }
 0x1d0   : > { %v1456_v47 = vadd.f32 %v1418_v53, %v1070_v18 }
 0x1d1   : > { %2387 = vmatmul.bf16.gmra.mxu3 %v4921_v62  ;;  %v1071_v56 = vpop.f32.mrf.mxu1 }
 0x1d2   : > { %v1824_v31 = vpop.f32.mrf.mxu0  ;;  %v1072_v61 = vadd.f32 %v1071_v56, %v4923_v50 }
 0x1d4   : > { %v1610_v49 = vpop.f32.mrf.mxu3 }
 0x1d5   : > { %2585 = vmatmul.bf16.gmra.mxu0 %v4922_v55  ;;  %v1648_v37 = vadd.f32 %v1610_v49, %v1456_v47  ;;  %v4925_v47 = vld [vmem:[#allocation28_spill] sm:$0xff] }
 0x1d7   : > { %v1420_v5 = vpop.f32.mrf.mxu2  ;;  %v4657_v28 = vadd.f32 %v1824_v31, %v1648_v37 }
 0x1d8   : > { %v1457_v8 = vadd.f32 %v1420_v5, %v1072_v61 }
 0x1d9   : > { %v1074_v19 = vpop.f32.mrf.mxu1 }
 0x1da   : > { %v1826_v63 = vpop.f32.mrf.mxu0  ;;  %v1075_v35 = vadd.f32 %v1074_v19, %v4924_v34  ;;  %v4926_v34 = vld [vmem:[#allocation29_spill] sm:$0xff] }
 0x1db   : > { %1986 = vmatmul.bf16.gmra.mxu1 %v4922_v55 }
 0x1dc   : > { %v1612_v51 = vpop.f32.mrf.mxu3  ;;  %2178 = vmatmul.bf16.gmra.mxu2 %v4373_v14 }
 0x1dd   : > { %v1649_v7 = vadd.f32 %v1612_v51, %v1457_v8 }
 0x1df   : > { %v1423_v6 = vpop.f32.mrf.mxu2  ;;  %v4662_v59 = vadd.f32 %v1826_v63, %v1649_v7 }
 0x1e0   : > { %v1458_v40 = vadd.f32 %v1423_v6, %v1075_v35 }
 0x1e1   : > { %2392 = vmatmul.bf16.gmra.mxu3 %v3891_v12  ;;  %v1076_v44 = vpop.f32.mrf.mxu1 }
 0x1e2   : > { %v1829_v43 = vpop.f32.mrf.mxu0  ;;  %v1077_v62 = vadd.f32 %v1076_v44, %v4925_v47 }
 0x1e4   : > { %v1615_v18 = vpop.f32.mrf.mxu3 }
 0x1e5   : > { %2590 = vmatmul.bf16.gmra.mxu0 %v4395_v60  ;;  %v1650_v53 = vadd.f32 %v1615_v18, %v1458_v40 }
 0x1e7   : > { %v1425_v56 = vpop.f32.mrf.mxu2  ;;  %v4667_v31 = vadd.f32 %v1829_v43, %v1650_v53 }
 0x1e8   : > { %v1459_v14 = vadd.f32 %v1425_v56, %v1077_v62 }
 0x1e9   : > { %v1952_v49 = vpop.f32.mrf.mxu1 }
 0x1ea   : > { %v1831_v55 = vpop.f32.mrf.mxu0  ;;  %v2032_v50 = vadd.f32 %v1952_v49, %v4393_v15  ;;  %v4680_v15 = vld [vmem:[%s4823_s2] ss:$0 sm:$0xff] }
 0x1eb   : > { %1991 = vmatmul.bf16.gmra.mxu1 %v4395_v60 }
 0x1ec   : > { %v1617_v37 = vpop.f32.mrf.mxu3  ;;  %2183 = vmatmul.bf16.gmra.mxu2 %v4405_v29 }
 0x1ed   : > { %v1651_v12 = vadd.f32 %v1617_v37, %v1459_v14 }
 0x1ef   : > { %v2144_v61 = vpop.f32.mrf.mxu2  ;;  %v4672_v5 = vadd.f32 %v1831_v55, %v1651_v12 }
 0x1f0   : > { %v2224_v8 = vadd.f32 %v2144_v61, %v2032_v50 }
 0x1f1   : > { %2397 = vmatmul.bf16.gmra.mxu3 %v4000_v26  ;;  %v1954_v19 = vpop.f32.mrf.mxu1 }
 0x1f2   : > { %v2556_v63 = vpop.f32.mrf.mxu0  ;;  %v2033_v60 = vadd.f32 %v1954_v19, %v4926_v34 }
 0x1f4   : > { %v2358_v51 = vpop.f32.mrf.mxu3 }
 0x1f5   : > { %2595 = vmatmul.bf16.gmra.mxu0 %v4420_v11  ;;  %v2438_v7 = vadd.f32 %v2358_v51, %v2224_v8 }
 0x1f7   : > { %v2146_v35 = vpop.f32.mrf.mxu2  ;;  %v2636_v6 = vadd.f32 %v2556_v63, %v2438_v7 }
 0x1f8   : > { %v2225_v29 = vadd.f32 %v2146_v35, %v2033_v60 }
 0x1f9   : > { %v1957_v40 = vpop.f32.mrf.mxu1  ;;  %v2672_v43 = vadd.f32 %v4680_v15, %v2636_v6 }
 0x1fa   : > { %v2558_v26 = vpop.f32.mrf.mxu0  ;;  %v2034_v47 = vadd.f32 %v1957_v40, %v4418_v54 }
 0x1fb   : > { %1996 = vmatmul.bf16.gmra.mxu1 %v4420_v11  ;;  %v2736_v56 = vmul.f32 0.2, %v2672_v43  ;;  %vm2704_vm6 = vcmp.ge.f32.partialorder %v2672_v43, 0.0 }
 0x1fc   : > { %v2360_v44 = vpop.f32.mrf.mxu3  ;;  %2188 = vmatmul.bf16.gmra.mxu2 %v4427_v22 }
 0x1fd   : > { %v2439_v18 = vadd.f32 %v2360_v44, %v2225_v29  ;;  %v2768_v12 = vsel %vm2704_vm6, %v2672_v43, %v2736_v56 }
 0x1ff   : > { %v2637_v53 = vadd.f32 %v2558_v26, %v2439_v18  ;;  %v2149_v62 = vpop.f32.mrf.mxu2 }
 0x200   : > { %v2226_v49 = vadd.f32 %v2149_v62, %v2034_v47  ;;  %v4927_v62 = vld [vmem:[#allocation32_spill] sm:$0xff] }
 0x201   : > { %v2673_v14 = vadd.f32 %v4680_v15, %v2637_v53  ;;  %2402 = vmatmul.bf16.gmra.mxu3 %v4104_v58  ;;  %v1959_v55 = vpop.f32.mrf.mxu1 }
 0x202   : > { %v2561_v11 = vpop.f32.mrf.mxu0  ;;  %v2035_v61 = vadd.f32 %v1959_v55, %v4431_v21 }
 0x203   : > { %vm2705_vm7 = vcmp.ge.f32.partialorder %v2673_v14, 0.0  ;;  %v2737_v37 = vmul.f32 0.2, %v2673_v14 }
 0x204   : > { %v2363_v22 = vpop.f32.mrf.mxu3 }
 0x205   : > { %v2769_v54 = vsel %vm2705_vm7, %v2673_v14, %v2737_v37  ;;  %2600 = vmatmul.bf16.gmra.mxu0 %v4451_v23  ;;  %v2440_v50 = vadd.f32 %v2363_v22, %v2226_v49  ;;  %v4928_v14 = vld [vmem:[#allocation30_spill] sm:$0xff] }
 0x206   : > { %v3529_v58 = vpack.c.bf16 %v2769_v54, %v2768_v12  ;;  %v4929_v54 = vld [vmem:[#allocation33_spill] sm:$0xff] }
 0x207   : > { %v2151_v8 = vpop.f32.mrf.mxu2  ;;  %v2638_v19 = vadd.f32 %v2561_v11, %v2440_v50 }
 0x208   : > { %3530 = vst [vmem:[%s4692_s22] sm:$0xff] %v3529_v58   ;;  %v2227_v63 = vadd.f32 %v2151_v8, %v2035_v61  ;;  %v4930_v8 = vld [vmem:[#allocation31_spill] sm:$0xff] }
 0x209   : > { %v1962_v51 = vpop.f32.mrf.mxu1  ;;  %v2674_v60 = vadd.f32 %v4680_v15, %v2638_v19 }
 0x20a   : > { %v2563_v7 = vpop.f32.mrf.mxu0  ;;  %v2036_v29 = vadd.f32 %v1962_v51, %v4449_v17 }
 0x20b   : > { %2001 = vmatmul.bf16.gmra.mxu1 %v4451_v23  ;;  %v2738_v26 = vmul.f32 0.2, %v2674_v60  ;;  %vm2706_vm8 = vcmp.ge.f32.partialorder %v2674_v60, 0.0 }
 0x20c   : > { %v2365_v34 = vpop.f32.mrf.mxu3  ;;  %2193 = vmatmul.bf16.gmra.mxu2 %v4461_v39 }
 0x20d   : > { %v2441_v35 = vadd.f32 %v2365_v34, %v2227_v63  ;;  %v2770_v53 = vsel %vm2706_vm8, %v2674_v60, %v2738_v26  ;;  %v4931_v34 = vld [vmem:[#allocation4_spill] sm:$0xff] }
 0x20f   : > { %v2639_v6 = vadd.f32 %v2563_v7, %v2441_v35  ;;  %v2154_v40 = vpop.f32.mrf.mxu2 }
 0x210   : > { %v2228_v44 = vadd.f32 %v2154_v40, %v2036_v29 }
 0x211   : > { %v2675_v21 = vadd.f32 %v4680_v15, %v2639_v6  ;;  %2407 = vmatmul.bf16.gmra.mxu3 %v3800_v36  ;;  %v1964_v43 = vpop.f32.mrf.mxu1 }
 0x212   : > { %v2566_v23 = vpop.f32.mrf.mxu0  ;;  %v2037_v49 = vadd.f32 %v1964_v43, %v4928_v14 }
 0x213   : > { %vm2707_vm9 = vcmp.ge.f32.partialorder %v2675_v21, 0.0  ;;  %v2739_v18 = vmul.f32 0.2, %v2675_v21 }
 0x214   : > { %v2368_v39 = vpop.f32.mrf.mxu3 }
 0x215   : > { %v2771_v47 = vsel %vm2707_vm9, %v2675_v21, %v2739_v18  ;;  %2605 = vmatmul.bf16.gmra.mxu0 %v4927_v62  ;;  %v2442_v56 = vadd.f32 %v2368_v39, %v2228_v44  ;;  %v4932_v44 = vld [vmem:[#allocation36_spill] sm:$0xff]  ;;  %v4933_v18 = vld [vmem:[#allocation34_spill] sm:$0xff] }
 0x216   : > { %v3534_v17 = vpack.c.bf16 %v2771_v47, %v2770_v53 }
 0x217   : > { %v2156_v55 = vpop.f32.mrf.mxu2  ;;  %v2640_v11 = vadd.f32 %v2566_v23, %v2442_v56 }
 0x218   : > { %3606 = vst [vmem:[%s4692_s22 + $0x8] sm:$0xff] %v3534_v17   ;;  %v2229_v37 = vadd.f32 %v2156_v55, %v2037_v49  ;;  %v4934_v49 = vld [vmem:[#allocation37_spill] sm:$0xff] }
 0x219   : > { %v1967_v36 = vpop.f32.mrf.mxu1  ;;  %v2676_v50 = vadd.f32 %v4680_v15, %v2640_v11 }
 0x21a   : > { %v2568_v22 = vpop.f32.mrf.mxu0  ;;  %v2038_v19 = vadd.f32 %v1967_v36, %v4930_v8  ;;  %v4935_v36 = vld [vmem:[#allocation35_spill] sm:$0xff] }
 0x21b   : > { %2006 = vmatmul.bf16.gmra.mxu1 %v4927_v62  ;;  %v2740_v51 = vmul.f32 0.2, %v2676_v50  ;;  %vm2708_vm10 = vcmp.ge.f32.partialorder %v2676_v50, 0.0 }
 0x21c   : > { %v2370_v12 = vpop.f32.mrf.mxu3  ;;  %2198 = vmatmul.bf16.gmra.mxu2 %v4929_v54 }
 0x21d   : > { %v2443_v58 = vadd.f32 %v2370_v12, %v2229_v37  ;;  %v2772_v26 = vsel %vm2708_vm10, %v2676_v50, %v2740_v51 }
 0x21f   : > { %v2641_v61 = vadd.f32 %v2568_v22, %v2443_v58  ;;  %v2159_v63 = vpop.f32.mrf.mxu2  ;;  %v4936_v58 = vld [vmem:[#allocation6_spill] sm:$0xff] }
 0x220   : > { %v2230_v60 = vadd.f32 %v2159_v63, %v2038_v19 }
 0x221   : > { %v2677_v7 = vadd.f32 %v4680_v15, %v2641_v61  ;;  %2412 = vmatmul.bf16.gmra.mxu3 %v4931_v34  ;;  %v1969_v35 = vpop.f32.mrf.mxu1 }
 0x222   : > { %v2571_v6 = vpop.f32.mrf.mxu0  ;;  %v2039_v39 = vadd.f32 %v1969_v35, %v4933_v18 }
 0x223   : > { %vm2709_vm11 = vcmp.ge.f32.partialorder %v2677_v7, 0.0  ;;  %v2741_v29 = vmul.f32 0.2, %v2677_v7 }
 0x224   : > { %v2373_v40 = vpop.f32.mrf.mxu3 }
 0x225   : > { %v2773_v21 = vsel %vm2709_vm11, %v2677_v7, %v2741_v29  ;;  %2610 = vmatmul.bf16.gmra.mxu0 %v4932_v44  ;;  %v2444_v43 = vadd.f32 %v2373_v40, %v2230_v60  ;;  %v4937_v60 = vld [vmem:[#allocation42_spill] sm:$0xff] }
 0x226   : > { %v3539_v23 = vpack.c.bf16 %v2773_v21, %v2772_v26  ;;  %v4938_v29 = vld [vmem:[#allocation38_spill] sm:$0xff] }
 0x227   : > { %v2161_v53 = vpop.f32.mrf.mxu2  ;;  %v2642_v47 = vadd.f32 %v2571_v6, %v2444_v43 }
 0x228   : > { %3607 = vst [vmem:[%s4692_s22 + $0x10] sm:$0xff] %v3539_v23   ;;  %v2231_v62 = vadd.f32 %v2161_v53, %v2039_v39 }
 0x229   : > { %v1972_v56 = vpop.f32.mrf.mxu1  ;;  %v2678_v55 = vadd.f32 %v4680_v15, %v2642_v47 }
 0x22a   : > { %v2573_v17 = vpop.f32.mrf.mxu0  ;;  %v2040_v22 = vadd.f32 %v1972_v56, %v4935_v36 }
 0x22b   : > { %2011 = vmatmul.bf16.gmra.mxu1 %v4932_v44  ;;  %v2742_v54 = vmul.f32 0.2, %v2678_v55  ;;  %vm2710_vm12 = vcmp.ge.f32.partialorder %v2678_v55, 0.0 }
 0x22c   : > { %v2375_v14 = vpop.f32.mrf.mxu3  ;;  %2203 = vmatmul.bf16.gmra.mxu2 %v4934_v49 }
 0x22d   : > { %v2445_v11 = vadd.f32 %v2375_v14, %v2231_v62  ;;  %v2774_v7 = vsel %vm2710_vm12, %v2678_v55, %v2742_v54  ;;  %v4939_v62 = vld [vmem:[#allocation41_spill] sm:$0xff]  ;;  %v4735_v54 = vld [vmem:[%s3724_s23 + $0xd0] sm:$0xf] }
 0x22f   : > { %v2643_v37 = vadd.f32 %v2573_v17, %v2445_v11  ;;  %v2164_v12 = vpop.f32.mrf.mxu2 }
 0x230   : > { %v2232_v61 = vadd.f32 %v2164_v12, %v2040_v22  ;;  %v4732_v22 = vld [vmem:[%s3724_s23 + $0xcc] sm:$0xf] }
 0x231   : > { %v2679_v50 = vadd.f32 %v4680_v15, %v2643_v37  ;;  %2417 = vmatmul.bf16.gmra.mxu3 %v4936_v58  ;;  %v1974_v8 = vpop.f32.mrf.mxu1  ;;  %v4940_v37 = vld [vmem:[#allocation40_spill] sm:$0xff]  ;;  %v4941_v58 = vld [vmem:[#allocation39_spill] sm:$0xff] }
 0x232   : > { %v2576_v19 = vpop.f32.mrf.mxu0  ;;  %v2041_v40 = vadd.f32 %v1974_v8, %v4938_v29  ;;  %v1869_v36 = vrot.slane %v4940_v37, 5  ;;  %v2257_v8 = vshrl.u32 %v4732_v22, 16 }
 0x233   : > { %vm2711_vm13 = vcmp.ge.f32.partialorder %v2679_v50, 0.0  ;;  %v2743_v63 = vmul.f32 0.2, %v2679_v50 }
 0x234   : > { %v2378_v51 = vpop.f32.mrf.mxu3 }
 0x235   : > { %v2775_v34 = vsel %vm2711_vm13, %v2679_v50, %v2743_v63  ;;  %2615 = vmatmul.bf16.gmra.mxu0 %v4937_v60  ;;  %v2446_v35 = vadd.f32 %v2378_v51, %v2232_v61  ;;  %v3235_v61 = vrot.slane %v4941_v58, 9 }
 0x236   : > { %v3544_v6 = vpack.c.bf16 %v2775_v34, %v2774_v7  ;;  %v1871_v7 = vrot.slane %v1869_v36, 4 }
 0x237   : > { %v2166_v26 = vpop.f32.mrf.mxu2  ;;  %v2644_v21 = vadd.f32 %v2576_v19, %v2446_v35  ;;  %v2266_v35 = vshll.u32 %v4735_v54, 16 }
 0x238   : > { %3608 = vst [vmem:[%s4692_s22 + $0x18] sm:$0xff] %v3544_v6   ;;  %v2233_v44 = vadd.f32 %v2166_v26, %v2041_v40  ;;  %v2270_v6 = vshrl.u32 %v4735_v54, 16  ;;  %v2259_v26 = vrot.slane %v2257_v8, 4 }
 0x239   : > { %v1977_v43 = vpop.f32.mrf.mxu1  ;;  %v2680_v39 = vadd.f32 %v4680_v15, %v2644_v21 }
 0x23a   : > { %v2578_v23 = vpop.f32.mrf.mxu0  ;;  %v2042_v56 = vadd.f32 %v1977_v43, %v4939_v62  ;;  %v2272_v62 = vrot.slane %v2270_v6, 4 }
 0x23b   : > { %2016 = vmatmul.bf16.gmra.mxu1 %v4937_v60  ;;  %v2744_v14 = vmul.f32 0.2, %v2680_v39  ;;  %vm2712_vm14 = vcmp.ge.f32.partialorder %v2680_v39, 0.0  ;;  %v1872_v60 = vrot.slane %v4554_v25, 5 }
 0x23c   : > { %v2380_v18 = vpop.f32.mrf.mxu3  ;;  %2208 = vmatmul.bf16.gmra.mxu2 %v4548_v20 }
 0x23d   : > { %v2447_v53 = vadd.f32 %v2380_v18, %v2233_v44  ;;  %v2776_v19 = vsel %vm2712_vm14, %v2680_v39, %v2744_v14  ;;  %v1873_v25 = vsel %vm4112_vm5, %v1871_v7, %v1872_v60  ;;  %v2473_v7 = vrot.slane %v4735_v54, 5 }
 0x23f   : > { %v2645_v47 = vadd.f32 %v2578_v23, %v2447_v53  ;;  %v2169_v17 = vpop.f32.mrf.mxu2  ;;  %v1870_v53 = vsel %vm4112_vm5, %v3235_v61, %v1869_v36 }
 0x240   : > { %v2234_v55 = vadd.f32 %v2169_v17, %v2042_v56  ;;  %v224_v56 = vld [vmem:[%s3724_s23 + $0xd4] sm:$0x1] }
 0x241   : > { %v2681_v49 = vadd.f32 %v4680_v15, %v2645_v47  ;;  %2422 = vmatmul.bf16.gmra.mxu3 %v4122_v48  ;;  %v1979_v11 = vpop.f32.mrf.mxu1  ;;  %v2260_v48 = vshll.u32 %v4732_v22, 16  ;;  %v2268_v47 = vrot.slane %v2266_v35, 5  ;;  %v2476_v54 = vrot.slane %v224_v56, 5 }
 0x242   : > { %v2581_v20 = vpop.f32.mrf.mxu0  ;;  %v2043_v29 = vadd.f32 %v1979_v11, %v4556_v3  ;;  %v1892_v11 = vunpack.c.l.b16 %v1873_v25 }
 0x243   : > { %vm2713_vm15 = vcmp.ge.f32.partialorder %v2681_v49, 0.0  ;;  %v2745_v12 = vmul.f32 0.2, %v2681_v49  ;;  %v2262_v21 = vrot.slane %v2260_v48, 5  ;;  %v2273_v37 = vor.u32 %v2272_v62, %v2268_v47 }
 0x244   : > { %v2383_v50 = vpop.f32.mrf.mxu3 }
 0x245   : > { %v2777_v63 = vsel %vm2713_vm15, %v2681_v49, %v2745_v12  ;;  %2620 = vmatmul.bf16.gmra.mxu0 %v4568_v1  ;;  %v2448_v51 = vadd.f32 %v2383_v50, %v2234_v55  ;;  %v2263_v17 = vor.u32 %v2262_v21, %v2259_v26  ;;  %v1891_v55 = vunpack.c.l.b16 %v1870_v53 }
 0x246   : > { %v3549_v34 = vpack.c.bf16 %v2777_v63, %v2776_v19  ;;  %v2274_v63 = vrot.slane %v2273_v37, 4  ;;  %v2475_v21 = vrot.slane %v2473_v7, 4 }
 0x247   : > { %v2171_v40 = vpop.f32.mrf.mxu2  ;;  %v2646_v44 = vadd.f32 %v2581_v20, %v2448_v51  ;;  %v2276_v20 = vshll.u32 %v224_v56, 16  ;;  %v2264_v58 = vrot.slane %v2263_v17, 4  ;;  %v1893_v8 = vpack.c.b16 %v1892_v11, %v1891_v55 }
 0x248   : > { %3609 = vst [vmem:[%s4692_s22 + $0x20] sm:$0xff] %v3549_v34   ;;  %v2235_v43 = vadd.f32 %v2171_v40, %v2043_v29  ;;  %v3384_v29 = vrot.slane %v4732_v22, 9  ;;  %v2477_v30 = vsel %vm4112_vm5, %v2475_v21, %v2476_v54 }
 0x249   : > { %v1982_v23 = vpop.f32.mrf.mxu1  ;;  %v2682_v14 = vadd.f32 %v4680_v15, %v2646_v44  ;;  %v2278_v51 = vrot.slane %v2276_v20, 5  ;;  %v2269_v60 = vsel %vm3739_vm2, %v2264_v58, %v2268_v47  ;;  %v2496_v55 = vunpack.c.l.b16 %v2477_v30 }
 0x24a   : > { %v2583_v18 = vpop.f32.mrf.mxu0  ;;  %v2044_v12 = vadd.f32 %v1982_v23, %v4566_v0  ;;  %v3453_v23 = vld [vmem:[%s3724_s23 + $0xcc] sm:$0xff] }
 0x24b   : > { %2021 = vmatmul.bf16.gmra.mxu1 %v4568_v1  ;;  %v2746_v61 = vmul.f32 0.2, %v2682_v14  ;;  %vm2714_vm0 = vcmp.ge.f32.partialorder %v2682_v14, 0.0  ;;  %v2279_v26 = vsel %vm3739_vm2, %v2274_v63, %v2278_v51 }
 0x24c   : > { %v2385_v3 = vpop.f32.mrf.mxu3  ;;  %2213 = vmatmul.bf16.gmra.mxu2 %v4577_v27  ;;  %v2298_v62 = vunpack.c.l.b16 %v2279_v26 }
 0x24d   : > { %v2449_v49 = vadd.f32 %v2385_v3, %v2235_v43  ;;  %v2778_v35 = vsel %vm2714_vm0, %v2682_v14, %v2746_v61  ;;  %v2474_v3 = vsel %vm4112_vm5, %v3384_v29, %v2473_v7 }
 0x24e   : > { %v2495_v56 = vunpack.c.l.b16 %v2474_v3 }
 0x24f   : > { %v2647_v36 = vadd.f32 %v2583_v18, %v2449_v49  ;;  %v2174_v50 = vpop.f32.mrf.mxu2  ;;  %v2297_v18 = vunpack.c.l.b16 %v2269_v60 }
 0x250   : > { %v2236_v27 = vadd.f32 %v2174_v50, %v2044_v12  ;;  %v2497_v39 = vpack.c.b16 %v2496_v55, %v2495_v56 }
 0x251   : > { %v2683_v1 = vadd.f32 %v4680_v15, %v2647_v36  ;;  %2427 = vmatmul.bf16.gmra.mxu3 %v4583_v41  ;;  %v1984_v48 = vpop.f32.mrf.mxu1  ;;  %v2299_v49 = vpack.c.b16 %v2298_v62, %v2297_v18 }
 0x252   : > { %v2586_v19 = vpop.f32.mrf.mxu0  ;;  %v2045_v44 = vadd.f32 %v1984_v48, %v4580_v13 }
 0x253   : > { %vm2715_vm1 = vcmp.ge.f32.partialorder %v2683_v1, 0.0  ;;  %v2747_v0 = vmul.f32 0.2, %v2683_v1 }
 0x254   : > { %v2388_v34 = vpop.f32.mrf.mxu3 }
 0x255   : > { %v2779_v6 = vsel %vm2715_vm1, %v2683_v1, %v2747_v0  ;;  %2625 = vmatmul.bf16.gmra.mxu0 %v1893_v8  ;;  %v2450_v41 = vadd.f32 %v2388_v34, %v2236_v27 }
 0x256   : > { %v3554_v40 = vpack.c.bf16 %v2779_v6, %v2778_v35 }
 0x257   : > { %v2176_v43 = vpop.f32.mrf.mxu2  ;;  %v2648_v53 = vadd.f32 %v2586_v19, %v2450_v41 }
 0x258   : > { %3610 = vst [vmem:[%s4692_s22 + $0x28] sm:$0xff] %v3554_v40   ;;  %v2237_v25 = vadd.f32 %v2176_v43, %v2045_v44 }
 0x259   : > { %v1987_v47 = vpop.f32.mrf.mxu1  ;;  %v2684_v13 = vadd.f32 %v4680_v15, %v2648_v53 }
 0x25a   : > { %v2588_v22 = vpop.f32.mrf.mxu0  ;;  %v2046_v37 = vadd.f32 %v1987_v47, %v4587_v33 }
 0x25b   : > { %2026 = vmatmul.bf16.gmra.mxu1 %v1893_v8  ;;  %v2748_v36 = vmul.f32 0.2, %v2684_v13  ;;  %vm2716_vm2 = vcmp.ge.f32.partialorder %v2684_v13, 0.0 }
 0x25c   : > { %v2390_v17 = vpop.f32.mrf.mxu3  ;;  %2218 = vmatmul.bf16.gmra.mxu2 %v3453_v23 }
 0x25d   : > { %v2451_v14 = vadd.f32 %v2390_v17, %v2237_v25  ;;  %v2780_v27 = vsel %vm2716_vm2, %v2684_v13, %v2748_v36 }
 0x25f   : > { %v2649_v11 = vadd.f32 %v2588_v22, %v2451_v14  ;;  %v2179_v20 = vpop.f32.mrf.mxu2 }
 0x260   : > { %v2238_v50 = vadd.f32 %v2179_v20, %v2046_v37 }
 0x261   : > { %v2685_v12 = vadd.f32 %v4680_v15, %v2649_v11  ;;  %2432 = vmatmul.bf16.gmra.mxu3 %v2299_v49  ;;  %v1989_v58 = vpop.f32.mrf.mxu1 }
 0x262   : > { %v2591_v61 = vpop.f32.mrf.mxu0  ;;  %v2047_v33 = vadd.f32 %v1989_v58, %v4592_v32 }
 0x263   : > { %vm2717_vm3 = vcmp.ge.f32.partialorder %v2685_v12, 0.0  ;;  %v2749_v1 = vmul.f32 0.2, %v2685_v12 }
 0x264   : > { %v2393_v8 = vpop.f32.mrf.mxu3 }
 0x265   : > { %v2781_v48 = vsel %vm2717_vm3, %v2685_v12, %v2749_v1  ;;  %2630 = vmatmul.bf16.gmra.mxu0 %v2497_v39  ;;  %v2452_v19 = vadd.f32 %v2393_v8, %v2238_v50 }
 0x266   : > { %v3559_v63 = vpack.c.bf16 %v2781_v48, %v2780_v27 }
 0x267   : > { %v2181_v51 = vpop.f32.mrf.mxu2  ;;  %v2650_v7 = vadd.f32 %v2591_v61, %v2452_v19 }
 0x268   : > { %3611 = vst [vmem:[%s4692_s22 + $0x30] sm:$0xff] %v3559_v63   ;;  %v2239_v0 = vadd.f32 %v2181_v51, %v2047_v33 }
 0x269   : > { %v1992_v34 = vpop.f32.mrf.mxu1  ;;  %v2686_v6 = vadd.f32 %v4680_v15, %v2650_v7 }
 0x26a   : > { %v2593_v60 = vpop.f32.mrf.mxu0  ;;  %v2048_v40 = vadd.f32 %v1992_v34, %v4597_v24 }
 0x26b   : > { %v2750_v21 = vmul.f32 0.2, %v2686_v6  ;;  %vm2718_vm4 = vcmp.ge.f32.partialorder %v2686_v6, 0.0 }
 0x26c   : > { %v2395_v35 = vpop.f32.mrf.mxu3 }
 0x26d   : > { %v2453_v41 = vadd.f32 %v2395_v35, %v2239_v0  ;;  %v2782_v53 = vsel %vm2718_vm4, %v2686_v6, %v2750_v21 }
 0x26f   : > { %v2651_v29 = vadd.f32 %v2593_v60, %v2453_v41  ;;  %v2184_v26 = vpop.f32.mrf.mxu2 }
 0x270   : > { %v2240_v44 = vadd.f32 %v2184_v26, %v2048_v40 }
 0x271   : > { %v2687_v54 = vadd.f32 %v4680_v15, %v2651_v29  ;;  %v1994_v32 = vpop.f32.mrf.mxu1 }
 0x272   : > { %v2596_v43 = vpop.f32.mrf.mxu0  ;;  %v2049_v3 = vadd.f32 %v1994_v32, %v4602_v16 }
 0x273   : > { %vm2719_vm5 = vcmp.ge.f32.partialorder %v2687_v54, 0.0  ;;  %v2751_v23 = vmul.f32 0.2, %v2687_v54 }
 0x274   : > { %v2398_v18 = vpop.f32.mrf.mxu3 }
 0x275   : > { %v2783_v25 = vsel %vm2719_vm5, %v2687_v54, %v2751_v23  ;;  %v2454_v47 = vadd.f32 %v2398_v18, %v2240_v44 }
 0x276   : > { %v3564_v62 = vpack.c.bf16 %v2783_v25, %v2782_v53 }
 0x277   : > { %v2186_v22 = vpop.f32.mrf.mxu2  ;;  %v2652_v24 = vadd.f32 %v2596_v43, %v2454_v47 }
 0x278   : > { %3612 = vst [vmem:[%s4692_s22 + $0x38] sm:$0xff] %v3564_v62   ;;  %v2241_v30 = vadd.f32 %v2186_v22, %v2049_v3 }
 0x279   : > { %v1997_v17 = vpop.f32.mrf.mxu1  ;;  %v2688_v14 = vadd.f32 %v4680_v15, %v2652_v24 }
 0x27a   : > { %v2598_v56 = vpop.f32.mrf.mxu0  ;;  %v2050_v11 = vadd.f32 %v1997_v17, %v4607_v45 }
 0x27b   : > { %v2752_v20 = vmul.f32 0.2, %v2688_v14  ;;  %vm2720_vm6 = vcmp.ge.f32.partialorder %v2688_v14, 0.0 }
 0x27c   : > { %v2400_v13 = vpop.f32.mrf.mxu3 }
 0x27d   : > { %v2455_v49 = vadd.f32 %v2400_v13, %v2241_v30  ;;  %v2784_v61 = vsel %vm2720_vm6, %v2688_v14, %v2752_v20 }
 0x27f   : > { %v2653_v55 = vadd.f32 %v2598_v56, %v2455_v49  ;;  %v2189_v37 = vpop.f32.mrf.mxu2 }
 0x280   : > { %v2242_v12 = vadd.f32 %v2189_v37, %v2050_v11 }
 0x281   : > { %v2689_v36 = vadd.f32 %v4680_v15, %v2653_v55  ;;  %v1999_v16 = vpop.f32.mrf.mxu1 }
 0x282   : > { %v2601_v39 = vpop.f32.mrf.mxu0  ;;  %v2051_v48 = vadd.f32 %v1999_v16, %v4612_v38 }
 0x283   : > { %vm2721_vm7 = vcmp.ge.f32.partialorder %v2689_v36, 0.0  ;;  %v2753_v50 = vmul.f32 0.2, %v2689_v36 }
 0x284   : > { %v2403_v58 = vpop.f32.mrf.mxu3 }
 0x285   : > { %v2785_v1 = vsel %vm2721_vm7, %v2689_v36, %v2753_v50  ;;  %v2456_v8 = vadd.f32 %v2403_v58, %v2242_v12 }
 0x286   : > { %v3569_v27 = vpack.c.bf16 %v2785_v1, %v2784_v61 }
 0x287   : > { %v2191_v19 = vpop.f32.mrf.mxu2  ;;  %v2654_v45 = vadd.f32 %v2601_v39, %v2456_v8 }
 0x288   : > { %3613 = vst [vmem:[%s4692_s22 + $0x40] sm:$0xff] %v3569_v27   ;;  %v2243_v63 = vadd.f32 %v2191_v19, %v2051_v48 }
 0x289   : > { %v2002_v33 = vpop.f32.mrf.mxu1  ;;  %v2690_v0 = vadd.f32 %v4680_v15, %v2654_v45 }
 0x28a   : > { %v2603_v51 = vpop.f32.mrf.mxu0  ;;  %v2052_v35 = vadd.f32 %v2002_v33, %v4617_v10 }
 0x28b   : > { %v2754_v41 = vmul.f32 0.2, %v2690_v0  ;;  %vm2722_vm8 = vcmp.ge.f32.partialorder %v2690_v0, 0.0 }
 0x28c   : > { %v2405_v7 = vpop.f32.mrf.mxu3 }
 0x28d   : > { %v2457_v34 = vadd.f32 %v2405_v7, %v2243_v63  ;;  %v2786_v44 = vsel %vm2722_vm8, %v2690_v0, %v2754_v41 }
 0x28f   : > { %v2655_v60 = vadd.f32 %v2603_v51, %v2457_v34  ;;  %v2194_v6 = vpop.f32.mrf.mxu2 }
 0x290   : > { %v2244_v40 = vadd.f32 %v2194_v6, %v2052_v35 }
 0x291   : > { %v2691_v29 = vadd.f32 %v4680_v15, %v2655_v60  ;;  %v2004_v38 = vpop.f32.mrf.mxu1 }
 0x292   : > { %v2606_v26 = vpop.f32.mrf.mxu0  ;;  %v2053_v18 = vadd.f32 %v2004_v38, %v4622_v42 }
 0x293   : > { %vm2723_vm9 = vcmp.ge.f32.partialorder %v2691_v29, 0.0  ;;  %v2755_v21 = vmul.f32 0.2, %v2691_v29 }
 0x294   : > { %v2408_v54 = vpop.f32.mrf.mxu3 }
 0x295   : > { %v2787_v32 = vsel %vm2723_vm9, %v2691_v29, %v2755_v21  ;;  %v2458_v43 = vadd.f32 %v2408_v54, %v2244_v40 }
 0x296   : > { %v3574_v23 = vpack.c.bf16 %v2787_v32, %v2786_v44 }
 0x297   : > { %v2196_v53 = vpop.f32.mrf.mxu2  ;;  %v2656_v10 = vadd.f32 %v2606_v26, %v2458_v43 }
 0x298   : > { %3614 = vst [vmem:[%s4692_s22 + $0x48] sm:$0xff] %v3574_v23   ;;  %v2245_v25 = vadd.f32 %v2196_v53, %v2053_v18 }
 0x299   : > { %v2007_v47 = vpop.f32.mrf.mxu1  ;;  %v2692_v22 = vadd.f32 %v4680_v15, %v2656_v10 }
 0x29a   : > { %v2608_v62 = vpop.f32.mrf.mxu0  ;;  %v2054_v17 = vadd.f32 %v2007_v47, %v4627_v52 }
 0x29b   : > { %v2756_v13 = vmul.f32 0.2, %v2692_v22  ;;  %vm2724_vm10 = vcmp.ge.f32.partialorder %v2692_v22, 0.0 }
 0x29c   : > { %v2410_v3 = vpop.f32.mrf.mxu3 }
 0x29d   : > { %v2459_v24 = vadd.f32 %v2410_v3, %v2245_v25  ;;  %v2788_v20 = vsel %vm2724_vm10, %v2692_v22, %v2756_v13 }
 0x29f   : > { %v2657_v30 = vadd.f32 %v2608_v62, %v2459_v24  ;;  %v2199_v56 = vpop.f32.mrf.mxu2 }
 0x2a0   : > { %v2246_v49 = vadd.f32 %v2199_v56, %v2054_v17 }
 0x2a1   : > { %v2693_v14 = vadd.f32 %v4680_v15, %v2657_v30  ;;  %v2009_v42 = vpop.f32.mrf.mxu1 }
 0x2a2   : > { %v2611_v55 = vpop.f32.mrf.mxu0  ;;  %v2055_v39 = vadd.f32 %v2009_v42, %v4632_v46 }
 0x2a3   : > { %vm2725_vm11 = vcmp.ge.f32.partialorder %v2693_v14, 0.0  ;;  %v2757_v11 = vmul.f32 0.2, %v2693_v14 }
 0x2a4   : > { %v2413_v37 = vpop.f32.mrf.mxu3 }
 0x2a5   : > { %v2789_v36 = vsel %vm2725_vm11, %v2693_v14, %v2757_v11  ;;  %v2460_v12 = vadd.f32 %v2413_v37, %v2246_v49 }
 0x2a6   : > { %v3579_v16 = vpack.c.bf16 %v2789_v36, %v2788_v20 }
 0x2a7   : > { %v2201_v50 = vpop.f32.mrf.mxu2  ;;  %v2658_v52 = vadd.f32 %v2611_v55, %v2460_v12 }
 0x2a8   : > { %3615 = vst [vmem:[%s4692_s22 + $0x50] sm:$0xff] %v3579_v16   ;;  %v2247_v58 = vadd.f32 %v2201_v50, %v2055_v39 }
 0x2a9   : > { %v2012_v61 = vpop.f32.mrf.mxu1  ;;  %v2694_v27 = vadd.f32 %v4680_v15, %v2658_v52 }
 0x2aa   : > { %v2613_v1 = vpop.f32.mrf.mxu0  ;;  %v2056_v45 = vadd.f32 %v2012_v61, %v4637_v57 }
 0x2ab   : > { %v2758_v33 = vmul.f32 0.2, %v2694_v27  ;;  %vm2726_vm12 = vcmp.ge.f32.partialorder %v2694_v27, 0.0 }
 0x2ac   : > { %v2415_v8 = vpop.f32.mrf.mxu3 }
 0x2ad   : > { %v2461_v48 = vadd.f32 %v2415_v8, %v2247_v58  ;;  %v2790_v35 = vsel %vm2726_vm12, %v2694_v27, %v2758_v33 }
 0x2af   : > { %v2659_v19 = vadd.f32 %v2613_v1, %v2461_v48  ;;  %v2204_v63 = vpop.f32.mrf.mxu2 }
 0x2b0   : > { %v2248_v7 = vadd.f32 %v2204_v63, %v2056_v45 }
 0x2b1   : > { %v2695_v51 = vadd.f32 %v4680_v15, %v2659_v19  ;;  %v2014_v46 = vpop.f32.mrf.mxu1 }
 0x2b2   : > { %v2616_v0 = vpop.f32.mrf.mxu0  ;;  %v2057_v40 = vadd.f32 %v2014_v46, %v4642_v4 }
 0x2b3   : > { %vm2727_vm13 = vcmp.ge.f32.partialorder %v2695_v51, 0.0  ;;  %v2759_v34 = vmul.f32 0.2, %v2695_v51 }
 0x2b4   : > { %v2418_v60 = vpop.f32.mrf.mxu3 }
 0x2b5   : > { %v2791_v6 = vsel %vm2727_vm13, %v2695_v51, %v2759_v34  ;;  %v2462_v41 = vadd.f32 %v2418_v60, %v2248_v7 }
 0x2b6   : > { %v3584_v29 = vpack.c.bf16 %v2791_v6, %v2790_v35 }
 0x2b7   : > { %v2206_v38 = vpop.f32.mrf.mxu2  ;;  %v2660_v57 = vadd.f32 %v2616_v0, %v2462_v41 }
 0x2b8   : > { %3616 = vst [vmem:[%s4692_s22 + $0x58] sm:$0xff] %v3584_v29   ;;  %v2249_v26 = vadd.f32 %v2206_v38, %v2057_v40 }
 0x2b9   : > { %v2017_v21 = vpop.f32.mrf.mxu1  ;;  %v2696_v32 = vadd.f32 %v4680_v15, %v2660_v57 }
 0x2ba   : > { %v2618_v54 = vpop.f32.mrf.mxu0  ;;  %v2058_v18 = vadd.f32 %v2017_v21, %v4647_v9 }
 0x2bb   : > { %v2760_v10 = vmul.f32 0.2, %v2696_v32  ;;  %vm2728_vm14 = vcmp.ge.f32.partialorder %v2696_v32, 0.0 }
 0x2bc   : > { %v2420_v44 = vpop.f32.mrf.mxu3 }
 0x2bd   : > { %v2463_v43 = vadd.f32 %v2420_v44, %v2249_v26  ;;  %v2792_v24 = vsel %vm2728_vm14, %v2696_v32, %v2760_v10 }
 0x2bf   : > { %v2661_v23 = vadd.f32 %v2618_v54, %v2463_v43  ;;  %v2209_v53 = vpop.f32.mrf.mxu2 }
 0x2c0   : > { %v2250_v47 = vadd.f32 %v2209_v53, %v2058_v18 }
 0x2c1   : > { %v2697_v25 = vadd.f32 %v4680_v15, %v2661_v23  ;;  %v2019_v4 = vpop.f32.mrf.mxu1 }
 0x2c2   : > { %v2621_v62 = vpop.f32.mrf.mxu0  ;;  %v2059_v13 = vadd.f32 %v2019_v4, %v4652_v2 }
 0x2c3   : > { %vm2729_vm15 = vcmp.ge.f32.partialorder %v2697_v25, 0.0  ;;  %v2761_v3 = vmul.f32 0.2, %v2697_v25 }
 0x2c4   : > { %v2423_v22 = vpop.f32.mrf.mxu3 }
 0x2c5   : > { %v2793_v30 = vsel %vm2729_vm15, %v2697_v25, %v2761_v3  ;;  %v2464_v17 = vadd.f32 %v2423_v22, %v2250_v47 }
 0x2c6   : > { %v3589_v56 = vpack.c.bf16 %v2793_v30, %v2792_v24 }
 0x2c7   : > { %v2211_v14 = vpop.f32.mrf.mxu2  ;;  %v2662_v9 = vadd.f32 %v2621_v62, %v2464_v17 }
 0x2c8   : > { %3617 = vst [vmem:[%s4692_s22 + $0x60] sm:$0xff] %v3589_v56   ;;  %v2251_v49 = vadd.f32 %v2211_v14, %v2059_v13 }
 0x2c9   : > { %v2022_v42 = vpop.f32.mrf.mxu1  ;;  %v2698_v37 = vadd.f32 %v4680_v15, %v2662_v9 }
 0x2ca   : > { %v2623_v55 = vpop.f32.mrf.mxu0  ;;  %v2060_v12 = vadd.f32 %v2022_v42, %v4657_v28 }
 0x2cb   : > { %v2762_v39 = vmul.f32 0.2, %v2698_v37  ;;  %vm2730_vm0 = vcmp.ge.f32.partialorder %v2698_v37, 0.0 }
 0x2cc   : > { %v2425_v11 = vpop.f32.mrf.mxu3 }
 0x2cd   : > { %v2465_v20 = vadd.f32 %v2425_v11, %v2251_v49  ;;  %v2794_v8 = vsel %vm2730_vm0, %v2698_v37, %v2762_v39 }
 0x2cf   : > { %v2663_v36 = vadd.f32 %v2623_v55, %v2465_v20  ;;  %v2214_v16 = vpop.f32.mrf.mxu2 }
 0x2d0   : > { %v2252_v52 = vadd.f32 %v2214_v16, %v2060_v12 }
 0x2d1   : > { %v2699_v50 = vadd.f32 %v4680_v15, %v2663_v36  ;;  %v2024_v2 = vpop.f32.mrf.mxu1 }
 0x2d2   : > { %v2626_v58 = vpop.f32.mrf.mxu0  ;;  %v2061_v45 = vadd.f32 %v2024_v2, %v4662_v59 }
 0x2d3   : > { %vm2731_vm1 = vcmp.ge.f32.partialorder %v2699_v50, 0.0  ;;  %v2763_v61 = vmul.f32 0.2, %v2699_v50 }
 0x2d4   : > { %v2428_v1 = vpop.f32.mrf.mxu3 }
 0x2d5   : > { %v2795_v27 = vsel %vm2731_vm1, %v2699_v50, %v2763_v61  ;;  %v2466_v48 = vadd.f32 %v2428_v1, %v2252_v52 }
 0x2d6   : > { %v3594_v19 = vpack.c.bf16 %v2795_v27, %v2794_v8 }
 0x2d7   : > { %v2216_v63 = vpop.f32.mrf.mxu2  ;;  %v2664_v28 = vadd.f32 %v2626_v58, %v2466_v48 }
 0x2d8   : > { %3618 = vst [vmem:[%s4692_s22 + $0x68] sm:$0xff] %v3594_v19   ;;  %v2253_v33 = vadd.f32 %v2216_v63, %v2061_v45 }
 0x2d9   : > { %v2027_v51 = vpop.f32.mrf.mxu1  ;;  %v2700_v0 = vadd.f32 %v4680_v15, %v2664_v28 }
 0x2da   : > { %v2628_v7 = vpop.f32.mrf.mxu0  ;;  %v2062_v35 = vadd.f32 %v2027_v51, %v4667_v31 }
 0x2db   : > { %v2764_v41 = vmul.f32 0.2, %v2700_v0  ;;  %vm2732_vm2 = vcmp.ge.f32.partialorder %v2700_v0, 0.0 }
 0x2dc   : > { %v2430_v46 = vpop.f32.mrf.mxu3 }
 0x2dd   : > { %v2467_v34 = vadd.f32 %v2430_v46, %v2253_v33  ;;  %v2796_v21 = vsel %vm2732_vm2, %v2700_v0, %v2764_v41 }
 0x2df   : > { %v2665_v60 = vadd.f32 %v2628_v7, %v2467_v34  ;;  %v2219_v6 = vpop.f32.mrf.mxu2 }
 0x2e0   : > { %v2254_v40 = vadd.f32 %v2219_v6, %v2062_v35 }
 0x2e1   : > { %v2701_v29 = vadd.f32 %v4680_v15, %v2665_v60  ;;  %v2029_v38 = vpop.f32.mrf.mxu1 }
 0x2e2   : > { %v2631_v57 = vpop.f32.mrf.mxu0  ;;  %v2063_v43 = vadd.f32 %v2029_v38, %v4672_v5 }
 0x2e3   : > { %vm2733_vm3 = vcmp.ge.f32.partialorder %v2701_v29, 0.0  ;;  %v2765_v59 = vmul.f32 0.2, %v2701_v29 }
 0x2e4   : > { %v2433_v26 = vpop.f32.mrf.mxu3 }
 0x2e5   : > { %v2797_v54 = vsel %vm2733_vm3, %v2701_v29, %v2765_v59  ;;  %v2468_v44 = vadd.f32 %v2433_v26, %v2254_v40 }
 0x2e6   : > { %v3599_v32 = vpack.c.bf16 %v2797_v54, %v2796_v21 }
 0x2e7   : > { %v2221_v23 = vpop.f32.mrf.mxu2  ;;  %v2666_v31 = vadd.f32 %v2631_v57, %v2468_v44 }
 0x2e8   : > { %3619 = vst [vmem:[%s4692_s22 + $0x70] sm:$0xff] %v3599_v32   ;;  %v2255_v18 = vadd.f32 %v2221_v23, %v2063_v43 }
 0x2e9   : > { %v2702_v10 = vadd.f32 %v4680_v15, %v2666_v31 }
 0x2ea   : > { %v2633_v47 = vpop.f32.mrf.mxu0 }
 0x2eb   : > { %v2766_v62 = vmul.f32 0.2, %v2702_v10  ;;  %vm2734_vm4 = vcmp.ge.f32.partialorder %v2702_v10, 0.0 }
 0x2ec   : > { %v2435_v53 = vpop.f32.mrf.mxu3 }
 0x2ed   : > { %v2469_v25 = vadd.f32 %v2435_v53, %v2255_v18  ;;  %v2798_v24 = vsel %vm2734_vm4, %v2702_v10, %v2766_v62 }
 0x2ef   : > { %v2667_v4 = vadd.f32 %v2633_v47, %v2469_v25 }
 0x2f1   : > { %v2703_v3 = vadd.f32 %v4680_v15, %v2667_v4 }
 0x2f3   : > { %vm2735_vm5 = vcmp.ge.f32.partialorder %v2703_v3, 0.0  ;;  %v2767_v22 = vmul.f32 0.2, %v2703_v3 }
 0x2f5   : > { %v2799_v30 = vsel %vm2735_vm5, %v2703_v3, %v2767_v22 }
 0x2f6   : > { %v3604_v5 = vpack.c.bf16 %v2799_v30, %v2798_v24 }
 0x2f8   : > { %3620 = vst [vmem:[%s4692_s22 + $0x78] sm:$0xff] %v3604_v5  }
 0x2f9 PF: > { %s13_s12 = sadd.s32 1, %s3679_s12  }
 0x2fa   : > { %p10_p4 = scmp.ge.s32.totalorder %s13_s12, 4  }
 0x2fc   :  { %12 = sbr.rel (!%p10_p4) target bundleno = 1 (0x1), region = 70 }

</bundles_post_ra>
